<compile_context>
chip_gen: v6e
topology: v6e:2x2x1
jax: 0.10.0
libtpu: 0.0.40
codegen_flags: <defaults>
</compile_context>

<pallas_src>
import jax
import jax.numpy as jnp
from jax.experimental import pallas as pl
from jax.experimental.pallas import tpu as pltpu

IN_DIM = 784                 # 28*28; multiple of 8, no feature padding needed
HIDDEN, HID_PAD = 400, 512   # hidden zero-padded to full lane groups
LATENT = 16
HEAD_SLAB = 128              # mu / logvar each occupy one full 128-lane slab
LAT_PAD = 128                # eps / z padded to one full lane group


def _round_up(n, m):
    return ((n + m - 1) // m) * m


def _elu(x):
    # ELU alpha=1.0 (PyTorch default). No min-clamp: the exp branch is never
    # selected for x > 0 (forward-only; classic where-VJP caveat if grads taken).
    return jnp.where(x > 0, x, jnp.exp(x) - 1.0)


def _sigmoid(x):
    # sigmoid(x) = 0.5*(tanh(0.5*x)+1): a single EUP push, exact (no approx recip).
    return 0.5 * (jnp.tanh(0.5 * x) + 1.0)


def vae_kernel(x_ref, eps_ref,
               w1_ref, b1_ref, w2_ref, b2_ref, wh_ref, bh_ref,
               wd1_ref, bd1_ref, wd2_ref, bd2_ref, wd3_ref, bd3_ref,
               recon_ref, heads_ref):
    def dot(a, w_ref):
        # bf16 x bf16 MXU matmul with f32 accumulation.
        return jnp.dot(a.astype(jnp.bfloat16), w_ref[...],
                       preferred_element_type=jnp.float32)

    x = x_ref[...]

    # encoder_base: Linear(784,512p)+ELU -> Linear(512p,512p)+ELU
    h1 = _elu(dot(x, w1_ref) + b1_ref[...])
    h2 = _elu(dot(h1, w2_ref) + b2_ref[...])

    # Fused latent heads: single (512,256) MXU call, lane-dense (tile_b,256) store.
    # Slab 0 lanes [0,16) = mu, slab 1 lanes [0,16) = logvar, all other lanes zero.
    ml = dot(h2, wh_ref) + bh_ref[...]              # (tile_b, 256) f32
    heads_ref[...] = ml

    # reparameterize in f32 on full vreg-aligned slabs: z = eps*exp(0.5*logvar)+mu.
    mu_s = ml[:, :HEAD_SLAB]
    lv_s = ml[:, HEAD_SLAB:]
    z = eps_ref[...] * jnp.exp(0.5 * lv_s) + mu_s   # (tile_b, 128), padded lanes == 0

    # decoder: Linear(128p,512p)+ELU -> Linear(512p,512p)+ELU -> Linear(512p,784)+Sigmoid
    d1 = _elu(dot(z, wd1_ref) + bd1_ref[...])
    d2 = _elu(dot(d1, wd2_ref) + bd2_ref[...])
    recon_ref[...] = _sigmoid(dot(d2, wd3_ref) + bd3_ref[...])


def _pad_to(a, shape):
    return jnp.pad(a, [(0, s - d) for d, s in zip(a.shape, shape)])


def pack_params(p):
    """Zero-pad to lane-aligned shapes, fuse fc21/fc22 into two 128-lane slabs,
    pad wd1's K dim to 128, and store all matmul weights in bf16 (biases f32)."""
    wh = jnp.concatenate([_pad_to(p["w21"], (HID_PAD, HEAD_SLAB)),
                          _pad_to(p["w22"], (HID_PAD, HEAD_SLAB))], axis=1)  # (512,256)
    bh = jnp.concatenate([_pad_to(p["b21"], (1, HEAD_SLAB)),
                          _pad_to(p["b22"], (1, HEAD_SLAB))], axis=1)        # (1,256)
    w = lambda a: a.astype(jnp.bfloat16)
    return {
        "w1": w(_pad_to(p["w1"], (IN_DIM, HID_PAD))),   "b1": _pad_to(p["b1"], (1, HID_PAD)),
        "w2": w(_pad_to(p["w2"], (HID_PAD, HID_PAD))),  "b2": _pad_to(p["b2"], (1, HID_PAD)),
        "wh": w(wh),                                    "bh": bh,
        "wd1": w(_pad_to(p["wd1"], (LAT_PAD, HID_PAD))), "bd1": _pad_to(p["bd1"], (1, HID_PAD)),
        "wd2": w(_pad_to(p["wd2"], (HID_PAD, HID_PAD))), "bd2": _pad_to(p["bd2"], (1, HID_PAD)),
        "wd3": w(_pad_to(p["wd3"], (HID_PAD, IN_DIM))),  "bd3": _pad_to(p["bd3"], (1, IN_DIM)),
    }


_WEIGHT_ORDER = ["w1", "b1", "w2", "b2", "wh", "bh",
                 "wd1", "bd1", "wd2", "bd2", "wd3", "bd3"]


def _device_defaults():
    """(max_tile_b, min_tiles, vmem_limit_bytes) per TPU generation.
    Any outcome is correct; this only tunes tiling."""
    max_tile_b, min_tiles, vmem = 256, 1, 24 << 20          # safe everywhere
    try:
        kind = jax.devices()[0].device_kind.lower()
    except Exception:
        return max_tile_b, min_tiles, vmem
    if "v5" in kind or "v6" in kind:
        max_tile_b, vmem = 512, 40 << 20                    # 128 MiB VMEM parts
    elif "7" in kind:
        min_tiles = 2                                       # feed both TensorCores
    return max_tile_b, min_tiles, vmem


def vae_forward(x_img, eps, packed):
    """x_img: (B,1,28,28) f32; eps: (B,16) f32; packed: pack_params() output.
    Returns (recon (B,784), mu (B,16), logvar (B,16))."""
    B = x_img.shape[0]
    x = x_img.reshape(B, IN_DIM).astype(jnp.float32)        # x.view(-1, 784)

    max_tile_b, min_tiles, vmem_bytes = _device_defaults()
    # Even-out tiles to minimize batch padding; optionally force >=2 tiles (v7x).
    nb = pl.cdiv(B, max_tile_b)
    nb = max(nb, min(min_tiles, pl.cdiv(B, 8)))
    tile_b = _round_up(pl.cdiv(B, nb), 8)
    b_pad = nb * tile_b

    x_p = jnp.pad(x, ((0, b_pad - B), (0, 0)))                              # rows only
    eps_p = jnp.pad(eps.astype(jnp.float32),
                    ((0, b_pad - B), (0, LAT_PAD - LATENT)))                # lane-dense

    def batch_spec(cols):
        return pl.BlockSpec((tile_b, cols), lambda i: (i, 0))

    def pinned_spec(arr):
        # Constant block index -> resident weight; single buffer (never re-fetched).
        return pl.BlockSpec(arr.shape, lambda i: (0, 0),
                            pipeline_mode=pl.Buffered(1))

    weight_args = [packed[k] for k in _WEIGHT_ORDER]
    weight_specs = [pinned_spec(a) for a in weight_args]

    recon_p, heads = pl.pallas_call(
        vae_kernel,
        out_shape=(
            jax.ShapeDtypeStruct((b_pad, IN_DIM), jnp.float32),
            jax.ShapeDtypeStruct((b_pad, 2 * HEAD_SLAB), jnp.float32),
        ),
        grid_spec=pltpu.PrefetchScalarGridSpec(
            num_scalar_prefetch=0,
            grid=(nb,),
            in_specs=[batch_spec(IN_DIM), batch_spec(LAT_PAD)] + weight_specs,
            out_specs=(batch_spec(IN_DIM), batch_spec(2 * HEAD_SLAB)),
        ),
        compiler_params=pltpu.CompilerParams(
            dimension_semantics=("parallel",),   # shard batch tiles across TCs (v7x)
            vmem_limit_bytes=vmem_bytes,
        ),
    )(x_p, eps_p, *weight_args)

    recon = recon_p[:B]                          # row slice only (often a no-op)
    mu = heads[:B, :LATENT]
    logvar = heads[:B, HEAD_SLAB:HEAD_SLAB + LATENT]
    return recon, mu, logvar


def init_params(key):
    """PyTorch-Linear-style init: U(-1/sqrt(fan_in), 1/sqrt(fan_in)).
    Logical (unpadded) weights stored as (in, out); biases as (1, out)."""
    dims = {
        "1":  (IN_DIM, HIDDEN),
        "2":  (HIDDEN, HIDDEN),
        "21": (HIDDEN, LATENT),
        "22": (HIDDEN, LATENT),
        "d1": (LATENT, HIDDEN),
        "d2": (HIDDEN, HIDDEN),
        "d3": (HIDDEN, IN_DIM),
    }
    params = {}
    keys = jax.random.split(key, 2 * len(dims))
    for i, (name, (fan_in, fan_out)) in enumerate(dims.items()):
        bound = 1.0 / jnp.sqrt(jnp.float32(fan_in))
        wk, bk = keys[2 * i], keys[2 * i + 1]
        params["w" + name] = jax.random.uniform(
            wk, (fan_in, fan_out), jnp.float32, -bound, bound)
        params["b" + name] = jax.random.uniform(
            bk, (1, fan_out), jnp.float32, -bound, bound)
    return params


def vae_forward_ref(x_img, eps, params):
    """Pure-JAX f32 reference on the unpadded params, for correctness checking."""
    B = x_img.shape[0]
    x = x_img.reshape(B, IN_DIM).astype(jnp.float32)
    elu = lambda v: jnp.where(v > 0, v, jnp.exp(jnp.minimum(v, 0.0)) - 1.0)
    h1 = elu(x @ params["w1"] + params["b1"])
    h2 = elu(h1 @ params["w2"] + params["b2"])
    mu = h2 @ params["w21"] + params["b21"]
    logvar = h2 @ params["w22"] + params["b22"]
    z = eps * jnp.exp(0.5 * logvar) + mu
    d1 = elu(z @ params["wd1"] + params["bd1"])
    d2 = elu(d1 @ params["wd2"] + params["bd2"])
    recon = jax.nn.sigmoid(d2 @ params["wd3"] + params["bd3"])
    return recon, mu, logvar


if __name__ == "__main__":
    key = jax.random.PRNGKey(0)
    k_param, k_x, k_eps = jax.random.split(key, 3)

    B = 8
    x_img = jax.random.normal(k_x, (B, 1, 28, 28), jnp.float32)
    # eps plays the role of torch.randn_like(std) in reparameterize; sampled
    # deterministically here and passed into the kernel.
    eps = jax.random.normal(k_eps, (B, LATENT), jnp.float32)

    params = init_params(k_param)
    packed = pack_params(params)          # pad / fuse / bf16-cast once, outside the jit

    fwd = jax.jit(vae_forward)
    recon, mu, logvar = jax.block_until_ready(fwd(x_img, eps, packed))

    # Silent sanity check against the pure-JAX f32 reference.  Tolerances are
    # widened to cover bf16 MXU inputs (accumulation stays f32; reparameterize
    # math stays f32 in-kernel).
    r_ref, mu_ref, lv_ref = vae_forward_ref(x_img, eps, params)
    assert recon.shape == (B, IN_DIM) and mu.shape == (B, LATENT) and logvar.shape == (B, LATENT)
    assert jnp.allclose(mu, mu_ref, atol=5e-2, rtol=5e-2)
    assert jnp.allclose(logvar, lv_ref, atol=5e-2, rtol=5e-2)
    assert jnp.allclose(recon, r_ref, atol=3e-2, rtol=3e-2)

    print("KERNEL_OK")
</pallas_src>

<mosaic_0001>
module attributes {stable_mosaic.version = 11 : i64} {
  func.func @vae_kernel(%arg0: i32, %arg1: memref<8x784xf32, #tpu.memory_space<vmem>>, %arg2: memref<8x128xf32, #tpu.memory_space<vmem>>, %arg3: memref<784x512xbf16, #tpu.memory_space<vmem>>, %arg4: memref<1x512xf32, #tpu.memory_space<vmem>>, %arg5: memref<512x512xbf16, #tpu.memory_space<vmem>>, %arg6: memref<1x512xf32, #tpu.memory_space<vmem>>, %arg7: memref<512x256xbf16, #tpu.memory_space<vmem>>, %arg8: memref<1x256xf32, #tpu.memory_space<vmem>>, %arg9: memref<128x512xbf16, #tpu.memory_space<vmem>>, %arg10: memref<1x512xf32, #tpu.memory_space<vmem>>, %arg11: memref<512x512xbf16, #tpu.memory_space<vmem>>, %arg12: memref<1x512xf32, #tpu.memory_space<vmem>>, %arg13: memref<512x784xbf16, #tpu.memory_space<vmem>>, %arg14: memref<1x784xf32, #tpu.memory_space<vmem>>, %arg15: memref<8x784xf32, #tpu.memory_space<vmem>>, %arg16: memref<8x256xf32, #tpu.memory_space<vmem>>) attributes {dimension_semantics = [#tpu.dimension_semantics<parallel>], iteration_bounds = array<i64: 1>, scalar_prefetch = 0 : i64, scratch_operands = 0 : i64, tpu.core_type = #tpu.core_type<tc>, window_params = [{transform_indices = @transform_0, window_bounds = array<i64: 8, 784>}, {transform_indices = @transform_1, window_bounds = array<i64: 8, 128>}, {pipeline_mode = #tpu.pipeline_mode<synchronous>, transform_indices = @transform_2, window_bounds = array<i64: 784, 512>}, {pipeline_mode = #tpu.pipeline_mode<synchronous>, transform_indices = @transform_3, window_bounds = array<i64: 1, 512>}, {pipeline_mode = #tpu.pipeline_mode<synchronous>, transform_indices = @transform_4, window_bounds = array<i64: 512, 512>}, {pipeline_mode = #tpu.pipeline_mode<synchronous>, transform_indices = @transform_5, window_bounds = array<i64: 1, 512>}, {pipeline_mode = #tpu.pipeline_mode<synchronous>, transform_indices = @transform_6, window_bounds = array<i64: 512, 256>}, {pipeline_mode = #tpu.pipeline_mode<synchronous>, transform_indices = @transform_7, window_bounds = array<i64: 1, 256>}, {pipeline_mode = #tpu.pipeline_mode<synchronous>, transform_indices = @transform_8, window_bounds = array<i64: 128, 512>}, {pipeline_mode = #tpu.pipeline_mode<synchronous>, transform_indices = @transform_9, window_bounds = array<i64: 1, 512>}, {pipeline_mode = #tpu.pipeline_mode<synchronous>, transform_indices = @transform_10, window_bounds = array<i64: 512, 512>}, {pipeline_mode = #tpu.pipeline_mode<synchronous>, transform_indices = @transform_11, window_bounds = array<i64: 1, 512>}, {pipeline_mode = #tpu.pipeline_mode<synchronous>, transform_indices = @transform_12, window_bounds = array<i64: 512, 784>}, {pipeline_mode = #tpu.pipeline_mode<synchronous>, transform_indices = @transform_13, window_bounds = array<i64: 1, 784>}, {transform_indices = @transform_14, window_bounds = array<i64: 8, 784>}, {transform_indices = @transform_15, window_bounds = array<i64: 8, 256>}]} {
    %c0 = arith.constant 0 : index
    %c0_0 = arith.constant 0 : index
    %0 = vector.load %arg1[%c0, %c0_0] : memref<8x784xf32, #tpu.memory_space<vmem>>, vector<8x784xf32>
    %1 = arith.truncf %0 : vector<8x784xf32> to vector<8x784xbf16>
    %c0_1 = arith.constant 0 : index
    %c0_2 = arith.constant 0 : index
    %2 = vector.load %arg3[%c0_1, %c0_2] : memref<784x512xbf16, #tpu.memory_space<vmem>>, vector<784x512xbf16>
    %cst = arith.constant dense<0.000000e+00> : vector<8x512xf32>
    %3 = tpu.matmul %1, %2, %cst {dimension_numbers = #tpu.dot_dimension_numbers<[1], [0], [0], [1], [0, 0, 1, 1], [], []>} : vector<8x784xbf16>, vector<784x512xbf16>, vector<8x512xf32> -> vector<8x512xf32>
    %c0_3 = arith.constant 0 : index
    %c0_4 = arith.constant 0 : index
    %4 = vector.load %arg4[%c0_3, %c0_4] : memref<1x512xf32, #tpu.memory_space<vmem>>, vector<1x512xf32>
    %5 = vector.broadcast %4 : vector<1x512xf32> to vector<8x512xf32>
    %6 = arith.addf %3, %5 : vector<8x512xf32>
    %cst_5 = arith.constant 0.000000e+00 : f32
    %7 = vector.broadcast %cst_5 : f32 to vector<8x512xf32>
    %8 = arith.cmpf ogt, %6, %7 : vector<8x512xf32>
    %9 = math.exp %6 : vector<8x512xf32>
    %cst_6 = arith.constant 1.000000e+00 : f32
    %10 = vector.broadcast %cst_6 : f32 to vector<8x512xf32>
    %11 = arith.subf %9, %10 : vector<8x512xf32>
    %12 = arith.select %8, %6, %11 : vector<8x512xi1>, vector<8x512xf32>
    %13 = arith.truncf %12 : vector<8x512xf32> to vector<8x512xbf16>
    %c0_7 = arith.constant 0 : index
    %c0_8 = arith.constant 0 : index
    %14 = vector.load %arg5[%c0_7, %c0_8] : memref<512x512xbf16, #tpu.memory_space<vmem>>, vector<512x512xbf16>
    %cst_9 = arith.constant dense<0.000000e+00> : vector<8x512xf32>
    %15 = tpu.matmul %13, %14, %cst_9 {dimension_numbers = #tpu.dot_dimension_numbers<[1], [0], [0], [1], [0, 0, 1, 1], [], []>} : vector<8x512xbf16>, vector<512x512xbf16>, vector<8x512xf32> -> vector<8x512xf32>
    %c0_10 = arith.constant 0 : index
    %c0_11 = arith.constant 0 : index
    %16 = vector.load %arg6[%c0_10, %c0_11] : memref<1x512xf32, #tpu.memory_space<vmem>>, vector<1x512xf32>
    %17 = vector.broadcast %16 : vector<1x512xf32> to vector<8x512xf32>
    %18 = arith.addf %15, %17 : vector<8x512xf32>
    %cst_12 = arith.constant 0.000000e+00 : f32
    %19 = vector.broadcast %cst_12 : f32 to vector<8x512xf32>
    %20 = arith.cmpf ogt, %18, %19 : vector<8x512xf32>
    %21 = math.exp %18 : vector<8x512xf32>
    %cst_13 = arith.constant 1.000000e+00 : f32
    %22 = vector.broadcast %cst_13 : f32 to vector<8x512xf32>
    %23 = arith.subf %21, %22 : vector<8x512xf32>
    %24 = arith.select %20, %18, %23 : vector<8x512xi1>, vector<8x512xf32>
    %25 = arith.truncf %24 : vector<8x512xf32> to vector<8x512xbf16>
    %c0_14 = arith.constant 0 : index
    %c0_15 = arith.constant 0 : index
    %26 = vector.load %arg7[%c0_14, %c0_15] : memref<512x256xbf16, #tpu.memory_space<vmem>>, vector<512x256xbf16>
    %cst_16 = arith.constant dense<0.000000e+00> : vector<8x256xf32>
    %27 = tpu.matmul %25, %26, %cst_16 {dimension_numbers = #tpu.dot_dimension_numbers<[1], [0], [0], [1], [0, 0, 1, 1], [], []>} : vector<8x512xbf16>, vector<512x256xbf16>, vector<8x256xf32> -> vector<8x256xf32>
    %c0_17 = arith.constant 0 : index
    %c0_18 = arith.constant 0 : index
    %28 = vector.load %arg8[%c0_17, %c0_18] : memref<1x256xf32, #tpu.memory_space<vmem>>, vector<1x256xf32>
    %29 = vector.broadcast %28 : vector<1x256xf32> to vector<8x256xf32>
    %30 = arith.addf %27, %29 : vector<8x256xf32>
    %c0_19 = arith.constant 0 : index
    %c0_20 = arith.constant 0 : index
    %31 = vector.load %arg16[%c0_19, %c0_20] : memref<8x256xf32, #tpu.memory_space<vmem>>, vector<8x256xf32>
    tpu.vector_store %arg16[%c0_19, %c0_20], %30 {strides = array<i32>} : memref<8x256xf32, #tpu.memory_space<vmem>>, vector<8x256xf32>,
    %32 = vector.extract_strided_slice %30 {offsets = [0, 0], sizes = [8, 128], strides = [1, 1]} : vector<8x256xf32> to vector<8x128xf32>
    %33 = vector.extract_strided_slice %30 {offsets = [0, 128], sizes = [8, 128], strides = [1, 1]} : vector<8x256xf32> to vector<8x128xf32>
    %c0_21 = arith.constant 0 : index
    %c0_22 = arith.constant 0 : index
    %34 = vector.load %arg2[%c0_21, %c0_22] : memref<8x128xf32, #tpu.memory_space<vmem>>, vector<8x128xf32>
    %cst_23 = arith.constant 5.000000e-01 : f32
    %35 = vector.broadcast %cst_23 : f32 to vector<8x128xf32>
    %36 = arith.mulf %35, %33 : vector<8x128xf32>
    %37 = math.exp %36 : vector<8x128xf32>
    %38 = arith.mulf %34, %37 : vector<8x128xf32>
    %39 = arith.addf %38, %32 : vector<8x128xf32>
    %40 = arith.truncf %39 : vector<8x128xf32> to vector<8x128xbf16>
    %c0_24 = arith.constant 0 : index
    %c0_25 = arith.constant 0 : index
    %41 = vector.load %arg9[%c0_24, %c0_25] : memref<128x512xbf16, #tpu.memory_space<vmem>>, vector<128x512xbf16>
    %cst_26 = arith.constant dense<0.000000e+00> : vector<8x512xf32>
    %42 = tpu.matmul %40, %41, %cst_26 {dimension_numbers = #tpu.dot_dimension_numbers<[1], [0], [0], [1], [0, 0, 1, 1], [], []>} : vector<8x128xbf16>, vector<128x512xbf16>, vector<8x512xf32> -> vector<8x512xf32>
    %c0_27 = arith.constant 0 : index
    %c0_28 = arith.constant 0 : index
    %43 = vector.load %arg10[%c0_27, %c0_28] : memref<1x512xf32, #tpu.memory_space<vmem>>, vector<1x512xf32>
    %44 = vector.broadcast %43 : vector<1x512xf32> to vector<8x512xf32>
    %45 = arith.addf %42, %44 : vector<8x512xf32>
    %cst_29 = arith.constant 0.000000e+00 : f32
    %46 = vector.broadcast %cst_29 : f32 to vector<8x512xf32>
    %47 = arith.cmpf ogt, %45, %46 : vector<8x512xf32>
    %48 = math.exp %45 : vector<8x512xf32>
    %cst_30 = arith.constant 1.000000e+00 : f32
    %49 = vector.broadcast %cst_30 : f32 to vector<8x512xf32>
    %50 = arith.subf %48, %49 : vector<8x512xf32>
    %51 = arith.select %47, %45, %50 : vector<8x512xi1>, vector<8x512xf32>
    %52 = arith.truncf %51 : vector<8x512xf32> to vector<8x512xbf16>
    %c0_31 = arith.constant 0 : index
    %c0_32 = arith.constant 0 : index
    %53 = vector.load %arg11[%c0_31, %c0_32] : memref<512x512xbf16, #tpu.memory_space<vmem>>, vector<512x512xbf16>
    %cst_33 = arith.constant dense<0.000000e+00> : vector<8x512xf32>
    %54 = tpu.matmul %52, %53, %cst_33 {dimension_numbers = #tpu.dot_dimension_numbers<[1], [0], [0], [1], [0, 0, 1, 1], [], []>} : vector<8x512xbf16>, vector<512x512xbf16>, vector<8x512xf32> -> vector<8x512xf32>
    %c0_34 = arith.constant 0 : index
    %c0_35 = arith.constant 0 : index
    %55 = vector.load %arg12[%c0_34, %c0_35] : memref<1x512xf32, #tpu.memory_space<vmem>>, vector<1x512xf32>
    %56 = vector.broadcast %55 : vector<1x512xf32> to vector<8x512xf32>
    %57 = arith.addf %54, %56 : vector<8x512xf32>
    %cst_36 = arith.constant 0.000000e+00 : f32
    %58 = vector.broadcast %cst_36 : f32 to vector<8x512xf32>
    %59 = arith.cmpf ogt, %57, %58 : vector<8x512xf32>
    %60 = math.exp %57 : vector<8x512xf32>
    %cst_37 = arith.constant 1.000000e+00 : f32
    %61 = vector.broadcast %cst_37 : f32 to vector<8x512xf32>
    %62 = arith.subf %60, %61 : vector<8x512xf32>
    %63 = arith.select %59, %57, %62 : vector<8x512xi1>, vector<8x512xf32>
    %64 = arith.truncf %63 : vector<8x512xf32> to vector<8x512xbf16>
    %c0_38 = arith.constant 0 : index
    %c0_39 = arith.constant 0 : index
    %65 = vector.load %arg13[%c0_38, %c0_39] : memref<512x784xbf16, #tpu.memory_space<vmem>>, vector<512x784xbf16>
    %cst_40 = arith.constant dense<0.000000e+00> : vector<8x784xf32>
    %66 = tpu.matmul %64, %65, %cst_40 {dimension_numbers = #tpu.dot_dimension_numbers<[1], [0], [0], [1], [0, 0, 1, 1], [], []>} : vector<8x512xbf16>, vector<512x784xbf16>, vector<8x784xf32> -> vector<8x784xf32>
    %c0_41 = arith.constant 0 : index
    %c0_42 = arith.constant 0 : index
    %67 = vector.load %arg14[%c0_41, %c0_42] : memref<1x784xf32, #tpu.memory_space<vmem>>, vector<1x784xf32>
    %68 = vector.broadcast %67 : vector<1x784xf32> to vector<8x784xf32>
    %69 = arith.addf %66, %68 : vector<8x784xf32>
    %cst_43 = arith.constant 5.000000e-01 : f32
    %70 = vector.broadcast %cst_43 : f32 to vector<8x784xf32>
    %71 = arith.mulf %70, %69 : vector<8x784xf32>
    %72 = math.tanh %71 : vector<8x784xf32>
    %cst_44 = arith.constant 1.000000e+00 : f32
    %73 = vector.broadcast %cst_44 : f32 to vector<8x784xf32>
    %74 = arith.addf %72, %73 : vector<8x784xf32>
    %cst_45 = arith.constant 5.000000e-01 : f32
    %75 = vector.broadcast %cst_45 : f32 to vector<8x784xf32>
    %76 = arith.mulf %75, %74 : vector<8x784xf32>
    %c0_46 = arith.constant 0 : index
    %c0_47 = arith.constant 0 : index
    %77 = vector.load %arg15[%c0_46, %c0_47] : memref<8x784xf32, #tpu.memory_space<vmem>>, vector<8x784xf32>
    tpu.vector_store %arg15[%c0_46, %c0_47], %76 {strides = array<i32>} : memref<8x784xf32, #tpu.memory_space<vmem>>, vector<8x784xf32>,
    return
  }
  func.func @transform_0(%arg0: i32) -> (i32, i32) {
    %c0_i32 = arith.constant 0 : i32
    %c0_i32_0 = arith.constant 0 : i32
    return %arg0, %c0_i32 : i32, i32
  }
  func.func @transform_1(%arg0: i32) -> (i32, i32) {
    %c0_i32 = arith.constant 0 : i32
    %c0_i32_0 = arith.constant 0 : i32
    return %arg0, %c0_i32 : i32, i32
  }
  func.func @transform_2(%arg0: i32) -> (i32, i32) {
    %c0_i32 = arith.constant 0 : i32
    %c0_i32_0 = arith.constant 0 : i32
    %c0_i32_1 = arith.constant 0 : i32
    return %c0_i32, %c0_i32_0 : i32, i32
  }
  func.func @transform_3(%arg0: i32) -> (i32, i32) {
    %c0_i32 = arith.constant 0 : i32
    %c0_i32_0 = arith.constant 0 : i32
    %c0_i32_1 = arith.constant 0 : i32
    return %c0_i32, %c0_i32_0 : i32, i32
  }
  func.func @transform_4(%arg0: i32) -> (i32, i32) {
    %c0_i32 = arith.constant 0 : i32
    %c0_i32_0 = arith.constant 0 : i32
    %c0_i32_1 = arith.constant 0 : i32
    return %c0_i32, %c0_i32_0 : i32, i32
  }
  func.func @transform_5(%arg0: i32) -> (i32, i32) {
    %c0_i32 = arith.constant 0 : i32
    %c0_i32_0 = arith.constant 0 : i32
    %c0_i32_1 = arith.constant 0 : i32
    return %c0_i32, %c0_i32_0 : i32, i32
  }
  func.func @transform_6(%arg0: i32) -> (i32, i32) {
    %c0_i32 = arith.constant 0 : i32
    %c0_i32_0 = arith.constant 0 : i32
    %c0_i32_1 = arith.constant 0 : i32
    return %c0_i32, %c0_i32_0 : i32, i32
  }
  func.func @transform_7(%arg0: i32) -> (i32, i32) {
    %c0_i32 = arith.constant 0 : i32
    %c0_i32_0 = arith.constant 0 : i32
    %c0_i32_1 = arith.constant 0 : i32
    return %c0_i32, %c0_i32_0 : i32, i32
  }
  func.func @transform_8(%arg0: i32) -> (i32, i32) {
    %c0_i32 = arith.constant 0 : i32
    %c0_i32_0 = arith.constant 0 : i32
    %c0_i32_1 = arith.constant 0 : i32
    return %c0_i32, %c0_i32_0 : i32, i32
  }
  func.func @transform_9(%arg0: i32) -> (i32, i32) {
    %c0_i32 = arith.constant 0 : i32
    %c0_i32_0 = arith.constant 0 : i32
    %c0_i32_1 = arith.constant 0 : i32
    return %c0_i32, %c0_i32_0 : i32, i32
  }
  func.func @transform_10(%arg0: i32) -> (i32, i32) {
    %c0_i32 = arith.constant 0 : i32
    %c0_i32_0 = arith.constant 0 : i32
    %c0_i32_1 = arith.constant 0 : i32
    return %c0_i32, %c0_i32_0 : i32, i32
  }
  func.func @transform_11(%arg0: i32) -> (i32, i32) {
    %c0_i32 = arith.constant 0 : i32
    %c0_i32_0 = arith.constant 0 : i32
    %c0_i32_1 = arith.constant 0 : i32
    return %c0_i32, %c0_i32_0 : i32, i32
  }
  func.func @transform_12(%arg0: i32) -> (i32, i32) {
    %c0_i32 = arith.constant 0 : i32
    %c0_i32_0 = arith.constant 0 : i32
    %c0_i32_1 = arith.constant 0 : i32
    return %c0_i32, %c0_i32_0 : i32, i32
  }
  func.func @transform_13(%arg0: i32) -> (i32, i32) {
    %c0_i32 = arith.constant 0 : i32
    %c0_i32_0 = arith.constant 0 : i32
    %c0_i32_1 = arith.constant 0 : i32
    return %c0_i32, %c0_i32_0 : i32, i32
  }
  func.func @transform_14(%arg0: i32) -> (i32, i32) {
    %c0_i32 = arith.constant 0 : i32
    %c0_i32_0 = arith.constant 0 : i32
    return %arg0, %c0_i32 : i32, i32
  }
  func.func @transform_15(%arg0: i32) -> (i32, i32) {
    %c0_i32 = arith.constant 0 : i32
    %c0_i32_0 = arith.constant 0 : i32
    return %arg0, %c0_i32 : i32, i32
  }
}

</mosaic_0001>

<bundles_post_ra>
// kernel: vae_forward.1
= control target key start
LH: loop header
LB: loop body
LE: loop exit
PB: predicated region body
PF: predicated region fallthrough
CT: control target
= control target key end

     0   :  { %21 = vsyncpa [#allocation3], 0  ;;  %s10794_s0 = inlined_call_operand.vmem [shape: f32[8,784], index: 0, kind: input, shape index: {}]   ;;  %s10795_s1 = inlined_call_operand.vmem [shape: f32[8,128], index: 1, kind: input, shape index: {}]   ;;  %s10796_s2 = inlined_call_operand.vmem [shape: bf16[784,512], index: 2, kind: input, shape index: {}]   ;;  %s10797_s3 = inlined_call_operand.vmem [shape: f32[1,512], index: 3, kind: input, shape index: {}]   ;;  %s10798_s4 = inlined_call_operand.vmem [shape: bf16[512,512], index: 4, kind: input, shape index: {}]   ;;  %s10799_s5 = inlined_call_operand.vmem [shape: f32[1,512], index: 5, kind: input, shape index: {}]   ;;  %s10800_s6 = inlined_call_operand.vmem [shape: bf16[512,256], index: 6, kind: input, shape index: {}]   ;;  %s10801_s7 = inlined_call_operand.vmem [shape: f32[1,256], index: 7, kind: input, shape index: {}]   ;;  %s10802_s8 = inlined_call_operand.hbm [shape: bf16[128,512], index: 8, kind: input, shape index: {}]   ;;  %s10803_s9 = inlined_call_operand.vmem [shape: f32[1,512], index: 9, kind: input, shape index: {}]   ;;  %s10804_s10 = inlined_call_operand.vmem [shape: bf16[512,512], index: 10, kind: input, shape index: {}]   ;;  %s10805_s11 = inlined_call_operand.vmem [shape: f32[1,512], index: 11, kind: input, shape index: {}]   ;;  %s10806_s12 = inlined_call_operand.vmem [shape: bf16[512,784], index: 12, kind: input, shape index: {}]   ;;  %s10807_s13 = inlined_call_operand.vmem [shape: f32[1,784], index: 13, kind: input, shape index: {}]   ;;  %s10808_s14 = inlined_call_operand.hbm [shape: f32[8,784], index: 14, kind: output, shape index: {0}]   ;;  %s10809_s15 = inlined_call_operand.vmem [shape: f32[8,256], index: 15, kind: output, shape index: {1}]  }
   0x1   :  { %22 = vsyncpa [#allocation4], 0  ;;  %s8294_s18 = smov [#allocation2]  }
   0x2   :  { %s44_s19 = sshll.u32 %s8294_s18, 4  ;;  %s45_s19 = int_to_ptr.vmem [resolvable:$true] %s44_s19 }
   0x3   :  { %s8258_s20 = scalar_lea.vmem %s45_s19, 4096  ;;  %p8263_p1 = scmp.lt.s32.totalorder %s45_s19, %s45_s19 }
   0x4   :  { %p8259_p0 = scmp.ne.s32.totalorder %s45_s19, %s8258_s20  ;;  %p8264_p2 = scmp.lt.s32.totalorder %s8258_s20, %s8258_s20 }
   0x6   :  { %p8265_p3 = por %p8264_p2, %p8263_p1 }
   0x8   :  { %p8266_p4 = pnand %p8265_p3, %p8259_p0 }
   0xa   :  { %8269 = shalt.err (!%p8266_p4)
}
   0xb   :  { %s8295_s21 = smov 256   ;;  %s8296_s22 = smov 16  }
   0xc   :  { %50 = dma.hbm_to_vmem [thread:$0]  %s10802_s8, 4096, %s45_s19, [#allocation3], %s8295_s21, %s8295_s21, %s8296_s22  }
   0xd   :  { %8290 = dma.done.wait [#allocation3], 4096  }
   0xe   :  { %8291 = vsyncadd [#allocation3], 4294963200  ;;  %v7060_v0 = vld [vmem:[%s10796_s2 + $0xe4] ss:$16 sps:$4 sm:$0xff]   ;;  %v7064_v2 = vld [vmem:[%s10796_s2 + $0xe0] ss:$16 sps:$4 sm:$0xff]  }
   0xf   :  { %v7062_v1 = vld [vmem:[%s10796_s2 + $0x2e4] ss:$16 sps:$4 sm:$0xff]   ;;  %1281 = vmatprep.subr.bf16.mxu0 %v7060_v0  ;;  %v7065_v3 = vld [vmem:[%s10796_s2 + $0x2e0] ss:$16 sps:$4 sm:$0xff]   ;;  %v66_v46 = vld [vmem:[%s10794_s0 + $0x8] sm:$0xff]  ;;  %vm1277_vm0 = vcmask 130048  }
  0x10   :  { %1322 = vmatprep.subr.bf16.mxu1 %v7062_v1  ;;  %v7066_v4 = vld [vmem:[%s10796_s2 + $0xc4] ss:$16 sps:$4 sm:$0xff]   ;;  %1282 = vmatpush1.bf16.msra.mxu0 %v7064_v2  ;;  %v7070_v6 = vld [vmem:[%s10796_s2 + $0xc0] ss:$16 sps:$4 sm:$0xff]   ;;  %v8529_v49 = vpack.c.bf16 %v66_v46, %v66_v46  ;;  %v68_v50 = vld [vmem:[%s10794_s0 + $0x18] sm:$0xff] }
  0x11   :  { %1323 = vmatpush1.bf16.msra.mxu1 %v7065_v3  ;;  %v7068_v5 = vld [vmem:[%s10796_s2 + $0x2c4] ss:$16 sps:$4 sm:$0xff]   ;;  %1283 = vmatprep.subr.bf16.mxu0 %v7066_v4  ;;  %v7071_v7 = vld [vmem:[%s10796_s2 + $0x2c0] ss:$16 sps:$4 sm:$0xff]   ;;  %v8537_v52 = vpack.c.bf16 %v68_v50, %v68_v50 }
  0x12   :  { %1324 = vmatprep.subr.bf16.mxu1 %v7068_v5  ;;  %v7072_v8 = vld [vmem:[%s10796_s2 + $0xa4] ss:$16 sps:$4 sm:$0xff]   ;;  %v7076_v10 = vld [vmem:[%s10796_s2 + $0xa0] ss:$16 sps:$4 sm:$0xff]   ;;  %1313 = vmatprep.mubr.bf16.mxu0 %v8529_v49 }
  0x13   :  { %v7074_v9 = vld [vmem:[%s10796_s2 + $0x2a4] ss:$16 sps:$4 sm:$0xff]   ;;  %v7077_v11 = vld [vmem:[%s10796_s2 + $0x2a0] ss:$16 sps:$4 sm:$0xff]   ;;  %1354 = vmatprep.mubr.bf16.mxu1 %v8537_v52 }
  0x14   :  { %1284 = vmatpush1.bf16.msra.mxu0 %v7070_v6  ;;  %v7078_v12 = vld [vmem:[%s10796_s2 + $0x84] ss:$16 sps:$4 sm:$0xff]   ;;  %v7082_v14 = vld [vmem:[%s10796_s2 + $0x80] ss:$16 sps:$4 sm:$0xff]  }
  0x15   :  { %1325 = vmatpush1.bf16.msra.mxu1 %v7071_v7  ;;  %1285 = vmatprep.subr.bf16.mxu0 %v7072_v8  ;;  %v7080_v13 = vld [vmem:[%s10796_s2 + $0x284] ss:$16 sps:$4 sm:$0xff]   ;;  %v7083_v15 = vld [vmem:[%s10796_s2 + $0x280] ss:$16 sps:$4 sm:$0xff]  }
  0x16   :  { %1326 = vmatprep.subr.bf16.mxu1 %v7074_v9  ;;  %v7084_v16 = vld [vmem:[%s10796_s2 + $0x64] ss:$16 sps:$4 sm:$0xff]   ;;  %v7088_v18 = vld [vmem:[%s10796_s2 + $0x60] ss:$16 sps:$4 sm:$0xff]  }
  0x17   :  { %v7086_v17 = vld [vmem:[%s10796_s2 + $0x264] ss:$16 sps:$4 sm:$0xff]   ;;  %v7089_v19 = vld [vmem:[%s10796_s2 + $0x260] ss:$16 sps:$4 sm:$0xff]  }
  0x18   :  { %1286 = vmatpush1.bf16.msra.mxu0 %v7076_v10  ;;  %v7090_v20 = vld [vmem:[%s10796_s2 + $0x44] ss:$16 sps:$4 sm:$0xff]   ;;  %v7094_v22 = vld [vmem:[%s10796_s2 + $0x40] ss:$16 sps:$4 sm:$0xff]  }
  0x19   :  { %1327 = vmatpush1.bf16.msra.mxu1 %v7077_v11  ;;  %1287 = vmatprep.subr.bf16.mxu0 %v7078_v12  ;;  %v7092_v21 = vld [vmem:[%s10796_s2 + $0x244] ss:$16 sps:$4 sm:$0xff]   ;;  %v7095_v23 = vld [vmem:[%s10796_s2 + $0x240] ss:$16 sps:$4 sm:$0xff]  }
  0x1a   :  { %1328 = vmatprep.subr.bf16.mxu1 %v7080_v13  ;;  %v7096_v24 = vld [vmem:[%s10796_s2 + $0x24] ss:$16 sps:$4 sm:$0xff]   ;;  %v7100_v26 = vld [vmem:[%s10796_s2 + $0x20] ss:$16 sps:$4 sm:$0xff]   ;;  %v7167_v13 = vld [vmem:[%s10796_s2 + $0xec] ss:$16 sps:$4 sm:$0xff]  }
  0x1b   :  { %v7098_v25 = vld [vmem:[%s10796_s2 + $0x224] ss:$16 sps:$4 sm:$0xff]   ;;  %v7101_v27 = vld [vmem:[%s10796_s2 + $0x220] ss:$16 sps:$4 sm:$0xff]  }
  0x1c   :  { %1288 = vmatpush1.bf16.msra.mxu0 %v7082_v14  ;;  %v7102_v28 = vld [vmem:[%s10796_s2 + $0x4] ss:$16 sps:$4 sm:$0xff]   ;;  %v7106_v30 = vld [vmem:[%s10796_s2] ss:$16 sps:$4 sm:$0xff]  }
  0x1d   :  { %1329 = vmatpush1.bf16.msra.mxu1 %v7083_v15  ;;  %1289 = vmatprep.subr.bf16.mxu0 %v7084_v16  ;;  %v7104_v29 = vld [vmem:[%s10796_s2 + $0x204] ss:$16 sps:$4 sm:$0xff]   ;;  %v7107_v31 = vld [vmem:[%s10796_s2 + $0x200] ss:$16 sps:$4 sm:$0xff]   ;;  %v8297_v16 = vmov 0  }
  0x1e   :  { %1330 = vmatprep.subr.bf16.mxu1 %v7086_v17  ;;  %v7108_v32 = vld [vmem:[%s10796_s2 + $0x1e4] ss:$16 sps:$4 sm:$0xff]   ;;  %v7112_v34 = vld [vmem:[%s10796_s2 + $0x1e0] ss:$16 sps:$4 sm:$0xff]  }
  0x1f   :  { %v7110_v33 = vld [vmem:[%s10796_s2 + $0x3e4] ss:$16 sps:$4 sm:$0xff]   ;;  %v7113_v35 = vld [vmem:[%s10796_s2 + $0x3e0] ss:$16 sps:$4 sm:$0xff]  }
  0x20   :  { %1290 = vmatpush1.bf16.msra.mxu0 %v7088_v18  ;;  %v7114_v36 = vld [vmem:[%s10796_s2 + $0x1c4] ss:$16 sps:$4 sm:$0xff]   ;;  %v7118_v38 = vld [vmem:[%s10796_s2 + $0x1c0] ss:$16 sps:$4 sm:$0xff]   ;;  %v7165_v18 = vld [vmem:[%s10796_s2 + $0xe8] ss:$16 sps:$4 sm:$0xff]  }
  0x21   :  { %1331 = vmatpush1.bf16.msra.mxu1 %v7089_v19  ;;  %1291 = vmatprep.subr.bf16.mxu0 %v7090_v20  ;;  %v7116_v37 = vld [vmem:[%s10796_s2 + $0x3c4] ss:$16 sps:$4 sm:$0xff]   ;;  %v7119_v39 = vld [vmem:[%s10796_s2 + $0x3c0] ss:$16 sps:$4 sm:$0xff]  }
  0x22   :  { %1332 = vmatprep.subr.bf16.mxu1 %v7092_v21  ;;  %v7120_v40 = vld [vmem:[%s10796_s2 + $0x1a4] ss:$16 sps:$4 sm:$0xff]   ;;  %v7124_v42 = vld [vmem:[%s10796_s2 + $0x1a0] ss:$16 sps:$4 sm:$0xff]   ;;  %v7173_v21 = vld [vmem:[%s10796_s2 + $0xcc] ss:$16 sps:$4 sm:$0xff]  }
  0x23   :  { %v7122_v41 = vld [vmem:[%s10796_s2 + $0x3a4] ss:$16 sps:$4 sm:$0xff]   ;;  %v7125_v43 = vld [vmem:[%s10796_s2 + $0x3a0] ss:$16 sps:$4 sm:$0xff]  }
  0x24   :  { %1292 = vmatpush1.bf16.msra.mxu0 %v7094_v22  ;;  %v7126_v44 = vld [vmem:[%s10796_s2 + $0x184] ss:$16 sps:$4 sm:$0xff]   ;;  %v7130_v47 = vld [vmem:[%s10796_s2 + $0x180] ss:$16 sps:$4 sm:$0xff]  }
  0x25   :  { %1333 = vmatpush1.bf16.msra.mxu1 %v7095_v23  ;;  %1293 = vmatprep.subr.bf16.mxu0 %v7096_v24  ;;  %v7128_v45 = vld [vmem:[%s10796_s2 + $0x384] ss:$16 sps:$4 sm:$0xff]   ;;  %v7131_v48 = vld [vmem:[%s10796_s2 + $0x380] ss:$16 sps:$4 sm:$0xff]   ;;  %v7171_v23 = vld [vmem:[%s10796_s2 + $0xc8] ss:$16 sps:$4 sm:$0xff]  }
  0x26   :  { %1334 = vmatprep.subr.bf16.mxu1 %v7098_v25  ;;  %v7132_v51 = vld [vmem:[%s10796_s2 + $0x164] ss:$16 sps:$4 sm:$0xff]   ;;  %v7136_v54 = vld [vmem:[%s10796_s2 + $0x160] ss:$16 sps:$4 sm:$0xff]   ;;  %v7179_v25 = vld [vmem:[%s10796_s2 + $0xac] ss:$16 sps:$4 sm:$0xff]  }
  0x27   :  { %v7134_v53 = vld [vmem:[%s10796_s2 + $0x364] ss:$16 sps:$4 sm:$0xff]   ;;  %v7137_v55 = vld [vmem:[%s10796_s2 + $0x360] ss:$16 sps:$4 sm:$0xff]  }
  0x28   :  { %1294 = vmatpush1.bf16.msra.mxu0 %v7100_v26  ;;  %v7138_v56 = vld [vmem:[%s10796_s2 + $0x144] ss:$16 sps:$4 sm:$0xff]   ;;  %v7142_v58 = vld [vmem:[%s10796_s2 + $0x140] ss:$16 sps:$4 sm:$0xff]  }
  0x29   :  { %1335 = vmatpush1.bf16.msra.mxu1 %v7101_v27  ;;  %1295 = vmatprep.subr.bf16.mxu0 %v7102_v28  ;;  %v7140_v57 = vld [vmem:[%s10796_s2 + $0x344] ss:$16 sps:$4 sm:$0xff]   ;;  %v7143_v59 = vld [vmem:[%s10796_s2 + $0x340] ss:$16 sps:$4 sm:$0xff]   ;;  %v7177_v27 = vld [vmem:[%s10796_s2 + $0xa8] ss:$16 sps:$4 sm:$0xff]  }
  0x2a   :  { %1336 = vmatprep.subr.bf16.mxu1 %v7104_v29  ;;  %v7144_v60 = vld [vmem:[%s10796_s2 + $0x124] ss:$16 sps:$4 sm:$0xff]   ;;  %v7148_v62 = vld [vmem:[%s10796_s2 + $0x120] ss:$16 sps:$4 sm:$0xff]   ;;  %v7185_v29 = vld [vmem:[%s10796_s2 + $0x8c] ss:$16 sps:$4 sm:$0xff]  }
  0x2b   :  { %v7146_v61 = vld [vmem:[%s10796_s2 + $0x324] ss:$16 sps:$4 sm:$0xff]   ;;  %v7149_v63 = vld [vmem:[%s10796_s2 + $0x320] ss:$16 sps:$4 sm:$0xff]  }
  0x2c   :  { %1296 = vmatpush1.bf16.msra.mxu0 %v7106_v30  ;;  %v7150_v0 = vld [vmem:[%s10796_s2 + $0x104] ss:$16 sps:$4 sm:$0xff]   ;;  %v7154_v2 = vld [vmem:[%s10796_s2 + $0x100] ss:$16 sps:$4 sm:$0xff]  }
  0x2d   :  { %1337 = vmatpush1.bf16.msra.mxu1 %v7107_v31  ;;  %1297 = vmatprep.subr.bf16.mxu0 %v7108_v32  ;;  %v7152_v1 = vld [vmem:[%s10796_s2 + $0x304] ss:$16 sps:$4 sm:$0xff]   ;;  %v7155_v3 = vld [vmem:[%s10796_s2 + $0x300] ss:$16 sps:$4 sm:$0xff]   ;;  %v7183_v31 = vld [vmem:[%s10796_s2 + $0x88] ss:$16 sps:$4 sm:$0xff]  }
  0x2e   :  { %1338 = vmatprep.subr.bf16.mxu1 %v7110_v33  ;;  %v65_v4 = vld [vmem:[%s10794_s0] sm:$0xff]  ;;  %v67_v5 = vld [vmem:[%s10794_s0 + $0x10] sm:$0xff]  ;;  %v7191_v33 = vld [vmem:[%s10796_s2 + $0x6c] ss:$16 sps:$4 sm:$0xff]  }
  0x2f   :  { %v7158_v6 = vld [vmem:[%s10796_s2 + $0x4e4] ss:$16 sps:$4 sm:$0xff]   ;;  %v8598_v8 = vpack.c.bf16 %v65_v4, %v65_v4  ;;  %v8600_v9 = vpack.c.bf16 %v67_v5, %v67_v5  ;;  %v7156_v10 = vld [vmem:[%s10796_s2 + $0x4e0] ss:$16 sps:$4 sm:$0xff]   ;;  %v7239_v4 = vld [vmem:[%s10796_s2 + $0x16c] ss:$16 sps:$4 sm:$0xff]  }
  0x30   :  { %1298 = vmatpush2.bf16.msra.mxu0 %v7112_v34  ;;  %v7161_v7 = vld [vmem:[%s10796_s2 + $0x604] ss:$16 sps:$4 sm:$0xff]   ;;  %v7159_v11 = vld [vmem:[%s10796_s2 + $0x600] ss:$16 sps:$4 sm:$0xff]  }
  0x31   :  { %1339 = vmatpush2.bf16.msra.mxu1 %v7113_v35  ;;  %1299 = vmatprep.subr.bf16.mxu0 %v7114_v36  ;;  %v7164_v12 = vld [vmem:[%s10796_s2 + $0x4c4] ss:$16 sps:$4 sm:$0xff]   ;;  %v7162_v14 = vld [vmem:[%s10796_s2 + $0x4c0] ss:$16 sps:$4 sm:$0xff]   ;;  %v70_v35 = vld [vmem:[%s10794_s0 + $0x28] sm:$0xff] }
  0x32   :  { %1340 = vmatprep.subr.bf16.mxu1 %v7116_v37  ;;  %v71_v15 = vld [vmem:[%s10794_s0 + $0x30] sm:$0xff]  ;;  %v8682_v36 = vpack.c.bf16 %v70_v35, %v70_v35  ;;  %v7189_v37 = vld [vmem:[%s10796_s2 + $0x68] ss:$16 sps:$4 sm:$0xff]  }
  0x33   :  { %v7170_v17 = vld [vmem:[%s10796_s2 + $0x4a4] ss:$16 sps:$4 sm:$0xff]   ;;  %v8629_v19 = vpack.c.bf16 %v71_v15, %v71_v15  ;;  %v7168_v20 = vld [vmem:[%s10796_s2 + $0x4a0] ss:$16 sps:$4 sm:$0xff]   ;;  %v7273_v35 = vld [vmem:[%s10796_s2 + $0x4a8] ss:$16 sps:$4 sm:$0xff]  }
  0x34   :  { %1300 = vmatpush2.bf16.msra.mxu0 %v7118_v38  ;;  %v7176_v22 = vld [vmem:[%s10796_s2 + $0x484] ss:$16 sps:$4 sm:$0xff]   ;;  %v7174_v24 = vld [vmem:[%s10796_s2 + $0x480] ss:$16 sps:$4 sm:$0xff]  }
  0x35   :  { %1341 = vmatpush2.bf16.msra.mxu1 %v7119_v39  ;;  %1301 = vmatprep.subr.bf16.mxu0 %v7120_v40  ;;  %v7182_v26 = vld [vmem:[%s10796_s2 + $0x464] ss:$16 sps:$4 sm:$0xff]   ;;  %v7180_v28 = vld [vmem:[%s10796_s2 + $0x460] ss:$16 sps:$4 sm:$0xff]   ;;  %v7197_v39 = vld [vmem:[%s10796_s2 + $0x4c] ss:$16 sps:$4 sm:$0xff]  }
  0x36   :  { %1342 = vmatprep.subr.bf16.mxu1 %v7122_v41  ;;  %v7188_v30 = vld [vmem:[%s10796_s2 + $0x444] ss:$16 sps:$4 sm:$0xff]   ;;  %v7186_v32 = vld [vmem:[%s10796_s2 + $0x440] ss:$16 sps:$4 sm:$0xff]   ;;  %v7195_v41 = vld [vmem:[%s10796_s2 + $0x48] ss:$16 sps:$4 sm:$0xff]  }
  0x37   :  { %v7194_v34 = vld [vmem:[%s10796_s2 + $0x424] ss:$16 sps:$4 sm:$0xff]   ;;  %v7192_v38 = vld [vmem:[%s10796_s2 + $0x420] ss:$16 sps:$4 sm:$0xff]  }
  0x38   :  { %1302 = vmatpush2.bf16.msra.mxu0 %v7124_v42  ;;  %v7200_v40 = vld [vmem:[%s10796_s2 + $0x404] ss:$16 sps:$4 sm:$0xff]   ;;  %v7198_v42 = vld [vmem:[%s10796_s2 + $0x400] ss:$16 sps:$4 sm:$0xff]  }
  0x39   :  { %1343 = vmatpush2.bf16.msra.mxu1 %v7125_v43  ;;  %1303 = vmatprep.subr.bf16.mxu0 %v7126_v44  ;;  %v7203_v43 = vld [vmem:[%s10796_s2 + $0x2c] ss:$16 sps:$4 sm:$0xff]   ;;  %v7206_v44 = vld [vmem:[%s10796_s2 + $0x5e4] ss:$16 sps:$4 sm:$0xff]   ;;  %v7204_v46 = vld [vmem:[%s10796_s2 + $0x5e0] ss:$16 sps:$4 sm:$0xff]  }
  0x3a   :  { %1344 = vmatprep.subr.bf16.mxu1 %v7128_v45  ;;  %v7201_v45 = vld [vmem:[%s10796_s2 + $0x28] ss:$16 sps:$4 sm:$0xff]   ;;  %v7210_v50 = vld [vmem:[%s10796_s2 + $0x5c0] ss:$16 sps:$4 sm:$0xff]   ;;  %v7242_v5 = vld [vmem:[%s10796_s2 + $0x524] ss:$16 sps:$4 sm:$0xff]  }
  0x3b   :  { %v69_v15 = vld [vmem:[%s10794_s0 + $0x20] sm:$0xff] }
  0x3c   :  { %1304 = vmatpush2.bf16.msra.mxu0 %v7130_v47  ;;  %v7209_v47 = vld [vmem:[%s10796_s2 + $0xc] ss:$16 sps:$4 sm:$0xff]  }
  0x3d   :  { %1345 = vmatpush2.bf16.msra.mxu1 %v7131_v48  ;;  %1305 = vmatprep.subr.bf16.mxu0 %v7132_v51  ;;  %v7212_v48 = vld [vmem:[%s10796_s2 + $0x5c4] ss:$16 sps:$4 sm:$0xff]   ;;  %v7215_v51 = vld [vmem:[%s10796_s2 + $0x1ec] ss:$16 sps:$4 sm:$0xff]  }
  0x3e   :  { %1346 = vmatprep.subr.bf16.mxu1 %v7134_v53  ;;  %v7218_v53 = vld [vmem:[%s10796_s2 + $0x5a4] ss:$16 sps:$4 sm:$0xff]  }
  0x40   :  { %1306 = vmatpush2.bf16.msra.mxu0 %v7136_v54  ;;  %v7213_v54 = vld [vmem:[%s10796_s2 + $0x1e8] ss:$16 sps:$4 sm:$0xff]  }
  0x41   :  { %1347 = vmatpush2.bf16.msra.mxu1 %v7137_v55  ;;  %1307 = vmatprep.subr.bf16.mxu0 %v7138_v56  ;;  %v7216_v55 = vld [vmem:[%s10796_s2 + $0x5a0] ss:$16 sps:$4 sm:$0xff]   ;;  %v7221_v56 = vld [vmem:[%s10796_s2 + $0x1cc] ss:$16 sps:$4 sm:$0xff]  }
  0x42   :  { %1348 = vmatprep.subr.bf16.mxu1 %v7140_v57  ;;  %v7224_v57 = vld [vmem:[%s10796_s2 + $0x584] ss:$16 sps:$4 sm:$0xff]  }
  0x44   :  { %1308 = vmatpush2.bf16.msra.mxu0 %v7142_v58  ;;  %v7219_v58 = vld [vmem:[%s10796_s2 + $0x1c8] ss:$16 sps:$4 sm:$0xff]  }
  0x45   :  { %1349 = vmatpush2.bf16.msra.mxu1 %v7143_v59  ;;  %1309 = vmatprep.subr.bf16.mxu0 %v7144_v60  ;;  %v7222_v59 = vld [vmem:[%s10796_s2 + $0x580] ss:$16 sps:$4 sm:$0xff]   ;;  %v7227_v60 = vld [vmem:[%s10796_s2 + $0x1ac] ss:$16 sps:$4 sm:$0xff]  }
  0x46   :  { %1350 = vmatprep.subr.bf16.mxu1 %v7146_v61  ;;  %v7230_v61 = vld [vmem:[%s10796_s2 + $0x564] ss:$16 sps:$4 sm:$0xff]  }
  0x48   :  { %1310 = vmatpush2.bf16.msra.mxu0 %v7148_v62  ;;  %v7225_v62 = vld [vmem:[%s10796_s2 + $0x1a8] ss:$16 sps:$4 sm:$0xff]  }
  0x49   :  { %1351 = vmatpush2.bf16.msra.mxu1 %v7149_v63  ;;  %1311 = vmatprep.subr.bf16.mxu0 %v7150_v0  ;;  %v7228_v63 = vld [vmem:[%s10796_s2 + $0x560] ss:$16 sps:$4 sm:$0xff]   ;;  %v7233_v0 = vld [vmem:[%s10796_s2 + $0x18c] ss:$16 sps:$4 sm:$0xff]  }
  0x4a   :  { %1352 = vmatprep.subr.bf16.mxu1 %v7152_v1  ;;  %v7236_v1 = vld [vmem:[%s10796_s2 + $0x544] ss:$16 sps:$4 sm:$0xff]  }
  0x4c   :  { %1312 = vmatpush2.bf16.msra.mxu0 %v7154_v2  ;;  %v7231_v2 = vld [vmem:[%s10796_s2 + $0x188] ss:$16 sps:$4 sm:$0xff]  }
  0x4d   :  { %1353 = vmatpush2.bf16.msra.mxu1 %v7155_v3  ;;  %1363 = vmatprep.subr.bf16.mxu0 %v7158_v6  ;;  %v7234_v3 = vld [vmem:[%s10796_s2 + $0x540] ss:$16 sps:$4 sm:$0xff]   ;;  %v7237_v6 = vld [vmem:[%s10796_s2 + $0x168] ss:$16 sps:$4 sm:$0xff]  }
  0x4e   :  { %1418 = vmatprep.subr.bf16.mxu1 %v7161_v7  ;;  %v7240_v7 = vld [vmem:[%s10796_s2 + $0x520] ss:$16 sps:$4 sm:$0xff]  }
  0x4f   :  { %1314 = vmatmul.mubr.bf16.vlgmr.msra.gmra.mxu0 %v8598_v8 }
  0x50   :  { %1355 = vmatmul.mubr.bf16.vlgmr.msra.gmra.mxu1 %v8600_v9  ;;  %1364 = vmatpush1.bf16.msra.mxu0 %v7156_v10  ;;  %v7245_v10 = vld [vmem:[%s10796_s2 + $0x14c] ss:$16 sps:$4 sm:$0xff]  }
  0x51   :  { %1419 = vmatpush1.bf16.msra.mxu1 %v7159_v11  ;;  %1365 = vmatprep.subr.bf16.mxu0 %v7164_v12  ;;  %v7248_v11 = vld [vmem:[%s10796_s2 + $0x504] ss:$16 sps:$4 sm:$0xff]   ;;  %v7243_v12 = vld [vmem:[%s10796_s2 + $0x148] ss:$16 sps:$4 sm:$0xff]  }
  0x52   :  { %1436 = vmatprep.mubr.bf16.mxu1 %v8297_v16  ;;  %1445 = vmatprep.subr.bf16.mxu1 %v7167_v13  ;;  %v7246_v13 = vld [vmem:[%s10796_s2 + $0x500] ss:$16 sps:$4 sm:$0xff]  }
  0x53   :  { %1395 = vmatprep.mubr.bf16.mxu0 %v8682_v36 }
  0x54   :  { %1366 = vmatpush1.bf16.msra.mxu0 %v7162_v14  ;;  %v7251_v14 = vld [vmem:[%s10796_s2 + $0x12c] ss:$16 sps:$4 sm:$0xff]  }
  0x55   :  { %1367 = vmatprep.subr.bf16.mxu0 %v7170_v17  ;;  %v7254_v17 = vld [vmem:[%s10796_s2 + $0x2ec] ss:$16 sps:$4 sm:$0xff]  }
  0x58   :  { %6417 = vmatmul.mubr.msk.bf16.vlgmr.msra.gmra.mxu1 %vm1277_vm0, %v8629_v19  ;;  %1368 = vmatpush1.bf16.msra.mxu0 %v7168_v20  ;;  %v8811_v20 = vpack.c.bf16 %v69_v15, %v69_v15  ;;  %v7341_v15 = vld [vmem:[%s10796_s2 + $0x54c] ss:$16 sps:$4 sm:$0xff]  }
  0x59   :  { %1446 = vmatpush1.bf16.msra.mxu1 %v7165_v18  ;;  %1369 = vmatprep.subr.bf16.mxu0 %v7176_v22  ;;  %v7249_v18 = vld [vmem:[%s10796_s2 + $0x128] ss:$16 sps:$4 sm:$0xff]   ;;  %v7257_v22 = vld [vmem:[%s10796_s2 + $0x10c] ss:$16 sps:$4 sm:$0xff]  }
  0x5a   :  { %1447 = vmatprep.subr.bf16.mxu1 %v7173_v21  ;;  %1477 = vmatprep.mubr.bf16.mxu1 %v8529_v49  ;;  %v7207_v49 = vld [vmem:[%s10796_s2 + $0x8] ss:$16 sps:$4 sm:$0xff]  }
  0x5b   :  { %v7252_v21 = vld [vmem:[%s10796_s2 + $0x2e8] ss:$16 sps:$4 sm:$0xff]  }
  0x5c   :  { %1370 = vmatpush1.bf16.msra.mxu0 %v7174_v24  ;;  %v7255_v24 = vld [vmem:[%s10796_s2 + $0x108] ss:$16 sps:$4 sm:$0xff]  }
  0x5d   :  { %1448 = vmatpush1.bf16.msra.mxu1 %v7171_v23  ;;  %1371 = vmatprep.subr.bf16.mxu0 %v7182_v26  ;;  %v7260_v23 = vld [vmem:[%s10796_s2 + $0x2cc] ss:$16 sps:$4 sm:$0xff]  }
  0x5e   :  { %1449 = vmatprep.subr.bf16.mxu1 %v7179_v25  ;;  %v7258_v25 = vld [vmem:[%s10796_s2 + $0x2c8] ss:$16 sps:$4 sm:$0xff]   ;;  %v7263_v26 = vld [vmem:[%s10796_s2 + $0x4ec] ss:$16 sps:$4 sm:$0xff]  }
  0x60   :  { %1372 = vmatpush1.bf16.msra.mxu0 %v7180_v28  ;;  %v7261_v28 = vld [vmem:[%s10796_s2 + $0x4e8] ss:$16 sps:$4 sm:$0xff]  }
  0x61   :  { %1450 = vmatpush1.bf16.msra.mxu1 %v7177_v27  ;;  %1373 = vmatprep.subr.bf16.mxu0 %v7188_v30  ;;  %v7266_v27 = vld [vmem:[%s10796_s2 + $0x2ac] ss:$16 sps:$4 sm:$0xff]  }
  0x62   :  { %1451 = vmatprep.subr.bf16.mxu1 %v7185_v29  ;;  %v7264_v29 = vld [vmem:[%s10796_s2 + $0x2a8] ss:$16 sps:$4 sm:$0xff]   ;;  %v7269_v30 = vld [vmem:[%s10796_s2 + $0x4cc] ss:$16 sps:$4 sm:$0xff]  }
  0x64   :  { %1374 = vmatpush1.bf16.msra.mxu0 %v7186_v32  ;;  %v7267_v32 = vld [vmem:[%s10796_s2 + $0x4c8] ss:$16 sps:$4 sm:$0xff]  }
  0x65   :  { %1452 = vmatpush1.bf16.msra.mxu1 %v7183_v31  ;;  %1375 = vmatprep.subr.bf16.mxu0 %v7194_v34  ;;  %v7272_v31 = vld [vmem:[%s10796_s2 + $0x28c] ss:$16 sps:$4 sm:$0xff]  }
  0x66   :  { %1453 = vmatprep.subr.bf16.mxu1 %v7191_v33  ;;  %v7275_v33 = vld [vmem:[%s10796_s2 + $0x4ac] ss:$16 sps:$4 sm:$0xff]  }
  0x67   :  { %v7278_v34 = vld [vmem:[%s10796_s2 + $0x26c] ss:$16 sps:$4 sm:$0xff]  }
  0x68   :  { %1376 = vmatpush1.bf16.msra.mxu0 %v7192_v38  ;;  %v7284_v38 = vld [vmem:[%s10796_s2 + $0x24c] ss:$16 sps:$4 sm:$0xff]  }
  0x69   :  { %1454 = vmatpush1.bf16.msra.mxu1 %v7189_v37  ;;  %1377 = vmatprep.subr.bf16.mxu0 %v7200_v40  ;;  %v7281_v37 = vld [vmem:[%s10796_s2 + $0x48c] ss:$16 sps:$4 sm:$0xff]  }
  0x6a   :  { %1455 = vmatprep.subr.bf16.mxu1 %v7197_v39  ;;  %v7279_v39 = vld [vmem:[%s10796_s2 + $0x488] ss:$16 sps:$4 sm:$0xff]   ;;  %v7287_v40 = vld [vmem:[%s10796_s2 + $0x46c] ss:$16 sps:$4 sm:$0xff]  }
  0x6c   :  { %1378 = vmatpush1.bf16.msra.mxu0 %v7198_v42  ;;  %v7285_v42 = vld [vmem:[%s10796_s2 + $0x468] ss:$16 sps:$4 sm:$0xff]  }
  0x6d   :  { %1456 = vmatpush1.bf16.msra.mxu1 %v7195_v41  ;;  %1379 = vmatprep.subr.bf16.mxu0 %v7206_v44  ;;  %v7290_v41 = vld [vmem:[%s10796_s2 + $0x22c] ss:$16 sps:$4 sm:$0xff]  }
  0x6e   :  { %1457 = vmatprep.subr.bf16.mxu1 %v7203_v43  ;;  %v7288_v43 = vld [vmem:[%s10796_s2 + $0x228] ss:$16 sps:$4 sm:$0xff]   ;;  %v7293_v44 = vld [vmem:[%s10796_s2 + $0x44c] ss:$16 sps:$4 sm:$0xff]  }
  0x70   :  { %1380 = vmatpush2.bf16.msra.mxu0 %v7204_v46  ;;  %v7291_v46 = vld [vmem:[%s10796_s2 + $0x448] ss:$16 sps:$4 sm:$0xff]  }
  0x71   :  { %1458 = vmatpush1.bf16.msra.mxu1 %v7201_v45  ;;  %1381 = vmatprep.subr.bf16.mxu0 %v7212_v48  ;;  %v7296_v45 = vld [vmem:[%s10796_s2 + $0x20c] ss:$16 sps:$4 sm:$0xff]  }
  0x72   :  { %1459 = vmatprep.subr.bf16.mxu1 %v7209_v47  ;;  %v7294_v47 = vld [vmem:[%s10796_s2 + $0x208] ss:$16 sps:$4 sm:$0xff]   ;;  %v7299_v48 = vld [vmem:[%s10796_s2 + $0x42c] ss:$16 sps:$4 sm:$0xff]  }
  0x74   :  { %1382 = vmatpush2.bf16.msra.mxu0 %v7210_v50  ;;  %v7297_v50 = vld [vmem:[%s10796_s2 + $0x428] ss:$16 sps:$4 sm:$0xff]  }
  0x75   :  { %1460 = vmatpush1.bf16.msra.mxu1 %v7207_v49  ;;  %1383 = vmatprep.subr.bf16.mxu0 %v7218_v53  ;;  %v7302_v49 = vld [vmem:[%s10796_s2 + $0x3ec] ss:$16 sps:$4 sm:$0xff]  }
  0x76   :  { %1461 = vmatprep.subr.bf16.mxu1 %v7215_v51  ;;  %v7300_v51 = vld [vmem:[%s10796_s2 + $0x3e8] ss:$16 sps:$4 sm:$0xff]   ;;  %v7305_v53 = vld [vmem:[%s10796_s2 + $0x40c] ss:$16 sps:$4 sm:$0xff]  }
  0x78   :  { %1384 = vmatpush2.bf16.msra.mxu0 %v7216_v55  ;;  %v7303_v55 = vld [vmem:[%s10796_s2 + $0x408] ss:$16 sps:$4 sm:$0xff]  }
  0x79   :  { %1462 = vmatpush2.bf16.msra.mxu1 %v7213_v54  ;;  %1385 = vmatprep.subr.bf16.mxu0 %v7224_v57  ;;  %v7308_v54 = vld [vmem:[%s10796_s2 + $0x3cc] ss:$16 sps:$4 sm:$0xff]  }
  0x7a   :  { %1463 = vmatprep.subr.bf16.mxu1 %v7221_v56  ;;  %v7306_v56 = vld [vmem:[%s10796_s2 + $0x3c8] ss:$16 sps:$4 sm:$0xff]   ;;  %v7311_v57 = vld [vmem:[%s10796_s2 + $0x5ec] ss:$16 sps:$4 sm:$0xff]  }
  0x7c   :  { %1386 = vmatpush2.bf16.msra.mxu0 %v7222_v59  ;;  %v7309_v59 = vld [vmem:[%s10796_s2 + $0x5e8] ss:$16 sps:$4 sm:$0xff]  }
  0x7d   :  { %1464 = vmatpush2.bf16.msra.mxu1 %v7219_v58  ;;  %1387 = vmatprep.subr.bf16.mxu0 %v7230_v61  ;;  %v7314_v58 = vld [vmem:[%s10796_s2 + $0x3ac] ss:$16 sps:$4 sm:$0xff]  }
  0x7e   :  { %1465 = vmatprep.subr.bf16.mxu1 %v7227_v60  ;;  %v7312_v60 = vld [vmem:[%s10796_s2 + $0x3a8] ss:$16 sps:$4 sm:$0xff]   ;;  %v7317_v61 = vld [vmem:[%s10796_s2 + $0x5cc] ss:$16 sps:$4 sm:$0xff]  }
  0x80   :  { %1388 = vmatpush2.bf16.msra.mxu0 %v7228_v63  ;;  %v7315_v63 = vld [vmem:[%s10796_s2 + $0x5c8] ss:$16 sps:$4 sm:$0xff]  }
  0x81   :  { %1466 = vmatpush2.bf16.msra.mxu1 %v7225_v62  ;;  %1389 = vmatprep.subr.bf16.mxu0 %v7236_v1  ;;  %v7320_v62 = vld [vmem:[%s10796_s2 + $0x38c] ss:$16 sps:$4 sm:$0xff]  }
  0x82   :  { %1467 = vmatprep.subr.bf16.mxu1 %v7233_v0  ;;  %v7318_v0 = vld [vmem:[%s10796_s2 + $0x388] ss:$16 sps:$4 sm:$0xff]   ;;  %v7323_v1 = vld [vmem:[%s10796_s2 + $0x5ac] ss:$16 sps:$4 sm:$0xff]  }
  0x84   :  { %1390 = vmatpush2.bf16.msra.mxu0 %v7234_v3  ;;  %v7321_v3 = vld [vmem:[%s10796_s2 + $0x5a8] ss:$16 sps:$4 sm:$0xff]  }
  0x85   :  { %1468 = vmatpush2.bf16.msra.mxu1 %v7231_v2  ;;  %1391 = vmatprep.subr.bf16.mxu0 %v7242_v5  ;;  %v7326_v2 = vld [vmem:[%s10796_s2 + $0x36c] ss:$16 sps:$4 sm:$0xff]  }
  0x86   :  { %1469 = vmatprep.subr.bf16.mxu1 %v7239_v4  ;;  %v7324_v4 = vld [vmem:[%s10796_s2 + $0x368] ss:$16 sps:$4 sm:$0xff]   ;;  %v7329_v5 = vld [vmem:[%s10796_s2 + $0x58c] ss:$16 sps:$4 sm:$0xff]  }
  0x88   :  { %1392 = vmatpush2.bf16.msra.mxu0 %v7240_v7  ;;  %v7327_v7 = vld [vmem:[%s10796_s2 + $0x588] ss:$16 sps:$4 sm:$0xff]  }
  0x89   :  { %1470 = vmatpush2.bf16.msra.mxu1 %v7237_v6  ;;  %1393 = vmatprep.subr.bf16.mxu0 %v7248_v11  ;;  %v7332_v6 = vld [vmem:[%s10796_s2 + $0x34c] ss:$16 sps:$4 sm:$0xff]  }
  0x8a   :  { %1471 = vmatprep.subr.bf16.mxu1 %v7245_v10  ;;  %v7330_v10 = vld [vmem:[%s10796_s2 + $0x348] ss:$16 sps:$4 sm:$0xff]   ;;  %v7335_v11 = vld [vmem:[%s10796_s2 + $0x56c] ss:$16 sps:$4 sm:$0xff]  }
  0x8c   :  { %1394 = vmatpush2.bf16.msra.mxu0 %v7246_v13  ;;  %v7333_v13 = vld [vmem:[%s10796_s2 + $0x568] ss:$16 sps:$4 sm:$0xff]  }
  0x8d   :  { %1472 = vmatpush2.bf16.msra.mxu1 %v7243_v12  ;;  %1486 = vmatprep.subr.bf16.mxu0 %v7254_v17  ;;  %v7338_v12 = vld [vmem:[%s10796_s2 + $0x32c] ss:$16 sps:$4 sm:$0xff]  }
  0x8e   :  { %1473 = vmatprep.subr.bf16.mxu1 %v7251_v14  ;;  %v7336_v14 = vld [vmem:[%s10796_s2 + $0x328] ss:$16 sps:$4 sm:$0xff]   ;;  %v7344_v17 = vld [vmem:[%s10796_s2 + $0x30c] ss:$16 sps:$4 sm:$0xff]  }
  0x8f   :  { %1396 = vmatmul.mubr.bf16.vlgmr.msra.gmra.mxu0 %v8811_v20 }
  0x90   :  { %1487 = vmatpush1.bf16.msra.mxu0 %v7252_v21  ;;  %1518 = vmatprep.mubr.bf16.mxu0 %v8537_v52  ;;  %v7270_v52 = vld [vmem:[%s10796_s2 + $0x288] ss:$16 sps:$4 sm:$0xff]  }
  0x91   :  { %1474 = vmatpush2.bf16.msra.mxu1 %v7249_v18  ;;  %1488 = vmatprep.subr.bf16.mxu0 %v7260_v23  ;;  %v7339_v18 = vld [vmem:[%s10796_s2 + $0x548] ss:$16 sps:$4 sm:$0xff]   ;;  %v7350_v23 = vld [vmem:[%s10796_s2 + $0x60c] ss:$16 sps:$4 sm:$0xff]  }
  0x92   :  { %1475 = vmatprep.subr.bf16.mxu1 %v7257_v22  ;;  %v7342_v21 = vld [vmem:[%s10796_s2 + $0x308] ss:$16 sps:$4 sm:$0xff]   ;;  %v7347_v22 = vld [vmem:[%s10796_s2 + $0x52c] ss:$16 sps:$4 sm:$0xff]  }
  0x94   :  { %1489 = vmatpush1.bf16.msra.mxu0 %v7258_v25  ;;  %v7348_v25 = vld [vmem:[%s10796_s2 + $0x608] ss:$16 sps:$4 sm:$0xff]  }
  0x95   :  { %1476 = vmatpush2.bf16.msra.mxu1 %v7255_v24  ;;  %1490 = vmatprep.subr.bf16.mxu0 %v7266_v27  ;;  %v7345_v24 = vld [vmem:[%s10796_s2 + $0x528] ss:$16 sps:$4 sm:$0xff]   ;;  %v7356_v27 = vld [vmem:[%s10798_s4 + $0xe4] ss:$16 sps:$4 sm:$0xff]  }
  0x96   :  { %1527 = vmatprep.subr.bf16.mxu1 %v7263_v26  ;;  %v7353_v26 = vld [vmem:[%s10796_s2 + $0x50c] ss:$16 sps:$4 sm:$0xff]  }
  0x98   :  { %1478 = vmatmul.mubr.bf16.vlgmr.msra.gmra.mxu1 %v8598_v8  ;;  %1491 = vmatpush1.bf16.msra.mxu0 %v7264_v29  ;;  %v7276_v8 = vld [vmem:[%s10796_s2 + $0x268] ss:$16 sps:$4 sm:$0xff]   ;;  %v7354_v29 = vld [vmem:[%s10798_s4 + $0xe0] ss:$16 sps:$4 sm:$0xff]  }
  0x99   :  { %1528 = vmatpush1.bf16.msra.mxu1 %v7261_v28  ;;  %1492 = vmatprep.subr.bf16.mxu0 %v7272_v31  ;;  %v7351_v28 = vld [vmem:[%s10796_s2 + $0x508] ss:$16 sps:$4 sm:$0xff]   ;;  %v7362_v31 = vld [vmem:[%s10798_s4 + $0xa4] ss:$16 sps:$4 sm:$0xff]  }
  0x9a   :  { %1529 = vmatprep.subr.bf16.mxu1 %v7269_v30  ;;  %1559 = vmatprep.mubr.bf16.mxu1 %v8682_v36  ;;  %v7282_v36 = vld [vmem:[%s10796_s2 + $0x248] ss:$16 sps:$4 sm:$0xff]   ;;  %v7359_v30 = vld [vmem:[%s10798_s4 + $0xc4] ss:$16 sps:$4 sm:$0xff]  }
  0x9c   :  { %1493 = vmatpush1.bf16.msra.mxu0 %v7270_v52  ;;  %v7365_v52 = vld [vmem:[%s10798_s4 + $0x84] ss:$16 sps:$4 sm:$0xff]  }
  0x9d   :  { %1530 = vmatpush1.bf16.msra.mxu1 %v7267_v32  ;;  %1494 = vmatprep.subr.bf16.mxu0 %v7278_v34  ;;  %v7360_v32 = vld [vmem:[%s10798_s4 + $0xa0] ss:$16 sps:$4 sm:$0xff]   ;;  %v7371_v34 = vld [vmem:[%s10798_s4 + $0x44] ss:$16 sps:$4 sm:$0xff]  }
  0x9e   :  { %1531 = vmatprep.subr.bf16.mxu1 %v7275_v33  ;;  %v7366_v33 = vld [vmem:[%s10798_s4 + $0x60] ss:$16 sps:$4 sm:$0xff]  }
  0xa0   :  { %1495 = vmatpush1.bf16.msra.mxu0 %v7276_v8  ;;  %v7374_v8 = vld [vmem:[%s10798_s4 + $0x24] ss:$16 sps:$4 sm:$0xff]  }
  0xa1   :  { %1532 = vmatpush1.bf16.msra.mxu1 %v7273_v35  ;;  %1496 = vmatprep.subr.bf16.mxu0 %v7284_v38  ;;  %v7369_v35 = vld [vmem:[%s10798_s4 + $0x40] ss:$16 sps:$4 sm:$0xff]   ;;  %v7377_v38 = vld [vmem:[%s10798_s4 + $0x4] ss:$16 sps:$4 sm:$0xff]  }
  0xa2   :  { %1533 = vmatprep.subr.bf16.mxu1 %v7281_v37  ;;  %v7372_v37 = vld [vmem:[%s10798_s4 + $0x20] ss:$16 sps:$4 sm:$0xff]  }
  0xa4   :  { %1497 = vmatpush1.bf16.msra.mxu0 %v7282_v36  ;;  %v7380_v36 = vld [vmem:[%s10798_s4 + $0x1e4] ss:$16 sps:$4 sm:$0xff]  }
  0xa5   :  { %1534 = vmatpush1.bf16.msra.mxu1 %v7279_v39  ;;  %1498 = vmatprep.subr.bf16.mxu0 %v7290_v41  ;;  %v7375_v39 = vld [vmem:[%s10798_s4] ss:$16 sps:$4 sm:$0xff]   ;;  %v7410_v41 = vld [vmem:[%s10798_s4 + $0x2e4] ss:$16 sps:$4 sm:$0xff]  }
  0xa6   :  { %1535 = vmatprep.subr.bf16.mxu1 %v7287_v40  ;;  %v7408_v40 = vld [vmem:[%s10798_s4 + $0x2e0] ss:$16 sps:$4 sm:$0xff]  }
  0xa8   :  { %1499 = vmatpush1.bf16.msra.mxu0 %v7288_v43  ;;  %v7383_v43 = vld [vmem:[%s10798_s4 + $0x1c4] ss:$16 sps:$4 sm:$0xff]  }
  0xa9   :  { %1536 = vmatpush1.bf16.msra.mxu1 %v7285_v42  ;;  %1500 = vmatprep.subr.bf16.mxu0 %v7296_v45  ;;  %v7378_v42 = vld [vmem:[%s10798_s4 + $0x1e0] ss:$16 sps:$4 sm:$0xff]   ;;  %v7416_v45 = vld [vmem:[%s10798_s4 + $0x2c4] ss:$16 sps:$4 sm:$0xff]  }
  0xaa   :  { %1537 = vmatprep.subr.bf16.mxu1 %v7293_v44  ;;  %v7414_v44 = vld [vmem:[%s10798_s4 + $0x2c0] ss:$16 sps:$4 sm:$0xff]  }
  0xac   :  { %1501 = vmatpush1.bf16.msra.mxu0 %v7294_v47  ;;  %v7386_v47 = vld [vmem:[%s10798_s4 + $0x1a4] ss:$16 sps:$4 sm:$0xff]  }
  0xad   :  { %1538 = vmatpush1.bf16.msra.mxu1 %v7291_v46  ;;  %1502 = vmatprep.subr.bf16.mxu0 %v7302_v49  ;;  %v7381_v46 = vld [vmem:[%s10798_s4 + $0x1c0] ss:$16 sps:$4 sm:$0xff]   ;;  %v7422_v49 = vld [vmem:[%s10798_s4 + $0x2a4] ss:$16 sps:$4 sm:$0xff]  }
  0xae   :  { %1539 = vmatprep.subr.bf16.mxu1 %v7299_v48  ;;  %v7420_v48 = vld [vmem:[%s10798_s4 + $0x2a0] ss:$16 sps:$4 sm:$0xff]  }
  0xb0   :  { %1503 = vmatpush2.bf16.msra.mxu0 %v7300_v51  ;;  %v7389_v51 = vld [vmem:[%s10798_s4 + $0x184] ss:$16 sps:$4 sm:$0xff]  }
  0xb1   :  { %1540 = vmatpush1.bf16.msra.mxu1 %v7297_v50  ;;  %1504 = vmatprep.subr.bf16.mxu0 %v7308_v54  ;;  %v7384_v50 = vld [vmem:[%s10798_s4 + $0x1a0] ss:$16 sps:$4 sm:$0xff]   ;;  %v7428_v54 = vld [vmem:[%s10798_s4 + $0x284] ss:$16 sps:$4 sm:$0xff]  }
  0xb2   :  { %1541 = vmatprep.subr.bf16.mxu1 %v7305_v53  ;;  %v7426_v53 = vld [vmem:[%s10798_s4 + $0x280] ss:$16 sps:$4 sm:$0xff]  }
  0xb4   :  { %1505 = vmatpush2.bf16.msra.mxu0 %v7306_v56  ;;  %v7392_v56 = vld [vmem:[%s10798_s4 + $0x164] ss:$16 sps:$4 sm:$0xff]  }
  0xb5   :  { %1542 = vmatpush1.bf16.msra.mxu1 %v7303_v55  ;;  %1506 = vmatprep.subr.bf16.mxu0 %v7314_v58  ;;  %v7387_v55 = vld [vmem:[%s10798_s4 + $0x180] ss:$16 sps:$4 sm:$0xff]   ;;  %v7434_v58 = vld [vmem:[%s10798_s4 + $0x264] ss:$16 sps:$4 sm:$0xff]  }
  0xb6   :  { %1543 = vmatprep.subr.bf16.mxu1 %v7311_v57  ;;  %v7432_v57 = vld [vmem:[%s10798_s4 + $0x260] ss:$16 sps:$4 sm:$0xff]  }
  0xb8   :  { %1507 = vmatpush2.bf16.msra.mxu0 %v7312_v60  ;;  %v7395_v60 = vld [vmem:[%s10798_s4 + $0x144] ss:$16 sps:$4 sm:$0xff]  }
  0xb9   :  { %1544 = vmatpush2.bf16.msra.mxu1 %v7309_v59  ;;  %1508 = vmatprep.subr.bf16.mxu0 %v7320_v62  ;;  %v7390_v59 = vld [vmem:[%s10798_s4 + $0x160] ss:$16 sps:$4 sm:$0xff]   ;;  %v7440_v62 = vld [vmem:[%s10798_s4 + $0x244] ss:$16 sps:$4 sm:$0xff]  }
  0xba   :  { %1545 = vmatprep.subr.bf16.mxu1 %v7317_v61  ;;  %v7438_v61 = vld [vmem:[%s10798_s4 + $0x240] ss:$16 sps:$4 sm:$0xff]  }
  0xbc   :  { %1509 = vmatpush2.bf16.msra.mxu0 %v7318_v0  ;;  %v7398_v0 = vld [vmem:[%s10798_s4 + $0x124] ss:$16 sps:$4 sm:$0xff]  }
  0xbd   :  { %1546 = vmatpush2.bf16.msra.mxu1 %v7315_v63  ;;  %1510 = vmatprep.subr.bf16.mxu0 %v7326_v2  ;;  %v7393_v63 = vld [vmem:[%s10798_s4 + $0x140] ss:$16 sps:$4 sm:$0xff]   ;;  %v7446_v2 = vld [vmem:[%s10798_s4 + $0x224] ss:$16 sps:$4 sm:$0xff]  }
  0xbe   :  { %1547 = vmatprep.subr.bf16.mxu1 %v7323_v1  ;;  %v7444_v1 = vld [vmem:[%s10798_s4 + $0x220] ss:$16 sps:$4 sm:$0xff]  }
  0xc0   :  { %1511 = vmatpush2.bf16.msra.mxu0 %v7324_v4  ;;  %v7401_v4 = vld [vmem:[%s10798_s4 + $0x104] ss:$16 sps:$4 sm:$0xff]  }
  0xc1   :  { %1548 = vmatpush2.bf16.msra.mxu1 %v7321_v3  ;;  %1512 = vmatprep.subr.bf16.mxu0 %v7332_v6  ;;  %v7396_v3 = vld [vmem:[%s10798_s4 + $0x120] ss:$16 sps:$4 sm:$0xff]   ;;  %v7452_v6 = vld [vmem:[%s10798_s4 + $0x204] ss:$16 sps:$4 sm:$0xff]  }
  0xc2   :  { %1549 = vmatprep.subr.bf16.mxu1 %v7329_v5  ;;  %v7450_v5 = vld [vmem:[%s10798_s4 + $0x200] ss:$16 sps:$4 sm:$0xff]  }
  0xc4   :  { %1513 = vmatpush2.bf16.msra.mxu0 %v7330_v10 }
  0xc5   :  { %1550 = vmatpush2.bf16.msra.mxu1 %v7327_v7  ;;  %1514 = vmatprep.subr.bf16.mxu0 %v7338_v12  ;;  %v7399_v7 = vld [vmem:[%s10798_s4 + $0x100] ss:$16 sps:$4 sm:$0xff]   ;;  %v7404_v12 = vld [vmem:[%s10798_s4 + $0xec] ss:$16 sps:$4 sm:$0xff]  }
  0xc6   :  { %1551 = vmatprep.subr.bf16.mxu1 %v7335_v11 }
  0xc8   :  { %1515 = vmatpush2.bf16.msra.mxu0 %v7336_v14 }
  0xc9   :  { %1552 = vmatpush2.bf16.msra.mxu1 %v7333_v13  ;;  %1516 = vmatprep.subr.bf16.mxu0 %v7344_v17  ;;  %v7456_v17 = vld [vmem:[%s10798_s4 + $0x3e0] ss:$16 sps:$4 sm:$0xff]  }
  0xca   :  { %1553 = vmatprep.subr.bf16.mxu1 %v7341_v15  ;;  %v7458_v15 = vld [vmem:[%s10798_s4 + $0x3e4] ss:$16 sps:$4 sm:$0xff]  }
  0xcc   :  { %1517 = vmatpush2.bf16.msra.mxu0 %v7342_v21 }
  0xcd   :  { %1554 = vmatpush2.bf16.msra.mxu1 %v7339_v18  ;;  %1582 = vmatprep.subr.bf16.mxu0 %v7350_v23 }
  0xce   :  { %1555 = vmatprep.subr.bf16.mxu1 %v7347_v22 }
  0xcf   :  { %1519 = vmatmul.mubr.bf16.vlgmr.msra.gmra.mxu0 %v8600_v9  ;;  %v7357_v9 = vld [vmem:[%s10798_s4 + $0xc0] ss:$16 sps:$4 sm:$0xff]  }
  0xd0   :  { %1583 = vmatpush1.bf16.msra.mxu0 %v7348_v25  ;;  %1600 = vmatprep.mubr.bf16.mxu0 %v8297_v16  ;;  %v7462_v25 = vld [vmem:[%s10798_s4 + $0x3c0] ss:$16 sps:$4 sm:$0xff]  }
  0xd1   :  { %1556 = vmatpush2.bf16.msra.mxu1 %v7345_v24  ;;  %2423 = vmatprep.subr.bf16.mxu0 %v7356_v27  ;;  %v7464_v24 = vld [vmem:[%s10798_s4 + $0x3c4] ss:$16 sps:$4 sm:$0xff]  }
  0xd2   :  { %1557 = vmatprep.subr.bf16.mxu1 %v7353_v26 }
  0xd5   :  { %1558 = vmatpush2.bf16.msra.mxu1 %v7351_v28  ;;  %v7470_v28 = vld [vmem:[%s10798_s4 + $0x3a4] ss:$16 sps:$4 sm:$0xff]  }
  0xd6   :  { %2464 = vmatprep.subr.bf16.mxu1 %v7410_v41 }
  0xd7   :  { %6418 = vmatmul.mubr.msk.bf16.vlgmr.msra.gmra.mxu0 %vm1277_vm0, %v8629_v19  ;;  %v7363_v19 = vld [vmem:[%s10798_s4 + $0x80] ss:$16 sps:$4 sm:$0xff]  }
  0xd8   :  { %1560 = vmatmul.mubr.bf16.vlgmr.msra.gmra.mxu1 %v8811_v20  ;;  %2424 = vmatpush1.bf16.msra.mxu0 %v7354_v29  ;;  %v7368_v20 = vld [vmem:[%s10798_s4 + $0x64] ss:$16 sps:$4 sm:$0xff]   ;;  %v7468_v29 = vld [vmem:[%s10798_s4 + $0x3a0] ss:$16 sps:$4 sm:$0xff]  }
  0xd9   :  { %2425 = vmatprep.subr.bf16.mxu0 %v7359_v30  ;;  %2465 = vmatpush1.bf16.msra.mxu1 %v7408_v40  ;;  %v9226_v40 = vld [vmem:[%s10797_s3] sm:$0xf] }
  0xda   :  { %2466 = vmatprep.subr.bf16.mxu1 %v7416_v45 }
  0xdc   :  { %2426 = vmatpush1.bf16.msra.mxu0 %v7357_v9 }
  0xdd   :  { %2427 = vmatprep.subr.bf16.mxu0 %v7362_v31  ;;  %2467 = vmatpush1.bf16.msra.mxu1 %v7414_v44  ;;  %v7476_v31 = vld [vmem:[%s10798_s4 + $0x384] ss:$16 sps:$4 sm:$0xff]  }
  0xde   :  { %2468 = vmatprep.subr.bf16.mxu1 %v7422_v49 }
  0xe0   :  { %2428 = vmatpush1.bf16.msra.mxu0 %v7360_v32  ;;  %v7474_v32 = vld [vmem:[%s10798_s4 + $0x380] ss:$16 sps:$4 sm:$0xff]  }
  0xe1   :  { %2429 = vmatprep.subr.bf16.mxu0 %v7365_v52  ;;  %2469 = vmatpush1.bf16.msra.mxu1 %v7420_v48  ;;  %v7482_v52 = vld [vmem:[%s10798_s4 + $0x364] ss:$16 sps:$4 sm:$0xff]  }
  0xe2   :  { %2470 = vmatprep.subr.bf16.mxu1 %v7428_v54 }
  0xe4   :  { %2430 = vmatpush1.bf16.msra.mxu0 %v7363_v19  ;;  %v7480_v19 = vld [vmem:[%s10798_s4 + $0x360] ss:$16 sps:$4 sm:$0xff]  }
  0xe5   :  { %2431 = vmatprep.subr.bf16.mxu0 %v7368_v20  ;;  %2471 = vmatpush1.bf16.msra.mxu1 %v7426_v53  ;;  %v7488_v20 = vld [vmem:[%s10798_s4 + $0x344] ss:$16 sps:$4 sm:$0xff]  }
  0xe6   :  { %2472 = vmatprep.subr.bf16.mxu1 %v7434_v58 }
  0xe8   :  { %2432 = vmatpush1.bf16.msra.mxu0 %v7366_v33  ;;  %v7486_v33 = vld [vmem:[%s10798_s4 + $0x340] ss:$16 sps:$4 sm:$0xff]  }
  0xe9   :  { %2433 = vmatprep.subr.bf16.mxu0 %v7371_v34  ;;  %2473 = vmatpush1.bf16.msra.mxu1 %v7432_v57  ;;  %v7494_v34 = vld [vmem:[%s10798_s4 + $0x324] ss:$16 sps:$4 sm:$0xff]  }
  0xea   :  { %2474 = vmatprep.subr.bf16.mxu1 %v7440_v62 }
  0xec   :  { %2434 = vmatpush1.bf16.msra.mxu0 %v7369_v35  ;;  %v7492_v35 = vld [vmem:[%s10798_s4 + $0x320] ss:$16 sps:$4 sm:$0xff]  }
  0xed   :  { %2435 = vmatprep.subr.bf16.mxu0 %v7374_v8  ;;  %2475 = vmatpush1.bf16.msra.mxu1 %v7438_v61  ;;  %v7497_v8 = vld [vmem:[%s10798_s4 + $0x304] ss:$16 sps:$4 sm:$0xff]  }
  0xee   :  { %2476 = vmatprep.subr.bf16.mxu1 %v7446_v2 }
  0xf0   :  { %2436 = vmatpush1.bf16.msra.mxu0 %v7372_v37  ;;  %v7495_v37 = vld [vmem:[%s10798_s4 + $0x300] ss:$16 sps:$4 sm:$0xff]  }
  0xf1   :  { %2437 = vmatprep.subr.bf16.mxu0 %v7377_v38  ;;  %2477 = vmatpush1.bf16.msra.mxu1 %v7444_v1  ;;  %v7500_v38 = vld [vmem:[%s10798_s4 + $0x2ec] ss:$16 sps:$4 sm:$0xff]  }
  0xf2   :  { %2478 = vmatprep.subr.bf16.mxu1 %v7452_v6 }
  0xf4   :  { %2438 = vmatpush1.bf16.msra.mxu0 %v7375_v39  ;;  %v277_v39 = vlaneseq }
  0xf5   :  { %2439 = vmatprep.subr.bf16.mxu0 %v7380_v36  ;;  %2479 = vmatpush1.bf16.msra.mxu1 %v7450_v5 }
  0xf6   :  { %2480 = vmatprep.subr.bf16.mxu1 %v7458_v15  ;;  %v9221_v36 = vshrl.u32 %v277_v39, 7  ;;  %v7419_v15 = vld [vmem:[%s10798_s4 + $0x8c] ss:$16 sps:$4 sm:$0xff]  }
  0xf8   :  { %2440 = vmatpush2.bf16.msra.mxu0 %v7378_v42  ;;  %v9229_v41 = vsub.s32 0, %v9221_v36  ;;  %v9232_v42 = vsub.s32 1, %v9221_v36 }
  0xf9   :  { %2441 = vmatprep.subr.bf16.mxu0 %v7383_v43  ;;  %2481 = vmatpush2.bf16.msra.mxu1 %v7456_v17  ;;  %v7417_v17 = vld [vmem:[%s10798_s4 + $0x88] ss:$16 sps:$4 sm:$0xff]  }
  0xfa   :  { %2482 = vmatprep.subr.bf16.mxu1 %v7464_v24  ;;  %v280_v43 = vrot.slane %v9226_v40, %v9229_v41  ;;  %v284_v44 = vrot.slane %v9226_v40, %v9232_v42  ;;  %v7437_v24 = vld [vmem:[%s10798_s4 + $0x2c] ss:$16 sps:$4 sm:$0xff]  }
  0xfc   :  { %2442 = vmatpush2.bf16.msra.mxu0 %v7381_v46 }
  0xfd   :  { %2443 = vmatprep.subr.bf16.mxu0 %v7386_v47  ;;  %2483 = vmatpush2.bf16.msra.mxu1 %v7462_v25  ;;  %v7435_v25 = vld [vmem:[%s10798_s4 + $0x28] ss:$16 sps:$4 sm:$0xff]  }
  0xfe   :  { %2484 = vmatprep.subr.bf16.mxu1 %v7470_v28  ;;  %v7449_v28 = vld [vmem:[%s10798_s4 + $0x1ec] ss:$16 sps:$4 sm:$0xff]  }
 0x100   :  { %2444 = vmatpush2.bf16.msra.mxu0 %v7384_v50 }
 0x101   :  { %2445 = vmatprep.subr.bf16.mxu0 %v7389_v51  ;;  %2485 = vmatpush2.bf16.msra.mxu1 %v7468_v29  ;;  %v7447_v29 = vld [vmem:[%s10798_s4 + $0x1e8] ss:$16 sps:$4 sm:$0xff]  }
 0x102   :  { %2486 = vmatprep.subr.bf16.mxu1 %v7476_v31  ;;  %v7453_v31 = vld [vmem:[%s10798_s4 + $0x1c8] ss:$16 sps:$4 sm:$0xff]  }
 0x104   :  { %2446 = vmatpush2.bf16.msra.mxu0 %v7387_v55 }
 0x105   :  { %2447 = vmatprep.subr.bf16.mxu0 %v7392_v56  ;;  %2487 = vmatpush2.bf16.msra.mxu1 %v7474_v32  ;;  %v9306_v32 = vsub.s32 3, %v9221_v36 }
 0x106   :  { %2488 = vmatprep.subr.bf16.mxu1 %v7482_v52  ;;  %v7461_v52 = vld [vmem:[%s10798_s4 + $0x1ac] ss:$16 sps:$4 sm:$0xff]  }
 0x108   :  { %2448 = vmatpush2.bf16.msra.mxu0 %v7390_v59 }
 0x109   :  { %2449 = vmatprep.subr.bf16.mxu0 %v7395_v60  ;;  %2489 = vmatpush2.bf16.msra.mxu1 %v7480_v19 }
 0x10a   :  { %2490 = vmatprep.subr.bf16.mxu1 %v7488_v20 }
 0x10c   :  { %2450 = vmatpush2.bf16.msra.mxu0 %v7393_v63 }
 0x10d   :  { %2451 = vmatprep.subr.bf16.mxu0 %v7398_v0  ;;  %2491 = vmatpush2.bf16.msra.mxu1 %v7486_v33 }
 0x10e   :  { %2492 = vmatprep.subr.bf16.mxu1 %v7494_v34  ;;  %v7459_v34 = vld [vmem:[%s10798_s4 + $0x1a8] ss:$16 sps:$4 sm:$0xff]  }
 0x10f   :  { %v1315_v10 = vpop.f32.mrf.mxu0 }
 0x110   :  { %v1356_v11 = vpop.f32.mrf.mxu1  ;;  %2452 = vmatpush2.bf16.msra.mxu0 %v7396_v3  ;;  %v1316_v45 = vadd.f32 %v1315_v10, %v280_v43  ;;  %v7407_v10 = vld [vmem:[%s10798_s4 + $0xcc] ss:$16 sps:$4 sm:$0xff]   ;;  %v7465_v43 = vld [vmem:[%s10798_s4 + $0x188] ss:$16 sps:$4 sm:$0xff]  }
 0x111   :  { %v1317_v13 = vpop.f32.mrf.mxu0  ;;  %2453 = vmatprep.subr.bf16.mxu0 %v7401_v4  ;;  %2493 = vmatpush2.bf16.msra.mxu1 %v7492_v35  ;;  %v292_v35 = vrot.slane %v9226_v40, %v9306_v32 }
 0x112   :  { %v1358_v14 = vpop.f32.mrf.mxu1  ;;  %2494 = vmatprep.subr.bf16.mxu1 %v7497_v8  ;;  %v1318_v46 = vadd.f32 %v1317_v13, %v284_v44  ;;  %v1357_v47 = vadd.f32 %v1356_v11, %v1316_v45  ;;  %v7413_v13 = vld [vmem:[%s10798_s4 + $0xac] ss:$16 sps:$4 sm:$0xff]  }
 0x113   :  { %v1319_v18 = vpop.f32.mrf.mxu0  ;;  %v7467_v8 = vld [vmem:[%s10798_s4 + $0x18c] ss:$16 sps:$4 sm:$0xff]  }
 0x114   :  { %v1360_v21 = vpop.f32.mrf.mxu1  ;;  %2454 = vmatpush2.bf16.msra.mxu0 %v7399_v7  ;;  %v1359_v49 = vadd.f32 %v1358_v14, %v1318_v46  ;;  %v7402_v7 = vld [vmem:[%s10798_s4 + $0xe8] ss:$16 sps:$4 sm:$0xff]   ;;  %v7425_v18 = vld [vmem:[%s10798_s4 + $0x6c] ss:$16 sps:$4 sm:$0xff]  }
 0x115   :  { %v1320_v22 = vpop.f32.mrf.mxu0  ;;  %2505 = vmatprep.subr.bf16.mxu0 %v7404_v12  ;;  %2495 = vmatpush2.bf16.msra.mxu1 %v7495_v37  ;;  %v7405_v12 = vld [vmem:[%s10798_s4 + $0xc8] ss:$16 sps:$4 sm:$0xff]  }
 0x116   :  { %v1361_v23 = vpop.f32.mrf.mxu1  ;;  %2546 = vmatprep.subr.bf16.mxu1 %v7500_v38  ;;  %v7411_v14 = vld [vmem:[%s10798_s4 + $0xa8] ss:$16 sps:$4 sm:$0xff]   ;;  %v7431_v22 = vld [vmem:[%s10798_s4 + $0x4c] ss:$16 sps:$4 sm:$0xff]  }
 0x117   :  { %v7423_v21 = vld [vmem:[%s10798_s4 + $0x68] ss:$16 sps:$4 sm:$0xff]  }
 0x118   :  { %v1438_v26 = vpop.f32.mrf.mxu1  ;;  %v7429_v23 = vld [vmem:[%s10798_s4 + $0x48] ss:$16 sps:$4 sm:$0xff]  }
 0x11a   :  { %v1440_v27 = vpop.f32.mrf.mxu1 }
 0x11c   :  { %v1442_v30 = vpop.f32.mrf.mxu1 }
 0x11d   :  { %v7455_v30 = vld [vmem:[%s10798_s4 + $0x1cc] ss:$16 sps:$4 sm:$0xff]  }
 0x11e   :  { %v1443_v9 = vpop.f32.mrf.mxu1 }
 0x11f   :  { %v9300_v9 = vsub.s32 2, %v9221_v36 }
 0x121   :  { %v288_v20 = vrot.slane %v9226_v40, %v9300_v9  ;;  %v7473_v40 = vld [vmem:[%s10798_s4 + $0x16c] ss:$16 sps:$4 sm:$0xff]  }
 0x14f   :  { %v1397_v48 = vpop.f32.mrf.mxu0 }
 0x150   :  { %v1398_v50 = vadd.f32 %v1397_v48, %v1357_v47 }
 0x151   :  { %v1399_v51 = vpop.f32.mrf.mxu0 }
 0x152   :  { %v1439_v53 = vadd.f32 %v1438_v26, %v1398_v50  ;;  %v1400_v54 = vadd.f32 %v1399_v51, %v1359_v49  ;;  %v7443_v26 = vld [vmem:[%s10798_s4 + $0xc] ss:$16 sps:$4 sm:$0xff]  }
 0x153   :  { %v1401_v55 = vpop.f32.mrf.mxu0 }
 0x154   :  { %v1613_v56 = vmul.f32 1.442695, %v1439_v53  ;;  %v1441_v57 = vadd.f32 %v1440_v27, %v1400_v54  ;;  %vm1609_vm1 = vcmp.gt.f32.partialorder %v1439_v53, 0.0  ;;  %v7441_v27 = vld [vmem:[%s10798_s4 + $0x8] ss:$16 sps:$4 sm:$0xff]  }
 0x155   :  { %v1402_v58 = vpop.f32.mrf.mxu0 }
 0x156   :  { %8202 = vpow2.f32 %v1613_v56  ;;  %v1615_v59 = vmul.f32 1.442695, %v1441_v57  ;;  %vm1610_vm2 = vcmp.gt.f32.partialorder %v1441_v57, 0.0  ;;  %v7479_v56 = vld [vmem:[%s10798_s4 + $0x14c] ss:$16 sps:$4 sm:$0xff]  }
 0x158   :  { %v9238_v60 = vpop.f32.mrf.mxu1  ;;  %8204 = vpow2.f32 %v1615_v59 }
 0x159   :  { %v1480_v38 = vadd.f32 %v9238_v60, %v288_v20  ;;  %v7560_v20 = vld [vmem:[%s10800_s6 + $0x34] ss:$8 sps:$4 sm:$0xff]  }
 0x15a   :  { %v9240_v61 = vpop.f32.mrf.mxu1 }
 0x15b   :  { %v1482_v44 = vadd.f32 %v9240_v61, %v292_v35  ;;  %v7558_v35 = vld [vmem:[%s10800_s6 + $0x30] ss:$8 sps:$4 sm:$0xff]  }
 0x15c   :  { %v1483_v62 = vpop.f32.mrf.mxu1 }
 0x15e   :  { %v1484_v63 = vpop.f32.mrf.mxu1 }
 0x15f   :  { %v7477_v63 = vld [vmem:[%s10798_s4 + $0x148] ss:$16 sps:$4 sm:$0xff]  }
 0x163   :  { %v8203_v0 = vpop.eup %8202 }
 0x164   :  { %v6419_v1 = vadd.f32 -1.0, %v8203_v0 }
 0x165   :  { %v8205_v2 = vpop.eup %8204 }
 0x166   :  { %v6420_v3 = vadd.f32 -1.0, %v8205_v2  ;;  %v1625_v4 = vsel %vm1609_vm1, %v1439_v53, %v6419_v1  ;;  %v7471_v53 = vld [vmem:[%s10798_s4 + $0x168] ss:$16 sps:$4 sm:$0xff]   ;;  %v7485_v1 = vld [vmem:[%s10798_s4 + $0x12c] ss:$16 sps:$4 sm:$0xff]  }
 0x167   :  { %v9248_v11 = vpack.c.bf16 %v1625_v4, %v1625_v4  ;;  %v7483_v2 = vld [vmem:[%s10798_s4 + $0x128] ss:$16 sps:$4 sm:$0xff]  }
 0x168   :  { %v1626_v5 = vsel %vm1610_vm2, %v1441_v57, %v6420_v3  ;;  %v7491_v3 = vld [vmem:[%s10798_s4 + $0x10c] ss:$16 sps:$4 sm:$0xff]   ;;  %v7489_v4 = vld [vmem:[%s10798_s4 + $0x108] ss:$16 sps:$4 sm:$0xff]  }
 0x169   :  { %v1630_v6 = vpack.c.bf16 %v1626_v5, %v1626_v5 }
 0x16b   :  { %2455 = vmatprep.mubr.bf16.mxu0 %v1630_v6 }
 0x16c   :  { %2456 = vmatmul.mubr.bf16.vlgmr.msra.gmra.mxu0 %v9248_v11 }
 0x16d   :  { %2506 = vmatpush1.bf16.msra.mxu0 %v7402_v7  ;;  %2537 = vmatprep.mubr.bf16.mxu0 %v1630_v6 }
 0x16e   :  { %2507 = vmatprep.subr.bf16.mxu0 %v7407_v10 }
 0x171   :  { %2508 = vmatpush1.bf16.msra.mxu0 %v7405_v12 }
 0x172   :  { %2509 = vmatprep.subr.bf16.mxu0 %v7413_v13 }
 0x175   :  { %2510 = vmatpush1.bf16.msra.mxu0 %v7411_v14 }
 0x176   :  { %2511 = vmatprep.subr.bf16.mxu0 %v7419_v15  ;;  %v7498_v15 = vld [vmem:[%s10798_s4 + $0x2e8] ss:$16 sps:$4 sm:$0xff]  }
 0x179   :  { %2512 = vmatpush1.bf16.msra.mxu0 %v7417_v17 }
 0x17a   :  { %2513 = vmatprep.subr.bf16.mxu0 %v7425_v18  ;;  %v7503_v18 = vld [vmem:[%s10798_s4 + $0x2cc] ss:$16 sps:$4 sm:$0xff]  }
 0x17d   :  { %2514 = vmatpush1.bf16.msra.mxu0 %v7423_v21  ;;  %v7548_v21 = vld [vmem:[%s10800_s6 + $0x74] ss:$8 sps:$4 sm:$0xff]  }
 0x17e   :  { %2515 = vmatprep.subr.bf16.mxu0 %v7431_v22  ;;  %v7551_v22 = vld [vmem:[%s10800_s6 + $0x64] ss:$8 sps:$4 sm:$0xff]  }
 0x181   :  { %2516 = vmatpush1.bf16.msra.mxu0 %v7429_v23  ;;  %v7501_v23 = vld [vmem:[%s10798_s4 + $0x2c8] ss:$16 sps:$4 sm:$0xff]  }
 0x182   :  { %2517 = vmatprep.subr.bf16.mxu0 %v7437_v24  ;;  %v7506_v24 = vld [vmem:[%s10798_s4 + $0x2ac] ss:$16 sps:$4 sm:$0xff]  }
 0x185   :  { %2518 = vmatpush1.bf16.msra.mxu0 %v7435_v25  ;;  %v7549_v25 = vld [vmem:[%s10800_s6 + $0x60] ss:$8 sps:$4 sm:$0xff]  }
 0x186   :  { %2519 = vmatprep.subr.bf16.mxu0 %v7443_v26  ;;  %v7554_v26 = vld [vmem:[%s10800_s6 + $0x54] ss:$8 sps:$4 sm:$0xff]  }
 0x189   :  { %2520 = vmatpush1.bf16.msra.mxu0 %v7441_v27  ;;  %v7504_v27 = vld [vmem:[%s10798_s4 + $0x2a8] ss:$16 sps:$4 sm:$0xff]  }
 0x18a   :  { %2521 = vmatprep.subr.bf16.mxu0 %v7449_v28  ;;  %v7509_v28 = vld [vmem:[%s10798_s4 + $0x28c] ss:$16 sps:$4 sm:$0xff]  }
 0x18d   :  { %2522 = vmatpush2.bf16.msra.mxu0 %v7447_v29  ;;  %v7552_v29 = vld [vmem:[%s10800_s6 + $0x50] ss:$8 sps:$4 sm:$0xff]  }
 0x18e   :  { %2523 = vmatprep.subr.bf16.mxu0 %v7455_v30  ;;  %v7557_v30 = vld [vmem:[%s10800_s6 + $0x44] ss:$8 sps:$4 sm:$0xff]  }
 0x18f   :  { %v1520_v19 = vpop.f32.mrf.mxu0 }
 0x190   :  { %v1521_v45 = vadd.f32 %v1520_v19, %v1480_v38  ;;  %v7555_v19 = vld [vmem:[%s10800_s6 + $0x40] ss:$8 sps:$4 sm:$0xff]   ;;  %v7518_v38 = vld [vmem:[%s10798_s4 + $0x22c] ss:$16 sps:$4 sm:$0xff]  }
 0x191   :  { %2524 = vmatpush2.bf16.msra.mxu0 %v7453_v31  ;;  %v1522_v33 = vpop.f32.mrf.mxu0  ;;  %v7507_v31 = vld [vmem:[%s10798_s4 + $0x288] ss:$16 sps:$4 sm:$0xff]  }
 0x192   :  { %2525 = vmatprep.subr.bf16.mxu0 %v7461_v52  ;;  %v1523_v48 = vadd.f32 %v1522_v33, %v1482_v44  ;;  %v7512_v52 = vld [vmem:[%s10798_s4 + $0x26c] ss:$16 sps:$4 sm:$0xff]   ;;  %v7510_v33 = vld [vmem:[%s10798_s4 + $0x268] ss:$16 sps:$4 sm:$0xff]  }
 0x193   :  { %v1524_v37 = vpop.f32.mrf.mxu0  ;;  %v7516_v44 = vld [vmem:[%s10798_s4 + $0x228] ss:$16 sps:$4 sm:$0xff]  }
 0x194   :  { %v7513_v37 = vld [vmem:[%s10798_s4 + $0x248] ss:$16 sps:$4 sm:$0xff]  }
 0x195   :  { %2526 = vmatpush2.bf16.msra.mxu0 %v7459_v34  ;;  %v1525_v39 = vpop.f32.mrf.mxu0  ;;  %v7515_v34 = vld [vmem:[%s10798_s4 + $0x24c] ss:$16 sps:$4 sm:$0xff]  }
 0x196   :  { %2527 = vmatprep.subr.bf16.mxu0 %v7467_v8  ;;  %v7563_v8 = vld [vmem:[%s10800_s6 + $0x24] ss:$8 sps:$4 sm:$0xff]   ;;  %v7561_v39 = vld [vmem:[%s10800_s6 + $0x20] ss:$8 sps:$4 sm:$0xff]  }
 0x197   :  { %v1602_v47 = vpop.f32.mrf.mxu0 }
 0x198   :  { %v1561_v46 = vpop.f32.mrf.mxu1 }
 0x199   :  { %v1562_v49 = vadd.f32 %v1561_v46, %v1521_v45  ;;  %2528 = vmatpush2.bf16.msra.mxu0 %v7465_v43  ;;  %v1604_v51 = vpop.f32.mrf.mxu0  ;;  %v7566_v43 = vld [vmem:[%s10800_s6 + $0x14] ss:$8 sps:$4 sm:$0xff]   ;;  %v7569_v46 = vld [vmem:[%s10800_s6 + $0x4] ss:$8 sps:$4 sm:$0xff]  }
 0x19a   :  { %v1563_v50 = vpop.f32.mrf.mxu1  ;;  %2529 = vmatprep.subr.bf16.mxu0 %v7473_v40  ;;  %v7521_v45 = vld [vmem:[%s10798_s4 + $0x20c] ss:$16 sps:$4 sm:$0xff]   ;;  %v7564_v40 = vld [vmem:[%s10800_s6 + $0x10] ss:$8 sps:$4 sm:$0xff]  }
 0x19b   :  { %v1603_v54 = vadd.f32 %v1602_v47, %v1562_v49  ;;  %v1564_v55 = vadd.f32 %v1563_v50, %v1523_v48  ;;  %v1606_v58 = vpop.f32.mrf.mxu0  ;;  %v7519_v47 = vld [vmem:[%s10798_s4 + $0x208] ss:$16 sps:$4 sm:$0xff]   ;;  %v7524_v48 = vld [vmem:[%s10798_s4 + $0x3ec] ss:$16 sps:$4 sm:$0xff]  }
 0x19c   :  { %v1565_v57 = vpop.f32.mrf.mxu1  ;;  %v7567_v49 = vld [vmem:[%s10800_s6] ss:$8 sps:$4 sm:$0xff]   ;;  %v7536_v58 = vld [vmem:[%s10798_s4 + $0x36c] ss:$16 sps:$4 sm:$0xff]  }
 0x19d   :  { %v1617_v59 = vmul.f32 1.442695, %v1603_v54  ;;  %v1605_v60 = vadd.f32 %v1604_v51, %v1564_v55  ;;  %2530 = vmatpush2.bf16.msra.mxu0 %v7471_v53  ;;  %v1607_v62 = vpop.f32.mrf.mxu0  ;;  %vm1611_vm3 = vcmp.gt.f32.partialorder %v1603_v54, 0.0  ;;  %v7522_v50 = vld [vmem:[%s10798_s4 + $0x3e8] ss:$16 sps:$4 sm:$0xff]  }
 0x19e   :  { %v1566_v61 = vpop.f32.mrf.mxu1  ;;  %2531 = vmatprep.subr.bf16.mxu0 %v7479_v56  ;;  %v7527_v51 = vld [vmem:[%s10798_s4 + $0x3cc] ss:$16 sps:$4 sm:$0xff]   ;;  %v7525_v53 = vld [vmem:[%s10798_s4 + $0x3c8] ss:$16 sps:$4 sm:$0xff]  }
 0x19f   :  { %8206 = vpow2.f32 %v1617_v59  ;;  %v1619_v0 = vmul.f32 1.442695, %v1605_v60  ;;  %vm1612_vm4 = vcmp.gt.f32.partialorder %v1605_v60, 0.0  ;;  %v7528_v55 = vld [vmem:[%s10798_s4 + $0x3a8] ss:$16 sps:$4 sm:$0xff]  }
 0x1a0   :  { %v7533_v56 = vld [vmem:[%s10798_s4 + $0x38c] ss:$16 sps:$4 sm:$0xff]   ;;  %v7531_v57 = vld [vmem:[%s10798_s4 + $0x388] ss:$16 sps:$4 sm:$0xff]  }
 0x1a1   :  { %8208 = vpow2.f32 %v1619_v0  ;;  %2532 = vmatpush2.bf16.msra.mxu0 %v7477_v63  ;;  %v7534_v59 = vld [vmem:[%s10798_s4 + $0x368] ss:$16 sps:$4 sm:$0xff]   ;;  %v7542_v62 = vld [vmem:[%s10798_s4 + $0x32c] ss:$16 sps:$4 sm:$0xff]  }
 0x1a2   :  { %2533 = vmatprep.subr.bf16.mxu0 %v7485_v1  ;;  %v7537_v61 = vld [vmem:[%s10798_s4 + $0x348] ss:$16 sps:$4 sm:$0xff]   ;;  %v7545_v0 = vld [vmem:[%s10798_s4 + $0x30c] ss:$16 sps:$4 sm:$0xff]  }
 0x1a3   :  { %v7540_v63 = vld [vmem:[%s10798_s4 + $0x328] ss:$16 sps:$4 sm:$0xff]  }
 0x1a4   :  { %v7543_v1 = vld [vmem:[%s10798_s4 + $0x308] ss:$16 sps:$4 sm:$0xff]  }
 0x1a5   :  { %2534 = vmatpush2.bf16.msra.mxu0 %v7483_v2  ;;  %v7572_v2 = vld [vmem:[%s10800_s6 + $0xf4] ss:$8 sps:$4 sm:$0xff]  }
 0x1a6   :  { %2535 = vmatprep.subr.bf16.mxu0 %v7491_v3  ;;  %v7570_v3 = vld [vmem:[%s10800_s6 + $0xf0] ss:$8 sps:$4 sm:$0xff]  }
 0x1a9   :  { %2536 = vmatpush2.bf16.msra.mxu0 %v7489_v4  ;;  %v7573_v4 = vld [vmem:[%s10800_s6 + $0xe0] ss:$8 sps:$4 sm:$0xff]  }
 0x1aa   :  { %3007 = vmatprep.subr.bf16.mxu0 %v7548_v21  ;;  %v7591_v21 = vld [vmem:[%s10800_s6 + $0x80] ss:$8 sps:$4 sm:$0xff]  }
 0x1ac   :  { %v8207_v5 = vpop.eup %8206  ;;  %2538 = vmatmul.mubr.bf16.vlgmr.msra.gmra.mxu0 %v9248_v11  ;;  %v7546_v11 = vld [vmem:[%s10800_s6 + $0x70] ss:$8 sps:$4 sm:$0xff]  }
 0x1ad   :  { %v6421_v6 = vadd.f32 -1.0, %v8207_v5  ;;  %3008 = vmatpush1.bf16.msra.mxu0 %v7546_v11  ;;  %v7575_v5 = vld [vmem:[%s10800_s6 + $0xe4] ss:$8 sps:$4 sm:$0xff]   ;;  %v7588_v11 = vld [vmem:[%s10800_s6 + $0x90] ss:$8 sps:$4 sm:$0xff]  }
 0x1ae   :  { %v8209_v7 = vpop.eup %8208  ;;  %3009 = vmatprep.subr.bf16.mxu0 %v7551_v22  ;;  %v7593_v22 = vld [vmem:[%s10800_s6 + $0x84] ss:$8 sps:$4 sm:$0xff]  }
 0x1af   :  { %v6422_v10 = vadd.f32 -1.0, %v8209_v7  ;;  %v1627_v12 = vsel %vm1611_vm3, %v1603_v54, %v6421_v6  ;;  %v7530_v54 = vld [vmem:[%s10798_s4 + $0x3ac] ss:$16 sps:$4 sm:$0xff]   ;;  %v7576_v7 = vld [vmem:[%s10800_s6 + $0xd0] ss:$8 sps:$4 sm:$0xff]  }
 0x1b0   :  { %v9354_v17 = vpack.c.bf16 %v1627_v12, %v1627_v12  ;;  %v7578_v6 = vld [vmem:[%s10800_s6 + $0xd4] ss:$8 sps:$4 sm:$0xff]   ;;  %v7579_v12 = vld [vmem:[%s10800_s6 + $0xc0] ss:$8 sps:$4 sm:$0xff]  }
 0x1b1   :  { %v1628_v13 = vsel %vm1612_vm4, %v1605_v60, %v6422_v10  ;;  %3010 = vmatpush1.bf16.msra.mxu0 %v7549_v25  ;;  %v7539_v60 = vld [vmem:[%s10798_s4 + $0x34c] ss:$16 sps:$4 sm:$0xff]  }
 0x1b2   :  { %v1632_v14 = vpack.c.bf16 %v1628_v13, %v1628_v13  ;;  %3011 = vmatprep.subr.bf16.mxu0 %v7554_v26  ;;  %v7581_v10 = vld [vmem:[%s10800_s6 + $0xc4] ss:$8 sps:$4 sm:$0xff]   ;;  %v7584_v13 = vld [vmem:[%s10800_s6 + $0xb4] ss:$8 sps:$4 sm:$0xff]   ;;  %v7597_v26 = vld [vmem:[%s10800_s6 + $0x160] ss:$8 sps:$4 sm:$0xff]  }
 0x1b3   :  { %v7599_v25 = vld [vmem:[%s10800_s6 + $0x164] ss:$8 sps:$4 sm:$0xff]  }
 0x1b4   :  { %2496 = vmatprep.mubr.bf16.mxu1 %v1632_v14 }
 0x1b5   :  { %2497 = vmatmul.mubr.bf16.vlgmr.msra.gmra.mxu1 %v9354_v17  ;;  %3012 = vmatpush1.bf16.msra.mxu0 %v7552_v29  ;;  %v7605_v29 = vld [vmem:[%s10800_s6 + $0x144] ss:$8 sps:$4 sm:$0xff]  }
 0x1b6   :  { %2547 = vmatpush1.bf16.msra.mxu1 %v7498_v15  ;;  %2578 = vmatprep.mubr.bf16.mxu1 %v1632_v14  ;;  %v7582_v14 = vld [vmem:[%s10800_s6 + $0xb0] ss:$8 sps:$4 sm:$0xff]   ;;  %v7587_v15 = vld [vmem:[%s10800_s6 + $0xa4] ss:$8 sps:$4 sm:$0xff]  }
 0x1b7   :  { %2548 = vmatprep.subr.bf16.mxu1 %v7503_v18  ;;  %3013 = vmatprep.subr.bf16.mxu0 %v7557_v30  ;;  %v7590_v18 = vld [vmem:[%s10800_s6 + $0x94] ss:$8 sps:$4 sm:$0xff]   ;;  %v7603_v30 = vld [vmem:[%s10800_s6 + $0x140] ss:$8 sps:$4 sm:$0xff]  }
 0x1b9   :  { %3014 = vmatpush1.bf16.msra.mxu0 %v7555_v19  ;;  %v7611_v19 = vld [vmem:[%s10800_s6 + $0x124] ss:$8 sps:$4 sm:$0xff]  }
 0x1ba   :  { %2549 = vmatpush1.bf16.msra.mxu1 %v7501_v23  ;;  %3015 = vmatprep.subr.bf16.mxu0 %v7560_v20  ;;  %v7596_v23 = vld [vmem:[%s10800_s6 + $0x174] ss:$8 sps:$4 sm:$0xff]   ;;  %v7609_v20 = vld [vmem:[%s10800_s6 + $0x120] ss:$8 sps:$4 sm:$0xff]  }
 0x1bb   :  { %2550 = vmatprep.subr.bf16.mxu1 %v7506_v24  ;;  %v7594_v24 = vld [vmem:[%s10800_s6 + $0x170] ss:$8 sps:$4 sm:$0xff]  }
 0x1bd   :  { %3016 = vmatpush1.bf16.msra.mxu0 %v7558_v35  ;;  %v7617_v35 = vld [vmem:[%s10800_s6 + $0x104] ss:$8 sps:$4 sm:$0xff]  }
 0x1be   :  { %2551 = vmatpush1.bf16.msra.mxu1 %v7504_v27  ;;  %3017 = vmatprep.subr.bf16.mxu0 %v7563_v8  ;;  %v7602_v27 = vld [vmem:[%s10800_s6 + $0x154] ss:$8 sps:$4 sm:$0xff]   ;;  %v7615_v8 = vld [vmem:[%s10800_s6 + $0x100] ss:$8 sps:$4 sm:$0xff]  }
 0x1bf   :  { %2552 = vmatprep.subr.bf16.mxu1 %v7509_v28  ;;  %v7600_v28 = vld [vmem:[%s10800_s6 + $0x150] ss:$8 sps:$4 sm:$0xff]  }
 0x1c1   :  { %3018 = vmatpush1.bf16.msra.mxu0 %v7561_v39  ;;  %v7618_v39 = vld [vmem:[%s10800_s6 + $0x1f0] ss:$8 sps:$4 sm:$0xff]  }
 0x1c2   :  { %2553 = vmatpush1.bf16.msra.mxu1 %v7507_v31  ;;  %3019 = vmatprep.subr.bf16.mxu0 %v7566_v43  ;;  %v7608_v31 = vld [vmem:[%s10800_s6 + $0x134] ss:$8 sps:$4 sm:$0xff]   ;;  %v7623_v43 = vld [vmem:[%s10800_s6 + $0x1e4] ss:$8 sps:$4 sm:$0xff]  }
 0x1c3   :  { %2554 = vmatprep.subr.bf16.mxu1 %v7512_v52  ;;  %v7606_v52 = vld [vmem:[%s10800_s6 + $0x130] ss:$8 sps:$4 sm:$0xff]  }
 0x1c5   :  { %3020 = vmatpush1.bf16.msra.mxu0 %v7564_v40  ;;  %v7621_v40 = vld [vmem:[%s10800_s6 + $0x1e0] ss:$8 sps:$4 sm:$0xff]  }
 0x1c6   :  { %2555 = vmatpush1.bf16.msra.mxu1 %v7510_v33  ;;  %3021 = vmatprep.subr.bf16.mxu0 %v7569_v46  ;;  %v7614_v33 = vld [vmem:[%s10800_s6 + $0x114] ss:$8 sps:$4 sm:$0xff]  }
 0x1c7   :  { %2556 = vmatprep.subr.bf16.mxu1 %v7515_v34  ;;  %v7612_v34 = vld [vmem:[%s10800_s6 + $0x110] ss:$8 sps:$4 sm:$0xff]  }
 0x1c9   :  { %3022 = vmatpush1.bf16.msra.mxu0 %v7567_v49  ;;  %v7629_v49 = vld [vmem:[%s10800_s6 + $0x1c4] ss:$8 sps:$4 sm:$0xff]  }
 0x1ca   :  { %2557 = vmatpush1.bf16.msra.mxu1 %v7513_v37  ;;  %3023 = vmatprep.subr.bf16.mxu0 %v7572_v2  ;;  %v7620_v37 = vld [vmem:[%s10800_s6 + $0x1f4] ss:$8 sps:$4 sm:$0xff]  }
 0x1cb   :  { %2558 = vmatprep.subr.bf16.mxu1 %v7518_v38 }
 0x1cd   :  { %3024 = vmatpush2.bf16.msra.mxu0 %v7570_v3 }
 0x1ce   :  { %2559 = vmatpush1.bf16.msra.mxu1 %v7516_v44  ;;  %3025 = vmatprep.subr.bf16.mxu0 %v7575_v5 }
 0x1cf   :  { %2560 = vmatprep.subr.bf16.mxu1 %v7521_v45 }
 0x1d1   :  { %3026 = vmatpush2.bf16.msra.mxu0 %v7573_v4 }
 0x1d2   :  { %2561 = vmatpush1.bf16.msra.mxu1 %v7519_v47  ;;  %3027 = vmatprep.subr.bf16.mxu0 %v7578_v6  ;;  %v7626_v47 = vld [vmem:[%s10800_s6 + $0x1d4] ss:$8 sps:$4 sm:$0xff]  }
 0x1d3   :  { %2562 = vmatprep.subr.bf16.mxu1 %v7524_v48  ;;  %v7624_v48 = vld [vmem:[%s10800_s6 + $0x1d0] ss:$8 sps:$4 sm:$0xff]  }
 0x1d5   :  { %3028 = vmatpush2.bf16.msra.mxu0 %v7576_v7 }
 0x1d6   :  { %2563 = vmatpush2.bf16.msra.mxu1 %v7522_v50  ;;  %3029 = vmatprep.subr.bf16.mxu0 %v7581_v10  ;;  %v7627_v50 = vld [vmem:[%s10800_s6 + $0x1c0] ss:$8 sps:$4 sm:$0xff]  }
 0x1d7   :  { %2564 = vmatprep.subr.bf16.mxu1 %v7527_v51  ;;  %v7632_v51 = vld [vmem:[%s10800_s6 + $0x1b4] ss:$8 sps:$4 sm:$0xff]  }
 0x1d9   :  { %3030 = vmatpush2.bf16.msra.mxu0 %v7579_v12 }
 0x1da   :  { %2565 = vmatpush2.bf16.msra.mxu1 %v7525_v53  ;;  %3031 = vmatprep.subr.bf16.mxu0 %v7584_v13  ;;  %v7630_v53 = vld [vmem:[%s10800_s6 + $0x1b0] ss:$8 sps:$4 sm:$0xff]  }
 0x1db   :  { %2566 = vmatprep.subr.bf16.mxu1 %v7530_v54  ;;  %v7635_v54 = vld [vmem:[%s10800_s6 + $0x1a4] ss:$8 sps:$4 sm:$0xff]  }
 0x1dd   :  { %3032 = vmatpush2.bf16.msra.mxu0 %v7582_v14 }
 0x1de   :  { %2567 = vmatpush2.bf16.msra.mxu1 %v7528_v55  ;;  %3033 = vmatprep.subr.bf16.mxu0 %v7587_v15  ;;  %v7633_v55 = vld [vmem:[%s10800_s6 + $0x1a0] ss:$8 sps:$4 sm:$0xff]  }
 0x1df   :  { %2568 = vmatprep.subr.bf16.mxu1 %v7533_v56  ;;  %v7638_v56 = vld [vmem:[%s10800_s6 + $0x194] ss:$8 sps:$4 sm:$0xff]  }
 0x1e2   :  { %2569 = vmatpush2.bf16.msra.mxu1 %v7531_v57  ;;  %v7636_v57 = vld [vmem:[%s10800_s6 + $0x190] ss:$8 sps:$4 sm:$0xff]  }
 0x1e3   :  { %2570 = vmatprep.subr.bf16.mxu1 %v7536_v58  ;;  %v7641_v58 = vld [vmem:[%s10800_s6 + $0x184] ss:$8 sps:$4 sm:$0xff]  }
 0x1e6   :  { %2571 = vmatpush2.bf16.msra.mxu1 %v7534_v59  ;;  %v7639_v59 = vld [vmem:[%s10800_s6 + $0x180] ss:$8 sps:$4 sm:$0xff]  }
 0x1e7   :  { %2572 = vmatprep.subr.bf16.mxu1 %v7539_v60  ;;  %v1761_v60 = vld [vmem:[%s10799_s5] sm:$0xf] }
 0x1ea   :  { %2573 = vmatpush2.bf16.msra.mxu1 %v7537_v61 }
 0x1eb   :  { %2574 = vmatprep.subr.bf16.mxu1 %v7542_v62 }
 0x1ee   :  { %2575 = vmatpush2.bf16.msra.mxu1 %v7540_v63  ;;  %v1766_v63 = vrot.slane %v1761_v60, %v9229_v41 }
 0x1ef   :  { %2576 = vmatprep.subr.bf16.mxu1 %v7545_v0 }
 0x1f2   :  { %2577 = vmatpush2.bf16.msra.mxu1 %v7543_v1  ;;  %v1770_v1 = vrot.slane %v1761_v60, %v9232_v42 }
 0x1f3   :  { %3048 = vmatprep.subr.bf16.mxu1 %v7596_v23 }
 0x1f5   :  { %2579 = vmatmul.mubr.bf16.vlgmr.msra.gmra.mxu1 %v9354_v17  ;;  %v7585_v17 = vld [vmem:[%s10800_s6 + $0xa0] ss:$8 sps:$4 sm:$0xff]  }
 0x1f6   :  { %3034 = vmatpush2.bf16.msra.mxu0 %v7585_v17  ;;  %3049 = vmatpush1.bf16.msra.mxu1 %v7594_v24 }
 0x1f7   :  { %3035 = vmatprep.subr.bf16.mxu0 %v7590_v18  ;;  %3050 = vmatprep.subr.bf16.mxu1 %v7599_v25 }
 0x1fa   :  { %3036 = vmatpush2.bf16.msra.mxu0 %v7588_v11  ;;  %3051 = vmatpush1.bf16.msra.mxu1 %v7597_v26  ;;  %v1774_v26 = vrot.slane %v1761_v60, %v9300_v9 }
 0x1fb   :  { %3037 = vmatprep.subr.bf16.mxu0 %v7593_v22  ;;  %3052 = vmatprep.subr.bf16.mxu1 %v7602_v27  ;;  %v1778_v27 = vrot.slane %v1761_v60, %v9306_v32  ;;  %v7660_v60 = vld [vmem:[#allocation2 + $0x80] ss:$16 sps:$4 sm:$0xff]  }
 0x1fe   :  { %3038 = vmatpush2.bf16.msra.mxu0 %v7591_v21  ;;  %3053 = vmatpush1.bf16.msra.mxu1 %v7600_v28 }
 0x1ff   :  { %3054 = vmatprep.subr.bf16.mxu1 %v7605_v29 }
 0x202   :  { %3055 = vmatpush1.bf16.msra.mxu1 %v7603_v30 }
 0x203   :  { %3056 = vmatprep.subr.bf16.mxu1 %v7608_v31 }
 0x206   :  { %3057 = vmatpush1.bf16.msra.mxu1 %v7606_v52 }
 0x207   :  { %3058 = vmatprep.subr.bf16.mxu1 %v7611_v19 }
 0x20a   :  { %3059 = vmatpush1.bf16.msra.mxu1 %v7609_v20 }
 0x20b   :  { %3060 = vmatprep.subr.bf16.mxu1 %v7614_v33 }
 0x20e   :  { %3061 = vmatpush1.bf16.msra.mxu1 %v7612_v34 }
 0x20f   :  { %3062 = vmatprep.subr.bf16.mxu1 %v7617_v35 }
 0x212   :  { %3063 = vmatpush1.bf16.msra.mxu1 %v7615_v8 }
 0x213   :  { %3064 = vmatprep.subr.bf16.mxu1 %v7620_v37 }
 0x216   :  { %3065 = vmatpush2.bf16.msra.mxu1 %v7618_v39 }
 0x217   :  { %3066 = vmatprep.subr.bf16.mxu1 %v7623_v43 }
 0x21a   :  { %3067 = vmatpush2.bf16.msra.mxu1 %v7621_v40 }
 0x21b   :  { %3068 = vmatprep.subr.bf16.mxu1 %v7626_v47  ;;  %v7644_v47 = vld [vmem:[#allocation2 + $0xe4] ss:$16 sps:$4 sm:$0xff]  }
 0x21c   :  { %3312 = vmatprep.subr.bf16.mxu0 %v7644_v47  ;;  %v7696_v47 = vld [vmem:[%s10804_s10 + $0xc0] ss:$16 sps:$4 sm:$0xff]  }
 0x21e   :  { %3069 = vmatpush2.bf16.msra.mxu1 %v7624_v48  ;;  %v7645_v48 = vld [vmem:[#allocation2 + $0xe8] ss:$16 sps:$4 sm:$0xff]  }
 0x21f   :  { %3070 = vmatprep.subr.bf16.mxu1 %v7629_v49  ;;  %v7647_v49 = vld [vmem:[#allocation2 + $0xec] ss:$16 sps:$4 sm:$0xff]  }
 0x222   :  { %3071 = vmatpush2.bf16.msra.mxu1 %v7627_v50  ;;  %v7650_v50 = vld [vmem:[#allocation2 + $0xc4] ss:$16 sps:$4 sm:$0xff]  }
 0x223   :  { %3072 = vmatprep.subr.bf16.mxu1 %v7632_v51  ;;  %v7653_v51 = vld [vmem:[#allocation2 + $0xcc] ss:$16 sps:$4 sm:$0xff]  }
 0x226   :  { %3073 = vmatpush2.bf16.msra.mxu1 %v7630_v53  ;;  %v7648_v53 = vld [vmem:[#allocation2 + $0xc0] ss:$16 sps:$4 sm:$0xff]  }
 0x227   :  { %3074 = vmatprep.subr.bf16.mxu1 %v7635_v54  ;;  %v7651_v54 = vld [vmem:[#allocation2 + $0xc8] ss:$16 sps:$4 sm:$0xff]  }
 0x22a   :  { %3075 = vmatpush2.bf16.msra.mxu1 %v7633_v55  ;;  %v7656_v55 = vld [vmem:[#allocation2 + $0xa4] ss:$16 sps:$4 sm:$0xff]  }
 0x22b   :  { %3076 = vmatprep.subr.bf16.mxu1 %v7638_v56  ;;  %v7659_v56 = vld [vmem:[#allocation2 + $0xac] ss:$16 sps:$4 sm:$0xff]  }
 0x22c   :  { %v2457_v38 = vpop.f32.mrf.mxu0 }
 0x22d   :  { %v2458_v3 = vadd.f32 %v2457_v38, %v1766_v63  ;;  %v7666_v63 = vld [vmem:[#allocation2 + $0x60] ss:$16 sps:$4 sm:$0xff]  }
 0x22e   :  { %v2459_v44 = vpop.f32.mrf.mxu0  ;;  %3077 = vmatpush2.bf16.msra.mxu1 %v7636_v57  ;;  %v7654_v57 = vld [vmem:[#allocation2 + $0xa0] ss:$16 sps:$4 sm:$0xff]  }
 0x22f   :  { %3078 = vmatprep.subr.bf16.mxu1 %v7641_v58  ;;  %v2460_v5 = vadd.f32 %v2459_v44, %v1770_v1  ;;  %v7662_v58 = vld [vmem:[#allocation2 + $0x84] ss:$16 sps:$4 sm:$0xff]   ;;  %v7671_v1 = vld [vmem:[#allocation2 + $0x6c] ss:$16 sps:$4 sm:$0xff]  }
 0x230   :  { %v2461_v45 = vpop.f32.mrf.mxu0 }
 0x232   :  { %v2462_v46 = vpop.f32.mrf.mxu0  ;;  %3079 = vmatpush2.bf16.msra.mxu1 %v7639_v59  ;;  %v7665_v59 = vld [vmem:[#allocation2 + $0x8c] ss:$16 sps:$4 sm:$0xff]  }
 0x233   :  { %v7642_v46 = vld [vmem:[#allocation2 + $0xe0] ss:$16 sps:$4 sm:$0xff]   ;;  %3353 = vmatprep.subr.bf16.mxu1 %v7647_v49  ;;  %v7704_v49 = vld [vmem:[%s10804_s10 + $0xa4] ss:$16 sps:$4 sm:$0xff]  }
 0x26c   :  { %v2539_v61 = vpop.f32.mrf.mxu0 }
 0x26d   :  { %v2540_v28 = vadd.f32 %v2539_v61, %v1774_v26  ;;  %v7663_v61 = vld [vmem:[#allocation2 + $0x88] ss:$16 sps:$4 sm:$0xff]  }
 0x26e   :  { %v2541_v62 = vpop.f32.mrf.mxu0 }
 0x26f   :  { %v2542_v30 = vadd.f32 %v2541_v62, %v1778_v27  ;;  %v7668_v62 = vld [vmem:[#allocation2 + $0x64] ss:$16 sps:$4 sm:$0xff]  }
 0x270   :  { %v2543_v0 = vpop.f32.mrf.mxu0 }
 0x271   :  { %v7669_v0 = vld [vmem:[#allocation2 + $0x68] ss:$16 sps:$4 sm:$0xff]  }
 0x272   :  { %v2544_v2 = vpop.f32.mrf.mxu0 }
 0x273   :  { %v7674_v2 = vld [vmem:[#allocation2 + $0x44] ss:$16 sps:$4 sm:$0xff]  }
 0x275   :  { %v2498_v4 = vpop.f32.mrf.mxu1 }
 0x276   :  { %v2499_v6 = vadd.f32 %v2498_v4, %v2458_v3  ;;  %v7677_v3 = vld [vmem:[#allocation2 + $0x4c] ss:$16 sps:$4 sm:$0xff]   ;;  %v7672_v4 = vld [vmem:[#allocation2 + $0x40] ss:$16 sps:$4 sm:$0xff]  }
 0x277   :  { %v2500_v7 = vpop.f32.mrf.mxu1 }
 0x278   :  { %v2591_v10 = vmul.f32 1.442695, %v2499_v6  ;;  %v2501_v12 = vadd.f32 %v2500_v7, %v2460_v5  ;;  %vm2587_vm5 = vcmp.gt.f32.partialorder %v2499_v6, 0.0  ;;  %v7675_v5 = vld [vmem:[#allocation2 + $0x48] ss:$16 sps:$4 sm:$0xff]  }
 0x279   :  { %v2502_v13 = vpop.f32.mrf.mxu1  ;;  %v7683_v7 = vld [vmem:[#allocation2 + $0x2c] ss:$16 sps:$4 sm:$0xff]  }
 0x27a   :  { %8210 = vpow2.f32 %v2591_v10  ;;  %v2593_v14 = vmul.f32 1.442695, %v2501_v12  ;;  %vm2588_vm6 = vcmp.gt.f32.partialorder %v2501_v12, 0.0  ;;  %v7678_v10 = vld [vmem:[#allocation2 + $0x20] ss:$16 sps:$4 sm:$0xff]  }
 0x27b   :  { %v2503_v15 = vpop.f32.mrf.mxu1  ;;  %v7686_v13 = vld [vmem:[#allocation2 + $0x4] ss:$16 sps:$4 sm:$0xff]  }
 0x27c   :  { %8212 = vpow2.f32 %v2593_v14  ;;  %v7689_v14 = vld [vmem:[#allocation2 + $0xc] ss:$16 sps:$4 sm:$0xff]   ;;  %v7684_v15 = vld [vmem:[#allocation2] ss:$16 sps:$4 sm:$0xff]  }
 0x287   :  { %v8211_v17 = vpop.eup %8210 }
 0x288   :  { %v6551_v18 = vadd.f32 -1.0, %v8211_v17  ;;  %v7687_v17 = vld [vmem:[#allocation2 + $0x8] ss:$16 sps:$4 sm:$0xff]  }
 0x289   :  { %v8213_v11 = vpop.eup %8212 }
 0x28a   :  { %v6552_v21 = vadd.f32 -1.0, %v8213_v11  ;;  %v2603_v22 = vsel %vm2587_vm5, %v2499_v6, %v6551_v18  ;;  %v7680_v6 = vld [vmem:[#allocation2 + $0x24] ss:$16 sps:$4 sm:$0xff]  }
 0x28b   :  { %v2607_v25 = vpack.c.bf16 %v2603_v22, %v2603_v22  ;;  %v7692_v18 = vld [vmem:[%s10804_s10 + $0xe4] ss:$16 sps:$4 sm:$0xff]  }
 0x28c   :  { %v2604_v23 = vsel %vm2588_vm6, %v2501_v12, %v6552_v21  ;;  %v7681_v12 = vld [vmem:[#allocation2 + $0x28] ss:$16 sps:$4 sm:$0xff]   ;;  %v7695_v11 = vld [vmem:[%s10804_s10 + $0x2e4] ss:$16 sps:$4 sm:$0xff]  }
 0x28d   :  { %v2608_v24 = vpack.c.bf16 %v2604_v23, %v2604_v23 }
 0x28f   :  { %3039 = vmatprep.mubr.bf16.mxu0 %v2608_v24 }
 0x290   :  { %3040 = vmatmul.mubr.bf16.vlgmr.msra.gmra.mxu0 %v2607_v25  ;;  %v2675_v25 = vld [vmem:[%s10801_s7] sm:$0x3] }
 0x291   :  { %3344 = vmatprep.mubr.bf16.mxu0 %v8297_v16  ;;  %3313 = vmatpush1.bf16.msra.mxu0 %v7642_v46  ;;  %v2680_v26 = vrot.slane %v2675_v25, %v9229_v41  ;;  %v2684_v27 = vrot.slane %v2675_v25, %v9232_v42  ;;  %v7701_v46 = vld [vmem:[%s10804_s10 + $0x2c4] ss:$16 sps:$4 sm:$0xff]   ;;  %v7753_v25 = vld [vmem:[%s10804_s10 + $0x3a0] ss:$16 sps:$4 sm:$0xff]  }
 0x292   :  { %3314 = vmatprep.subr.bf16.mxu0 %v7650_v50  ;;  %v7707_v50 = vld [vmem:[%s10804_s10 + $0x2a4] ss:$16 sps:$4 sm:$0xff]  }
 0x295   :  { %3315 = vmatpush1.bf16.msra.mxu0 %v7648_v53  ;;  %v7705_v53 = vld [vmem:[%s10804_s10 + $0x2a0] ss:$16 sps:$4 sm:$0xff]  }
 0x296   :  { %3316 = vmatprep.subr.bf16.mxu0 %v7656_v55  ;;  %v7713_v55 = vld [vmem:[%s10804_s10 + $0x284] ss:$16 sps:$4 sm:$0xff]  }
 0x299   :  { %3317 = vmatpush1.bf16.msra.mxu0 %v7654_v57  ;;  %v7711_v57 = vld [vmem:[%s10804_s10 + $0x280] ss:$16 sps:$4 sm:$0xff]  }
 0x29a   :  { %3318 = vmatprep.subr.bf16.mxu0 %v7662_v58  ;;  %v7719_v58 = vld [vmem:[%s10804_s10 + $0x264] ss:$16 sps:$4 sm:$0xff]  }
 0x29d   :  { %3319 = vmatpush1.bf16.msra.mxu0 %v7660_v60  ;;  %v7717_v60 = vld [vmem:[%s10804_s10 + $0x260] ss:$16 sps:$4 sm:$0xff]  }
 0x29e   :  { %3320 = vmatprep.subr.bf16.mxu0 %v7668_v62  ;;  %v7725_v62 = vld [vmem:[%s10804_s10 + $0x244] ss:$16 sps:$4 sm:$0xff]  }
 0x2a1   :  { %3321 = vmatpush1.bf16.msra.mxu0 %v7666_v63  ;;  %v7720_v63 = vld [vmem:[%s10804_s10 + $0x40] ss:$16 sps:$4 sm:$0xff]  }
 0x2a2   :  { %3322 = vmatprep.subr.bf16.mxu0 %v7674_v2  ;;  %v7731_v2 = vld [vmem:[%s10804_s10 + $0x224] ss:$16 sps:$4 sm:$0xff]  }
 0x2a5   :  { %3323 = vmatpush1.bf16.msra.mxu0 %v7672_v4  ;;  %v7729_v4 = vld [vmem:[%s10804_s10 + $0x220] ss:$16 sps:$4 sm:$0xff]  }
 0x2a6   :  { %3324 = vmatprep.subr.bf16.mxu0 %v7680_v6  ;;  %v7737_v6 = vld [vmem:[%s10804_s10 + $0x204] ss:$16 sps:$4 sm:$0xff]  }
 0x2a9   :  { %3325 = vmatpush1.bf16.msra.mxu0 %v7678_v10  ;;  %v7735_v10 = vld [vmem:[%s10804_s10 + $0x200] ss:$16 sps:$4 sm:$0xff]  }
 0x2aa   :  { %3326 = vmatprep.subr.bf16.mxu0 %v7686_v13  ;;  %v7743_v13 = vld [vmem:[%s10804_s10 + $0x3e4] ss:$16 sps:$4 sm:$0xff]  }
 0x2ad   :  { %3327 = vmatpush1.bf16.msra.mxu0 %v7684_v15  ;;  %v7741_v15 = vld [vmem:[%s10804_s10 + $0x3e0] ss:$16 sps:$4 sm:$0xff]  }
 0x2ae   :  { %4208 = vmatprep.subr.bf16.mxu0 %v7692_v18  ;;  %v7749_v18 = vld [vmem:[%s10804_s10 + $0x3c4] ss:$16 sps:$4 sm:$0xff]  }
 0x2b5   :  { %v2580_v29 = vpop.f32.mrf.mxu1 }
 0x2b6   :  { %v2581_v31 = vadd.f32 %v2580_v29, %v2540_v28 }
 0x2b7   :  { %v2582_v52 = vpop.f32.mrf.mxu1 }
 0x2b8   :  { %v2595_v19 = vmul.f32 1.442695, %v2581_v31  ;;  %v2583_v20 = vadd.f32 %v2582_v52, %v2542_v30  ;;  %vm2589_vm7 = vcmp.gt.f32.partialorder %v2581_v31, 0.0 }
 0x2b9   :  { %v2584_v33 = vpop.f32.mrf.mxu1 }
 0x2ba   :  { %8214 = vpow2.f32 %v2595_v19  ;;  %v2597_v34 = vmul.f32 1.442695, %v2583_v20  ;;  %vm2590_vm8 = vcmp.gt.f32.partialorder %v2583_v20, 0.0 }
 0x2bb   :  { %v2585_v35 = vpop.f32.mrf.mxu1 }
 0x2bc   :  { %8216 = vpow2.f32 %v2597_v34 }
 0x2c7   :  { %v8215_v8 = vpop.eup %8214 }
 0x2c8   :  { %v6553_v37 = vadd.f32 -1.0, %v8215_v8  ;;  %v3091_v8 = vld [vmem:[%s10795_s1] sm:$0xff] }
 0x2c9   :  { %v8217_v38 = vpop.eup %8216 }
 0x2ca   :  { %v6554_v39 = vadd.f32 -1.0, %v8217_v38  ;;  %v2605_v43 = vsel %vm2589_vm7, %v2581_v31, %v6553_v37 }
 0x2cb   :  { %v2609_v40 = vpack.c.bf16 %v2605_v43, %v2605_v43  ;;  %v7690_v43 = vld [vmem:[%s10804_s10 + $0xe0] ss:$16 sps:$4 sm:$0xff]  }
 0x2cc   :  { %v2606_v44 = vsel %vm2590_vm8, %v2583_v20, %v6554_v39 }
 0x2cd   :  { %v2610_v45 = vpack.c.bf16 %v2606_v44, %v2606_v44  ;;  %v7693_v44 = vld [vmem:[%s10804_s10 + $0x2e0] ss:$16 sps:$4 sm:$0xff]  }
 0x2cf   :  { %3080 = vmatprep.mubr.bf16.mxu1 %v2610_v45 }
 0x2d0   :  { %3081 = vmatmul.mubr.bf16.vlgmr.msra.gmra.mxu1 %v2609_v40  ;;  %v7698_v40 = vld [vmem:[%s10804_s10 + $0xc4] ss:$16 sps:$4 sm:$0xff]  }
 0x2d1   :  { %3385 = vmatprep.mubr.bf16.mxu1 %v8297_v16  ;;  %3354 = vmatpush1.bf16.msra.mxu1 %v7645_v48  ;;  %v7657_v16 = vld [vmem:[#allocation2 + $0xa8] ss:$16 sps:$4 sm:$0xff]   ;;  %v7699_v48 = vld [vmem:[%s10804_s10 + $0x2c0] ss:$16 sps:$4 sm:$0xff]  }
 0x2d2   :  { %3355 = vmatprep.subr.bf16.mxu1 %v7653_v51  ;;  %v7702_v51 = vld [vmem:[%s10804_s10 + $0xa0] ss:$16 sps:$4 sm:$0xff]  }
 0x2d5   :  { %3356 = vmatpush1.bf16.msra.mxu1 %v7651_v54  ;;  %v7710_v54 = vld [vmem:[%s10804_s10 + $0x84] ss:$16 sps:$4 sm:$0xff]  }
 0x2d6   :  { %3357 = vmatprep.subr.bf16.mxu1 %v7659_v56  ;;  %v7708_v56 = vld [vmem:[%s10804_s10 + $0x80] ss:$16 sps:$4 sm:$0xff]  }
 0x2d9   :  { %3358 = vmatpush1.bf16.msra.mxu1 %v7657_v16  ;;  %v7716_v16 = vld [vmem:[%s10804_s10 + $0x64] ss:$16 sps:$4 sm:$0xff]  }
 0x2da   :  { %3359 = vmatprep.subr.bf16.mxu1 %v7665_v59  ;;  %v7714_v59 = vld [vmem:[%s10804_s10 + $0x60] ss:$16 sps:$4 sm:$0xff]  }
 0x2dd   :  { %3360 = vmatpush1.bf16.msra.mxu1 %v7663_v61  ;;  %v7722_v61 = vld [vmem:[%s10804_s10 + $0x44] ss:$16 sps:$4 sm:$0xff]  }
 0x2de   :  { %3361 = vmatprep.subr.bf16.mxu1 %v7671_v1  ;;  %v7728_v1 = vld [vmem:[%s10804_s10 + $0x24] ss:$16 sps:$4 sm:$0xff]  }
 0x2e1   :  { %3362 = vmatpush1.bf16.msra.mxu1 %v7669_v0  ;;  %v7723_v0 = vld [vmem:[%s10804_s10 + $0x240] ss:$16 sps:$4 sm:$0xff]  }
 0x2e2   :  { %3363 = vmatprep.subr.bf16.mxu1 %v7677_v3  ;;  %v7726_v3 = vld [vmem:[%s10804_s10 + $0x20] ss:$16 sps:$4 sm:$0xff]  }
 0x2e5   :  { %3364 = vmatpush1.bf16.msra.mxu1 %v7675_v5  ;;  %v7734_v5 = vld [vmem:[%s10804_s10 + $0x4] ss:$16 sps:$4 sm:$0xff]  }
 0x2e6   :  { %3365 = vmatprep.subr.bf16.mxu1 %v7683_v7  ;;  %v7732_v7 = vld [vmem:[%s10804_s10] ss:$16 sps:$4 sm:$0xff]  }
 0x2e9   :  { %3366 = vmatpush1.bf16.msra.mxu1 %v7681_v12  ;;  %v7740_v12 = vld [vmem:[%s10804_s10 + $0x1e4] ss:$16 sps:$4 sm:$0xff]  }
 0x2ea   :  { %3367 = vmatprep.subr.bf16.mxu1 %v7689_v14  ;;  %v7738_v14 = vld [vmem:[%s10804_s10 + $0x1e0] ss:$16 sps:$4 sm:$0xff]  }
 0x2ed   :  { %3368 = vmatpush1.bf16.msra.mxu1 %v7687_v17  ;;  %v7746_v17 = vld [vmem:[%s10804_s10 + $0x1c4] ss:$16 sps:$4 sm:$0xff]  }
 0x2ee   :  { %4249 = vmatprep.subr.bf16.mxu1 %v7695_v11  ;;  %v7744_v11 = vld [vmem:[%s10804_s10 + $0x1c0] ss:$16 sps:$4 sm:$0xff]  }
 0x350   :  { %v3041_v21 = vpop.f32.mrf.mxu0 }
 0x351   :  { %v3042_v28 = vadd.f32 %v3041_v21, %v2680_v26  ;;  %v7747_v21 = vld [vmem:[%s10804_s10 + $0x3c0] ss:$16 sps:$4 sm:$0xff]   ;;  %v7758_v26 = vld [vmem:[%s10804_s10 + $0x184] ss:$16 sps:$4 sm:$0xff]  }
 0x352   :  { %v3043_v22 = vpop.f32.mrf.mxu0 }
 0x353   :  { %v3044_v30 = vadd.f32 %v3043_v22, %v2684_v27  ;;  %v7752_v22 = vld [vmem:[%s10804_s10 + $0x1a4] ss:$16 sps:$4 sm:$0xff]  }
 0x354   :  { %v3045_v23 = vpop.f32.mrf.mxu0  ;;  %v7761_v27 = vld [vmem:[%s10804_s10 + $0x384] ss:$16 sps:$4 sm:$0xff]  }
 0x355   :  { %v7755_v23 = vld [vmem:[%s10804_s10 + $0x3a4] ss:$16 sps:$4 sm:$0xff]  }
 0x356   :  { %v3046_v24 = vpop.f32.mrf.mxu0 }
 0x357   :  { %v7750_v24 = vld [vmem:[%s10804_s10 + $0x1a0] ss:$16 sps:$4 sm:$0xff]  }
 0x390   :  { %v3082_v29 = vpop.f32.mrf.mxu1 }
 0x391   :  { %v3083_v31 = vadd.f32 %v3082_v29, %v3042_v28  ;;  %v7756_v28 = vld [vmem:[%s10804_s10 + $0x180] ss:$16 sps:$4 sm:$0xff]  }
 0x392   :  { %v3084_v52 = vpop.f32.mrf.mxu1  ;;  %v7759_v29 = vld [vmem:[%s10804_s10 + $0x380] ss:$16 sps:$4 sm:$0xff]  }
 0x393   :  { %3089 = vst [vmem:[%s10809_s15] sm:$0xff] %v3083_v31  ;;  %v3085_v19 = vadd.f32 %v3084_v52, %v3044_v30  ;;  %v7764_v30 = vld [vmem:[%s10804_s10 + $0x164] ss:$16 sps:$4 sm:$0xff]   ;;  %v7762_v52 = vld [vmem:[%s10804_s10 + $0x160] ss:$16 sps:$4 sm:$0xff]  }
 0x394   :  { %v3086_v20 = vpop.f32.mrf.mxu1 }
 0x395   :  { %3090 = vst [vmem:[%s10809_s15 + $0x8] sm:$0xff] %v3085_v19  ;;  %v3092_v33 = vmul.f32 0.5, %v3085_v19  ;;  %v7765_v19 = vld [vmem:[%s10804_s10 + $0x360] ss:$16 sps:$4 sm:$0xff]   ;;  %v7770_v20 = vld [vmem:[%s10804_s10 + $0x144] ss:$16 sps:$4 sm:$0xff]  }
 0x396   :  { %v3087_v34 = vpop.f32.mrf.mxu1 }
 0x397   :  { %v3093_v35 = vmul.f32 1.442695, %v3092_v33  ;;  %v7773_v33 = vld [vmem:[%s10804_s10 + $0x344] ss:$16 sps:$4 sm:$0xff]   ;;  %v7768_v34 = vld [vmem:[%s10804_s10 + $0x140] ss:$16 sps:$4 sm:$0xff]  }
 0x399   :  { %8218 = vpow2.f32 %v3093_v35  ;;  %v7771_v35 = vld [vmem:[%s10804_s10 + $0x340] ss:$16 sps:$4 sm:$0xff]  }
 0x3a6   :  { %v8219_v37 = vpop.eup %8218 }
 0x3a7   :  { %v3095_v38 = vmul.f32 %v8219_v37, %v3091_v8  ;;  %v7776_v8 = vld [vmem:[%s10804_s10 + $0x124] ss:$16 sps:$4 sm:$0xff]  }
 0x3a8   :  { %v7779_v37 = vld [vmem:[%s10804_s10 + $0x324] ss:$16 sps:$4 sm:$0xff]  }
 0x3a9   :  { %v3096_v39 = vadd.f32 %v3095_v38, %v3083_v31  ;;  %v7767_v31 = vld [vmem:[%s10804_s10 + $0x364] ss:$16 sps:$4 sm:$0xff]   ;;  %v7774_v38 = vld [vmem:[%s10804_s10 + $0x120] ss:$16 sps:$4 sm:$0xff]  }
 0x3ab   :  { %v3097_v45 = vpack.c.bf16 %v3096_v39, %v3096_v39  ;;  %v7777_v39 = vld [vmem:[%s10804_s10 + $0x320] ss:$16 sps:$4 sm:$0xff]  }
 0x3ad   :  { %3345 = vmatmul.mubr.bf16.vlgmr.msra.gmra.mxu0 %v3097_v45  ;;  %3386 = vmatmul.mubr.bf16.vlgmr.msra.gmra.mxu1 %v3097_v45  ;;  %v7780_v45 = vld [vmem:[%s10804_s10 + $0x100] ss:$16 sps:$4 sm:$0xff]  }
 0x3ae   :  { %4209 = vmatpush1.bf16.msra.mxu0 %v7690_v43  ;;  %4250 = vmatpush1.bf16.msra.mxu1 %v7693_v44  ;;  %v7782_v43 = vld [vmem:[%s10804_s10 + $0x104] ss:$16 sps:$4 sm:$0xff]  }
 0x3af   :  { %4210 = vmatprep.subr.bf16.mxu0 %v7698_v40  ;;  %4251 = vmatprep.subr.bf16.mxu1 %v7701_v46  ;;  %v7785_v44 = vld [vmem:[%s10804_s10 + $0x304] ss:$16 sps:$4 sm:$0xff]   ;;  %v7783_v40 = vld [vmem:[%s10804_s10 + $0x300] ss:$16 sps:$4 sm:$0xff]   ;;  %v7788_v46 = vld [vmem:[%s10804_s10 + $0xec] ss:$16 sps:$4 sm:$0xff]  }
 0x3b2   :  { %4211 = vmatpush1.bf16.msra.mxu0 %v7696_v47  ;;  %4252 = vmatpush1.bf16.msra.mxu1 %v7699_v48  ;;  %v7791_v47 = vld [vmem:[%s10804_s10 + $0x2ec] ss:$16 sps:$4 sm:$0xff]   ;;  %v3130_v48 = vld [vmem:[%s10803_s9] sm:$0xf] }
 0x3b3   :  { %4212 = vmatprep.subr.bf16.mxu0 %v7704_v49  ;;  %4253 = vmatprep.subr.bf16.mxu1 %v7707_v50  ;;  %v3135_v49 = vrot.slane %v3130_v48, %v9229_v41  ;;  %v3143_v50 = vrot.slane %v3130_v48, %v9300_v9 }
 0x3b6   :  { %4213 = vmatpush1.bf16.msra.mxu0 %v7702_v51  ;;  %4254 = vmatpush1.bf16.msra.mxu1 %v7705_v53 }
 0x3b7   :  { %4214 = vmatprep.subr.bf16.mxu0 %v7710_v54  ;;  %4255 = vmatprep.subr.bf16.mxu1 %v7713_v55  ;;  %v3139_v54 = vrot.slane %v3130_v48, %v9232_v42  ;;  %v3147_v55 = vrot.slane %v3130_v48, %v9306_v32  ;;  %v7824_v48 = vld [vmem:[%s10804_s10 + $0x2c] ss:$16 sps:$4 sm:$0xff]  }
 0x3ba   :  { %4215 = vmatpush1.bf16.msra.mxu0 %v7708_v56  ;;  %4256 = vmatpush1.bf16.msra.mxu1 %v7711_v57 }
 0x3bb   :  { %4216 = vmatprep.subr.bf16.mxu0 %v7716_v16  ;;  %4257 = vmatprep.subr.bf16.mxu1 %v7719_v58 }
 0x3be   :  { %4217 = vmatpush1.bf16.msra.mxu0 %v7714_v59  ;;  %4258 = vmatpush1.bf16.msra.mxu1 %v7717_v60 }
 0x3bf   :  { %4218 = vmatprep.subr.bf16.mxu0 %v7722_v61  ;;  %4259 = vmatprep.subr.bf16.mxu1 %v7725_v62 }
 0x3c2   :  { %4219 = vmatpush1.bf16.msra.mxu0 %v7720_v63  ;;  %4260 = vmatpush1.bf16.msra.mxu1 %v7723_v0 }
 0x3c3   :  { %4220 = vmatprep.subr.bf16.mxu0 %v7728_v1  ;;  %4261 = vmatprep.subr.bf16.mxu1 %v7731_v2 }
 0x3c6   :  { %4221 = vmatpush1.bf16.msra.mxu0 %v7726_v3  ;;  %4262 = vmatpush1.bf16.msra.mxu1 %v7729_v4 }
 0x3c7   :  { %4222 = vmatprep.subr.bf16.mxu0 %v7734_v5  ;;  %4263 = vmatprep.subr.bf16.mxu1 %v7737_v6 }
 0x3ca   :  { %4223 = vmatpush1.bf16.msra.mxu0 %v7732_v7  ;;  %4264 = vmatpush1.bf16.msra.mxu1 %v7735_v10 }
 0x3cb   :  { %4224 = vmatprep.subr.bf16.mxu0 %v7740_v12  ;;  %4265 = vmatprep.subr.bf16.mxu1 %v7743_v13 }
 0x3ce   :  { %4225 = vmatpush2.bf16.msra.mxu0 %v7738_v14  ;;  %4266 = vmatpush2.bf16.msra.mxu1 %v7741_v15 }
 0x3cf   :  { %4226 = vmatprep.subr.bf16.mxu0 %v7746_v17  ;;  %4267 = vmatprep.subr.bf16.mxu1 %v7749_v18 }
 0x3d2   :  { %4227 = vmatpush2.bf16.msra.mxu0 %v7744_v11  ;;  %4268 = vmatpush2.bf16.msra.mxu1 %v7747_v21 }
 0x3d3   :  { %4228 = vmatprep.subr.bf16.mxu0 %v7752_v22  ;;  %4269 = vmatprep.subr.bf16.mxu1 %v7755_v23  ;;  %v7786_v23 = vld [vmem:[%s10804_s10 + $0xe8] ss:$16 sps:$4 sm:$0xff]  }
 0x3d6   :  { %4229 = vmatpush2.bf16.msra.mxu0 %v7750_v24  ;;  %4270 = vmatpush2.bf16.msra.mxu1 %v7753_v25 }
 0x3d7   :  { %4230 = vmatprep.subr.bf16.mxu0 %v7758_v26  ;;  %4271 = vmatprep.subr.bf16.mxu1 %v7761_v27  ;;  %v7789_v26 = vld [vmem:[%s10804_s10 + $0x2e8] ss:$16 sps:$4 sm:$0xff]  }
 0x3da   :  { %4231 = vmatpush2.bf16.msra.mxu0 %v7756_v28  ;;  %4272 = vmatpush2.bf16.msra.mxu1 %v7759_v29  ;;  %v7794_v28 = vld [vmem:[%s10804_s10 + $0xcc] ss:$16 sps:$4 sm:$0xff]  }
 0x3db   :  { %4232 = vmatprep.subr.bf16.mxu0 %v7764_v30  ;;  %4273 = vmatprep.subr.bf16.mxu1 %v7767_v31  ;;  %v7797_v29 = vld [vmem:[%s10804_s10 + $0x2cc] ss:$16 sps:$4 sm:$0xff]   ;;  %v7792_v30 = vld [vmem:[%s10804_s10 + $0xc8] ss:$16 sps:$4 sm:$0xff]  }
 0x3dc   :  { %v7795_v31 = vld [vmem:[%s10804_s10 + $0x2c8] ss:$16 sps:$4 sm:$0xff]  }
 0x3de   :  { %4233 = vmatpush2.bf16.msra.mxu0 %v7762_v52  ;;  %4274 = vmatpush2.bf16.msra.mxu1 %v7765_v19  ;;  %v7800_v52 = vld [vmem:[%s10804_s10 + $0xac] ss:$16 sps:$4 sm:$0xff]  }
 0x3df   :  { %4234 = vmatprep.subr.bf16.mxu0 %v7770_v20  ;;  %4275 = vmatprep.subr.bf16.mxu1 %v7773_v33  ;;  %v7803_v19 = vld [vmem:[%s10804_s10 + $0x2ac] ss:$16 sps:$4 sm:$0xff]   ;;  %v7798_v20 = vld [vmem:[%s10804_s10 + $0xa8] ss:$16 sps:$4 sm:$0xff]  }
 0x3e0   :  { %v7801_v33 = vld [vmem:[%s10804_s10 + $0x2a8] ss:$16 sps:$4 sm:$0xff]  }
 0x3e2   :  { %4235 = vmatpush2.bf16.msra.mxu0 %v7768_v34  ;;  %4276 = vmatpush2.bf16.msra.mxu1 %v7771_v35  ;;  %v7806_v34 = vld [vmem:[%s10804_s10 + $0x8c] ss:$16 sps:$4 sm:$0xff]  }
 0x3e3   :  { %4236 = vmatprep.subr.bf16.mxu0 %v7776_v8  ;;  %4277 = vmatprep.subr.bf16.mxu1 %v7779_v37  ;;  %v7809_v35 = vld [vmem:[%s10804_s10 + $0x28c] ss:$16 sps:$4 sm:$0xff]   ;;  %v7804_v8 = vld [vmem:[%s10804_s10 + $0x88] ss:$16 sps:$4 sm:$0xff]  }
 0x3e4   :  { %v7807_v37 = vld [vmem:[%s10804_s10 + $0x288] ss:$16 sps:$4 sm:$0xff]  }
 0x3e6   :  { %4237 = vmatpush2.bf16.msra.mxu0 %v7774_v38  ;;  %4278 = vmatpush2.bf16.msra.mxu1 %v7777_v39  ;;  %v7812_v38 = vld [vmem:[%s10804_s10 + $0x6c] ss:$16 sps:$4 sm:$0xff]  }
 0x3e7   :  { %4238 = vmatprep.subr.bf16.mxu0 %v7782_v43  ;;  %4279 = vmatprep.subr.bf16.mxu1 %v7785_v44  ;;  %v7815_v39 = vld [vmem:[%s10804_s10 + $0x26c] ss:$16 sps:$4 sm:$0xff]   ;;  %v7810_v43 = vld [vmem:[%s10804_s10 + $0x68] ss:$16 sps:$4 sm:$0xff]  }
 0x3e8   :  { %v7813_v44 = vld [vmem:[%s10804_s10 + $0x268] ss:$16 sps:$4 sm:$0xff]  }
 0x3ea   :  { %4239 = vmatpush2.bf16.msra.mxu0 %v7780_v45  ;;  %4280 = vmatpush2.bf16.msra.mxu1 %v7783_v40  ;;  %v7818_v45 = vld [vmem:[%s10804_s10 + $0x4c] ss:$16 sps:$4 sm:$0xff]  }
 0x3eb   :  { %4290 = vmatprep.subr.bf16.mxu0 %v7788_v46  ;;  %4331 = vmatprep.subr.bf16.mxu1 %v7791_v47  ;;  %v7821_v40 = vld [vmem:[%s10804_s10 + $0x24c] ss:$16 sps:$4 sm:$0xff]   ;;  %v7816_v46 = vld [vmem:[%s10804_s10 + $0x48] ss:$16 sps:$4 sm:$0xff]  }
 0x3ec   :  { %v7819_v47 = vld [vmem:[%s10804_s10 + $0x248] ss:$16 sps:$4 sm:$0xff]  }
 0x46d   :  { %v3346_v51 = vpop.f32.mrf.mxu0  ;;  %v3387_v53 = vpop.f32.mrf.mxu1 }
 0x46e   :  { %v3347_v56 = vadd.f32 %v3346_v51, %v3135_v49  ;;  %v3388_v57 = vadd.f32 %v3387_v53, %v3143_v50  ;;  %v7827_v49 = vld [vmem:[%s10804_s10 + $0x22c] ss:$16 sps:$4 sm:$0xff]   ;;  %v7822_v50 = vld [vmem:[%s10804_s10 + $0x28] ss:$16 sps:$4 sm:$0xff]  }
 0x46f   :  { %v3348_v16 = vpop.f32.mrf.mxu0  ;;  %v3389_v58 = vpop.f32.mrf.mxu1  ;;  %v7825_v51 = vld [vmem:[%s10804_s10 + $0x228] ss:$16 sps:$4 sm:$0xff]   ;;  %v7830_v53 = vld [vmem:[%s10804_s10 + $0xc] ss:$16 sps:$4 sm:$0xff]  }
 0x470   :  { %v3398_v59 = vmul.f32 1.442695, %v3347_v56  ;;  %v3402_v60 = vmul.f32 1.442695, %v3388_v57  ;;  %v3349_v61 = vadd.f32 %v3348_v16, %v3139_v54  ;;  %v3390_v62 = vadd.f32 %v3389_v58, %v3147_v55  ;;  %v7833_v54 = vld [vmem:[%s10804_s10 + $0x20c] ss:$16 sps:$4 sm:$0xff]  }
 0x471   :  { %v3350_v63 = vpop.f32.mrf.mxu0  ;;  %v3391_v0 = vpop.f32.mrf.mxu1  ;;  %vm3394_vm9 = vcmp.gt.f32.partialorder %v3347_v56, 0.0  ;;  %vm3396_vm10 = vcmp.gt.f32.partialorder %v3388_v57, 0.0  ;;  %v7828_v55 = vld [vmem:[%s10804_s10 + $0x8] ss:$16 sps:$4 sm:$0xff]   ;;  %v7839_v16 = vld [vmem:[%s10804_s10 + $0x3ec] ss:$16 sps:$4 sm:$0xff]  }
 0x472   :  { %8220 = vpow2.f32 %v3398_v59  ;;  %v3400_v1 = vmul.f32 1.442695, %v3349_v61  ;;  %v3404_v4 = vmul.f32 1.442695, %v3390_v62  ;;  %vm3395_vm11 = vcmp.gt.f32.partialorder %v3349_v61, 0.0 }
 0x473   :  { %8222 = vpow2.f32 %v3402_v60  ;;  %v3351_v2 = vpop.f32.mrf.mxu0  ;;  %v3392_v3 = vpop.f32.mrf.mxu1  ;;  %vm3397_vm12 = vcmp.gt.f32.partialorder %v3390_v62, 0.0  ;;  %v7834_v58 = vld [vmem:[%s10804_s10 + $0x1e8] ss:$16 sps:$4 sm:$0xff]   ;;  %v7842_v60 = vld [vmem:[%s10804_s10 + $0x1cc] ss:$16 sps:$4 sm:$0xff]  }
 0x474   :  { %8224 = vpow2.f32 %v3400_v1  ;;  %v7837_v59 = vld [vmem:[%s10804_s10 + $0x3e8] ss:$16 sps:$4 sm:$0xff]   ;;  %v7848_v0 = vld [vmem:[%s10804_s10 + $0x1ac] ss:$16 sps:$4 sm:$0xff]  }
 0x475   :  { %8226 = vpow2.f32 %v3404_v4  ;;  %v7843_v63 = vld [vmem:[%s10804_s10 + $0x3c8] ss:$16 sps:$4 sm:$0xff]   ;;  %v7851_v1 = vld [vmem:[%s10804_s10 + $0x3ac] ss:$16 sps:$4 sm:$0xff]  }
 0x476   :  { %v7846_v2 = vld [vmem:[%s10804_s10 + $0x1a8] ss:$16 sps:$4 sm:$0xff]   ;;  %v7854_v4 = vld [vmem:[%s10804_s10 + $0x18c] ss:$16 sps:$4 sm:$0xff]  }
 0x477   :  { %v7849_v3 = vld [vmem:[%s10804_s10 + $0x3a8] ss:$16 sps:$4 sm:$0xff]  }
 0x47f   :  { %v8221_v5 = vpop.eup %8220 }
 0x480   :  { %v8223_v6 = vpop.eup %8222  ;;  %v6651_v7 = vadd.f32 -1.0, %v8221_v5  ;;  %v7857_v5 = vld [vmem:[%s10804_s10 + $0x38c] ss:$16 sps:$4 sm:$0xff]  }
 0x481   :  { %v6653_v10 = vadd.f32 -1.0, %v8223_v6  ;;  %v8225_v12 = vpop.eup %8224  ;;  %v7852_v6 = vld [vmem:[%s10804_s10 + $0x188] ss:$16 sps:$4 sm:$0xff]  }
 0x482   :  { %v8227_v13 = vpop.eup %8226  ;;  %v6652_v14 = vadd.f32 -1.0, %v8225_v12  ;;  %v3410_v15 = vsel %vm3394_vm9, %v3347_v56, %v6651_v7  ;;  %v7831_v56 = vld [vmem:[%s10804_s10 + $0x208] ss:$16 sps:$4 sm:$0xff]   ;;  %v7863_v12 = vld [vmem:[%s10804_s10 + $0x36c] ss:$16 sps:$4 sm:$0xff]  }
 0x483   :  { %v6654_v17 = vadd.f32 -1.0, %v8227_v13  ;;  %v3412_v18 = vsel %vm3396_vm10, %v3388_v57, %v6653_v10  ;;  %v9871_v24 = vpack.c.bf16 %v3410_v15, %v3410_v15  ;;  %v7836_v57 = vld [vmem:[%s10804_s10 + $0x1ec] ss:$16 sps:$4 sm:$0xff]   ;;  %v7855_v7 = vld [vmem:[%s10804_s10 + $0x388] ss:$16 sps:$4 sm:$0xff]  }
 0x484   :  { %v3411_v11 = vsel %vm3395_vm11, %v3349_v61, %v6652_v14  ;;  %v9876_v27 = vpack.c.bf16 %v3412_v18, %v3412_v18  ;;  %v7845_v61 = vld [vmem:[%s10804_s10 + $0x3cc] ss:$16 sps:$4 sm:$0xff]   ;;  %v7858_v13 = vld [vmem:[%s10804_s10 + $0x168] ss:$16 sps:$4 sm:$0xff]  }
 0x485   :  { %v3415_v21 = vpack.c.bf16 %v3411_v11, %v3411_v11  ;;  %v3413_v22 = vsel %vm3397_vm12, %v3390_v62, %v6654_v17  ;;  %v7840_v62 = vld [vmem:[%s10804_s10 + $0x1c8] ss:$16 sps:$4 sm:$0xff]   ;;  %v7860_v10 = vld [vmem:[%s10804_s10 + $0x16c] ss:$16 sps:$4 sm:$0xff]  }
 0x486   :  { %v3417_v25 = vpack.c.bf16 %v3413_v22, %v3413_v22  ;;  %v7861_v14 = vld [vmem:[%s10804_s10 + $0x368] ss:$16 sps:$4 sm:$0xff]   ;;  %v7866_v15 = vld [vmem:[%s10804_s10 + $0x14c] ss:$16 sps:$4 sm:$0xff]  }
 0x487   :  { %4240 = vmatprep.mubr.bf16.mxu0 %v3415_v21  ;;  %v7869_v17 = vld [vmem:[%s10804_s10 + $0x34c] ss:$16 sps:$4 sm:$0xff]   ;;  %v7864_v18 = vld [vmem:[%s10804_s10 + $0x148] ss:$16 sps:$4 sm:$0xff]  }
 0x488   :  { %4281 = vmatprep.mubr.bf16.mxu1 %v3417_v25  ;;  %4241 = vmatmul.mubr.bf16.vlgmr.msra.gmra.mxu0 %v9871_v24  ;;  %v7867_v11 = vld [vmem:[%s10804_s10 + $0x348] ss:$16 sps:$4 sm:$0xff]   ;;  %v7875_v22 = vld [vmem:[%s10804_s10 + $0x32c] ss:$16 sps:$4 sm:$0xff]  }
 0x489   :  { %4282 = vmatmul.mubr.bf16.vlgmr.msra.gmra.mxu1 %v9876_v27  ;;  %4291 = vmatpush1.bf16.msra.mxu0 %v7786_v23  ;;  %v7870_v23 = vld [vmem:[%s10804_s10 + $0x128] ss:$16 sps:$4 sm:$0xff]  }
 0x48a   :  { %4332 = vmatpush1.bf16.msra.mxu1 %v7789_v26  ;;  %4322 = vmatprep.mubr.bf16.mxu0 %v3415_v21  ;;  %v7872_v21 = vld [vmem:[%s10804_s10 + $0x12c] ss:$16 sps:$4 sm:$0xff]  }
 0x48b   :  { %4363 = vmatprep.mubr.bf16.mxu1 %v3417_v25  ;;  %4292 = vmatprep.subr.bf16.mxu0 %v7794_v28  ;;  %v7873_v25 = vld [vmem:[%s10804_s10 + $0x328] ss:$16 sps:$4 sm:$0xff]   ;;  %v7878_v26 = vld [vmem:[%s10804_s10 + $0x10c] ss:$16 sps:$4 sm:$0xff]  }
 0x48c   :  { %4333 = vmatprep.subr.bf16.mxu1 %v7797_v29  ;;  %v7881_v28 = vld [vmem:[%s10804_s10 + $0x30c] ss:$16 sps:$4 sm:$0xff]   ;;  %v7876_v29 = vld [vmem:[%s10804_s10 + $0x108] ss:$16 sps:$4 sm:$0xff]  }
 0x48d   :  { %4293 = vmatpush1.bf16.msra.mxu0 %v7792_v30  ;;  %v7879_v30 = vld [vmem:[%s10804_s10 + $0x308] ss:$16 sps:$4 sm:$0xff]  }
 0x48e   :  { %4334 = vmatpush1.bf16.msra.mxu1 %v7795_v31  ;;  %4294 = vmatprep.subr.bf16.mxu0 %v7800_v52  ;;  %v7884_v31 = vld [vmem:[%s10806_s12 + $0x18c] ss:$28 sps:$4 sm:$0xff]  }
 0x48f   :  { %4335 = vmatprep.subr.bf16.mxu1 %v7803_v19  ;;  %v7882_v52 = vld [vmem:[%s10806_s12 + $0x188] ss:$28 sps:$4 sm:$0xff]   ;;  %v7887_v19 = vld [vmem:[%s10806_s12 + $0x154] ss:$28 sps:$4 sm:$0xff]  }
 0x491   :  { %4295 = vmatpush1.bf16.msra.mxu0 %v7798_v20  ;;  %v7885_v20 = vld [vmem:[%s10806_s12 + $0x150] ss:$28 sps:$4 sm:$0xff]  }
 0x492   :  { %4336 = vmatpush1.bf16.msra.mxu1 %v7801_v33  ;;  %4296 = vmatprep.subr.bf16.mxu0 %v7806_v34  ;;  %v7890_v33 = vld [vmem:[%s10806_s12 + $0x11c] ss:$28 sps:$4 sm:$0xff]  }
 0x493   :  { %4337 = vmatprep.subr.bf16.mxu1 %v7809_v35  ;;  %v7888_v34 = vld [vmem:[%s10806_s12 + $0x118] ss:$28 sps:$4 sm:$0xff]   ;;  %v7896_v35 = vld [vmem:[%s10806_s12 + $0xac] ss:$28 sps:$4 sm:$0xff]  }
 0x495   :  { %4297 = vmatpush1.bf16.msra.mxu0 %v7804_v8  ;;  %v7894_v8 = vld [vmem:[%s10806_s12 + $0xa8] ss:$28 sps:$4 sm:$0xff]  }
 0x496   :  { %4338 = vmatpush1.bf16.msra.mxu1 %v7807_v37  ;;  %4298 = vmatprep.subr.bf16.mxu0 %v7812_v38  ;;  %v7899_v37 = vld [vmem:[%s10806_s12 + $0x74] ss:$28 sps:$4 sm:$0xff]  }
 0x497   :  { %4339 = vmatprep.subr.bf16.mxu1 %v7815_v39  ;;  %v7897_v38 = vld [vmem:[%s10806_s12 + $0x70] ss:$28 sps:$4 sm:$0xff]   ;;  %v7902_v39 = vld [vmem:[%s10806_s12 + $0x3c] ss:$28 sps:$4 sm:$0xff]  }
 0x499   :  { %4299 = vmatpush1.bf16.msra.mxu0 %v7810_v43  ;;  %v7900_v43 = vld [vmem:[%s10806_s12 + $0x38] ss:$28 sps:$4 sm:$0xff]  }
 0x49a   :  { %4340 = vmatpush1.bf16.msra.mxu1 %v7813_v44  ;;  %4300 = vmatprep.subr.bf16.mxu0 %v7818_v45  ;;  %v7905_v44 = vld [vmem:[%s10806_s12 + $0x4] ss:$28 sps:$4 sm:$0xff]  }
 0x49b   :  { %4341 = vmatprep.subr.bf16.mxu1 %v7821_v40  ;;  %v7903_v45 = vld [vmem:[%s10806_s12] ss:$28 sps:$4 sm:$0xff]   ;;  %v7908_v40 = vld [vmem:[%s10806_s12 + $0x34c] ss:$28 sps:$4 sm:$0xff]  }
 0x49d   :  { %4301 = vmatpush1.bf16.msra.mxu0 %v7816_v46  ;;  %v7930_v46 = vld [vmem:[%s10806_s12 + $0x508] ss:$28 sps:$4 sm:$0xff]  }
 0x49e   :  { %4342 = vmatpush1.bf16.msra.mxu1 %v7819_v47  ;;  %4302 = vmatprep.subr.bf16.mxu0 %v7824_v48  ;;  %v7932_v47 = vld [vmem:[%s10806_s12 + $0x50c] ss:$28 sps:$4 sm:$0xff]  }
 0x49f   :  { %4343 = vmatprep.subr.bf16.mxu1 %v7827_v49  ;;  %v7906_v48 = vld [vmem:[%s10806_s12 + $0x348] ss:$28 sps:$4 sm:$0xff]   ;;  %v7911_v49 = vld [vmem:[%s10806_s12 + $0x314] ss:$28 sps:$4 sm:$0xff]  }
 0x4a1   :  { %4303 = vmatpush1.bf16.msra.mxu0 %v7822_v50  ;;  %v7936_v50 = vld [vmem:[%s10806_s12 + $0x4d0] ss:$28 sps:$4 sm:$0xff]  }
 0x4a2   :  { %4344 = vmatpush1.bf16.msra.mxu1 %v7825_v51  ;;  %4304 = vmatprep.subr.bf16.mxu0 %v7830_v53  ;;  %v7938_v51 = vld [vmem:[%s10806_s12 + $0x4d4] ss:$28 sps:$4 sm:$0xff]  }
 0x4a3   :  { %4345 = vmatprep.subr.bf16.mxu1 %v7833_v54  ;;  %v7909_v53 = vld [vmem:[%s10806_s12 + $0x310] ss:$28 sps:$4 sm:$0xff]   ;;  %v7914_v54 = vld [vmem:[%s10806_s12 + $0x2dc] ss:$28 sps:$4 sm:$0xff]  }
 0x4a5   :  { %4305 = vmatpush1.bf16.msra.mxu0 %v7828_v55  ;;  %v7942_v55 = vld [vmem:[%s10806_s12 + $0x498] ss:$28 sps:$4 sm:$0xff]  }
 0x4a6   :  { %4346 = vmatpush1.bf16.msra.mxu1 %v7831_v56  ;;  %4306 = vmatprep.subr.bf16.mxu0 %v7836_v57  ;;  %v7944_v56 = vld [vmem:[%s10806_s12 + $0x49c] ss:$28 sps:$4 sm:$0xff]  }
 0x4a7   :  { %4347 = vmatprep.subr.bf16.mxu1 %v7839_v16  ;;  %v7912_v57 = vld [vmem:[%s10806_s12 + $0x2d8] ss:$28 sps:$4 sm:$0xff]   ;;  %v7917_v16 = vld [vmem:[%s10806_s12 + $0x2a4] ss:$28 sps:$4 sm:$0xff]  }
 0x4a9   :  { %4307 = vmatpush2.bf16.msra.mxu0 %v7834_v58  ;;  %v7948_v58 = vld [vmem:[%s10806_s12 + $0x460] ss:$28 sps:$4 sm:$0xff]  }
 0x4aa   :  { %4348 = vmatpush2.bf16.msra.mxu1 %v7837_v59  ;;  %4308 = vmatprep.subr.bf16.mxu0 %v7842_v60  ;;  %v7950_v59 = vld [vmem:[%s10806_s12 + $0x464] ss:$28 sps:$4 sm:$0xff]  }
 0x4ab   :  { %4349 = vmatprep.subr.bf16.mxu1 %v7845_v61  ;;  %v7915_v60 = vld [vmem:[%s10806_s12 + $0x2a0] ss:$28 sps:$4 sm:$0xff]   ;;  %v7920_v61 = vld [vmem:[%s10806_s12 + $0x26c] ss:$28 sps:$4 sm:$0xff]  }
 0x4ad   :  { %4309 = vmatpush2.bf16.msra.mxu0 %v7840_v62  ;;  %v7954_v62 = vld [vmem:[%s10806_s12 + $0x428] ss:$28 sps:$4 sm:$0xff]  }
 0x4ae   :  { %4350 = vmatpush2.bf16.msra.mxu1 %v7843_v63  ;;  %4310 = vmatprep.subr.bf16.mxu0 %v7848_v0  ;;  %v7956_v63 = vld [vmem:[%s10806_s12 + $0x42c] ss:$28 sps:$4 sm:$0xff]  }
 0x4af   :  { %4351 = vmatprep.subr.bf16.mxu1 %v7851_v1  ;;  %v7918_v0 = vld [vmem:[%s10806_s12 + $0x268] ss:$28 sps:$4 sm:$0xff]   ;;  %v7923_v1 = vld [vmem:[%s10806_s12 + $0x234] ss:$28 sps:$4 sm:$0xff]  }
 0x4b1   :  { %4311 = vmatpush2.bf16.msra.mxu0 %v7846_v2  ;;  %v7960_v2 = vld [vmem:[%s10806_s12 + $0x3f0] ss:$28 sps:$4 sm:$0xff]  }
 0x4b2   :  { %4352 = vmatpush2.bf16.msra.mxu1 %v7849_v3  ;;  %4312 = vmatprep.subr.bf16.mxu0 %v7854_v4  ;;  %v7962_v3 = vld [vmem:[%s10806_s12 + $0x3f4] ss:$28 sps:$4 sm:$0xff]  }
 0x4b3   :  { %4353 = vmatprep.subr.bf16.mxu1 %v7857_v5  ;;  %v7921_v4 = vld [vmem:[%s10806_s12 + $0x230] ss:$28 sps:$4 sm:$0xff]   ;;  %v7926_v5 = vld [vmem:[%s10806_s12 + $0x1fc] ss:$28 sps:$4 sm:$0xff]  }
 0x4b5   :  { %4313 = vmatpush2.bf16.msra.mxu0 %v7852_v6  ;;  %v7966_v6 = vld [vmem:[%s10806_s12 + $0x3b8] ss:$28 sps:$4 sm:$0xff]  }
 0x4b6   :  { %4354 = vmatpush2.bf16.msra.mxu1 %v7855_v7  ;;  %4314 = vmatprep.subr.bf16.mxu0 %v7860_v10  ;;  %v7968_v7 = vld [vmem:[%s10806_s12 + $0x3bc] ss:$28 sps:$4 sm:$0xff]  }
 0x4b7   :  { %4355 = vmatprep.subr.bf16.mxu1 %v7863_v12  ;;  %v7924_v10 = vld [vmem:[%s10806_s12 + $0x1f8] ss:$28 sps:$4 sm:$0xff]   ;;  %v7929_v12 = vld [vmem:[%s10806_s12 + $0x1c4] ss:$28 sps:$4 sm:$0xff]  }
 0x4b9   :  { %4315 = vmatpush2.bf16.msra.mxu0 %v7858_v13  ;;  %v7972_v13 = vld [vmem:[%s10806_s12 + $0x380] ss:$28 sps:$4 sm:$0xff]  }
 0x4ba   :  { %4356 = vmatpush2.bf16.msra.mxu1 %v7861_v14  ;;  %4316 = vmatprep.subr.bf16.mxu0 %v7866_v15  ;;  %v7974_v14 = vld [vmem:[%s10806_s12 + $0x384] ss:$28 sps:$4 sm:$0xff]  }
 0x4bb   :  { %4357 = vmatprep.subr.bf16.mxu1 %v7869_v17  ;;  %v7927_v15 = vld [vmem:[%s10806_s12 + $0x1c0] ss:$28 sps:$4 sm:$0xff]   ;;  %v7935_v17 = vld [vmem:[%s10806_s12 + $0x194] ss:$28 sps:$4 sm:$0xff]  }
 0x4bd   :  { %4317 = vmatpush2.bf16.msra.mxu0 %v7864_v18  ;;  %v7978_v18 = vld [vmem:[%s10806_s12 + $0x6c8] ss:$28 sps:$4 sm:$0xff]  }
 0x4be   :  { %4358 = vmatpush2.bf16.msra.mxu1 %v7867_v11  ;;  %4318 = vmatprep.subr.bf16.mxu0 %v7872_v21  ;;  %v7980_v11 = vld [vmem:[%s10806_s12 + $0x6cc] ss:$28 sps:$4 sm:$0xff]   ;;  %v7986_v21 = vld [vmem:[%s10806_s12 + $0x694] ss:$28 sps:$4 sm:$0xff]  }
 0x4bf   :  { %4359 = vmatprep.subr.bf16.mxu1 %v7875_v22  ;;  %v7984_v22 = vld [vmem:[%s10806_s12 + $0x690] ss:$28 sps:$4 sm:$0xff]  }
 0x4c1   :  { %4319 = vmatpush2.bf16.msra.mxu0 %v7870_v23  ;;  %v7992_v23 = vld [vmem:[%s10806_s12 + $0x65c] ss:$28 sps:$4 sm:$0xff]  }
 0x4c2   :  { %4360 = vmatpush2.bf16.msra.mxu1 %v7873_v25  ;;  %4320 = vmatprep.subr.bf16.mxu0 %v7878_v26  ;;  %v7990_v25 = vld [vmem:[%s10806_s12 + $0x658] ss:$28 sps:$4 sm:$0xff]   ;;  %v7998_v26 = vld [vmem:[%s10806_s12 + $0x624] ss:$28 sps:$4 sm:$0xff]  }
 0x4c3   :  { %4361 = vmatprep.subr.bf16.mxu1 %v7881_v28  ;;  %v7996_v28 = vld [vmem:[%s10806_s12 + $0x620] ss:$28 sps:$4 sm:$0xff]  }
 0x4c5   :  { %4321 = vmatpush2.bf16.msra.mxu0 %v7876_v29  ;;  %v8004_v29 = vld [vmem:[%s10806_s12 + $0x5ec] ss:$28 sps:$4 sm:$0xff]  }
 0x4c6   :  { %4362 = vmatpush2.bf16.msra.mxu1 %v7879_v30  ;;  %5841 = vmatprep.subr.bf16.mxu0 %v7884_v31  ;;  %v8002_v30 = vld [vmem:[%s10806_s12 + $0x5e8] ss:$28 sps:$4 sm:$0xff]   ;;  %v8010_v31 = vld [vmem:[%s10806_s12 + $0x5b4] ss:$28 sps:$4 sm:$0xff]  }
 0x4c7   :  { %5882 = vmatprep.subr.bf16.mxu1 %v7932_v47 }
 0x4c8   :  { %4323 = vmatmul.mubr.bf16.vlgmr.msra.gmra.mxu0 %v9871_v24  ;;  %v7893_v24 = vld [vmem:[%s10806_s12 + $0xe4] ss:$28 sps:$4 sm:$0xff]  }
 0x4c9   :  { %4364 = vmatmul.mubr.bf16.vlgmr.msra.gmra.mxu1 %v9876_v27  ;;  %5842 = vmatpush1.bf16.msra.mxu0 %v7882_v52  ;;  %v7891_v27 = vld [vmem:[%s10806_s12 + $0xe0] ss:$28 sps:$4 sm:$0xff]   ;;  %v8008_v52 = vld [vmem:[%s10806_s12 + $0x5b0] ss:$28 sps:$4 sm:$0xff]  }
 0x4ca   :  { %5843 = vmatprep.subr.bf16.mxu0 %v7887_v19  ;;  %5883 = vmatpush1.bf16.msra.mxu1 %v7930_v46  ;;  %v8016_v19 = vld [vmem:[%s10806_s12 + $0x57c] ss:$28 sps:$4 sm:$0xff]  }
 0x4cb   :  { %5884 = vmatprep.subr.bf16.mxu1 %v7938_v51 }
 0x4cd   :  { %5844 = vmatpush1.bf16.msra.mxu0 %v7885_v20  ;;  %v8014_v20 = vld [vmem:[%s10806_s12 + $0x578] ss:$28 sps:$4 sm:$0xff]  }
 0x4ce   :  { %5845 = vmatprep.subr.bf16.mxu0 %v7890_v33  ;;  %5885 = vmatpush1.bf16.msra.mxu1 %v7936_v50  ;;  %v8022_v33 = vld [vmem:[%s10806_s12 + $0x544] ss:$28 sps:$4 sm:$0xff]  }
 0x4cf   :  { %5886 = vmatprep.subr.bf16.mxu1 %v7944_v56 }
 0x4d1   :  { %5846 = vmatpush1.bf16.msra.mxu0 %v7888_v34  ;;  %v8020_v34 = vld [vmem:[%s10806_s12 + $0x540] ss:$28 sps:$4 sm:$0xff]  }
 0x4d2   :  { %5847 = vmatprep.subr.bf16.mxu0 %v7893_v24  ;;  %5887 = vmatpush1.bf16.msra.mxu1 %v7942_v55  ;;  %v8028_v24 = vld [vmem:[%s10806_s12 + $0x514] ss:$28 sps:$4 sm:$0xff]  }
 0x4d3   :  { %5888 = vmatprep.subr.bf16.mxu1 %v7950_v59 }
 0x4d5   :  { %5848 = vmatpush1.bf16.msra.mxu0 %v7891_v27  ;;  %v10263_v27 = vld [vmem:[%s10805_s11] sm:$0xf] }
 0x4d6   :  { %5849 = vmatprep.subr.bf16.mxu0 %v7896_v35  ;;  %5889 = vmatpush1.bf16.msra.mxu1 %v7948_v58  ;;  %v3551_v35 = vrot.slane %v10263_v27, %v9229_v41 }
 0x4d7   :  { %5890 = vmatprep.subr.bf16.mxu1 %v7956_v63  ;;  %v7939_v63 = vld [vmem:[%s10806_s12 + $0x158] ss:$28 sps:$4 sm:$0xff]  }
 0x4d9   :  { %5850 = vmatpush1.bf16.msra.mxu0 %v7894_v8  ;;  %v3555_v8 = vrot.slane %v10263_v27, %v9232_v42 }
 0x4da   :  { %5851 = vmatprep.subr.bf16.mxu0 %v7899_v37  ;;  %5891 = vmatpush1.bf16.msra.mxu1 %v7954_v62  ;;  %v7941_v62 = vld [vmem:[%s10806_s12 + $0x15c] ss:$28 sps:$4 sm:$0xff]  }
 0x4db   :  { %5892 = vmatprep.subr.bf16.mxu1 %v7962_v3  ;;  %v7951_v3 = vld [vmem:[%s10806_s12 + $0xe8] ss:$28 sps:$4 sm:$0xff]  }
 0x4dd   :  { %5852 = vmatpush1.bf16.msra.mxu0 %v7897_v38 }
 0x4de   :  { %5853 = vmatprep.subr.bf16.mxu0 %v7902_v39  ;;  %5893 = vmatpush1.bf16.msra.mxu1 %v7960_v2  ;;  %v7953_v2 = vld [vmem:[%s10806_s12 + $0xec] ss:$28 sps:$4 sm:$0xff]  }
 0x4df   :  { %5894 = vmatprep.subr.bf16.mxu1 %v7968_v7  ;;  %v7963_v7 = vld [vmem:[%s10806_s12 + $0x78] ss:$28 sps:$4 sm:$0xff]  }
 0x4e1   :  { %5854 = vmatpush1.bf16.msra.mxu0 %v7900_v43 }
 0x4e2   :  { %5855 = vmatprep.subr.bf16.mxu0 %v7905_v44  ;;  %5895 = vmatpush1.bf16.msra.mxu1 %v7966_v6  ;;  %v7965_v6 = vld [vmem:[%s10806_s12 + $0x7c] ss:$28 sps:$4 sm:$0xff]  }
 0x4e3   :  { %5896 = vmatprep.subr.bf16.mxu1 %v7974_v14  ;;  %v7975_v14 = vld [vmem:[%s10806_s12 + $0x8] ss:$28 sps:$4 sm:$0xff]  }
 0x4e5   :  { %5856 = vmatpush1.bf16.msra.mxu0 %v7903_v45 }
 0x4e6   :  { %5857 = vmatprep.subr.bf16.mxu0 %v7908_v40  ;;  %5897 = vmatpush1.bf16.msra.mxu1 %v7972_v13  ;;  %v7977_v13 = vld [vmem:[%s10806_s12 + $0xc] ss:$28 sps:$4 sm:$0xff]  }
 0x4e7   :  { %5898 = vmatprep.subr.bf16.mxu1 %v7980_v11  ;;  %v3559_v11 = vrot.slane %v10263_v27, %v9300_v9 }
 0x4e9   :  { %5858 = vmatpush2.bf16.msra.mxu0 %v7906_v48 }
 0x4ea   :  { %5859 = vmatprep.subr.bf16.mxu0 %v7911_v49  ;;  %5899 = vmatpush2.bf16.msra.mxu1 %v7978_v18  ;;  %v7989_v18 = vld [vmem:[%s10806_s12 + $0x31c] ss:$28 sps:$4 sm:$0xff]  }
 0x4eb   :  { %5900 = vmatprep.subr.bf16.mxu1 %v7986_v21  ;;  %v7987_v21 = vld [vmem:[%s10806_s12 + $0x318] ss:$28 sps:$4 sm:$0xff]  }
 0x4ed   :  { %5860 = vmatpush2.bf16.msra.mxu0 %v7909_v53 }
 0x4ee   :  { %5861 = vmatprep.subr.bf16.mxu0 %v7914_v54  ;;  %5901 = vmatpush2.bf16.msra.mxu1 %v7984_v22  ;;  %v3563_v22 = vrot.slane %v10263_v27, %v9306_v32 }
 0x4ef   :  { %5902 = vmatprep.subr.bf16.mxu1 %v7992_v23  ;;  %v7995_v23 = vld [vmem:[%s10806_s12 + $0x2e4] ss:$28 sps:$4 sm:$0xff]  }
 0x4f1   :  { %5862 = vmatpush2.bf16.msra.mxu0 %v7912_v57 }
 0x4f2   :  { %5863 = vmatprep.subr.bf16.mxu0 %v7917_v16  ;;  %5903 = vmatpush2.bf16.msra.mxu1 %v7990_v25 }
 0x4f3   :  { %5904 = vmatprep.subr.bf16.mxu1 %v7998_v26 }
 0x4f5   :  { %5864 = vmatpush2.bf16.msra.mxu0 %v7915_v60  ;;  %v7933_v60 = vld [vmem:[%s10806_s12 + $0x190] ss:$28 sps:$4 sm:$0xff]  }
 0x4f6   :  { %5865 = vmatprep.subr.bf16.mxu0 %v7920_v61  ;;  %5905 = vmatpush2.bf16.msra.mxu1 %v7996_v28 }
 0x4f7   :  { %5906 = vmatprep.subr.bf16.mxu1 %v8004_v29 }
 0x4f9   :  { %5866 = vmatpush2.bf16.msra.mxu0 %v7918_v0  ;;  %v7947_v0 = vld [vmem:[%s10806_s12 + $0x124] ss:$28 sps:$4 sm:$0xff]  }
 0x4fa   :  { %5867 = vmatprep.subr.bf16.mxu0 %v7923_v1  ;;  %5907 = vmatpush2.bf16.msra.mxu1 %v8002_v30  ;;  %v7945_v1 = vld [vmem:[%s10806_s12 + $0x120] ss:$28 sps:$4 sm:$0xff]  }
 0x4fb   :  { %5908 = vmatprep.subr.bf16.mxu1 %v8010_v31  ;;  %v7993_v30 = vld [vmem:[%s10806_s12 + $0x2e0] ss:$28 sps:$4 sm:$0xff]  }
 0x4fd   :  { %5868 = vmatpush2.bf16.msra.mxu0 %v7921_v4  ;;  %v7959_v4 = vld [vmem:[%s10806_s12 + $0xb4] ss:$28 sps:$4 sm:$0xff]  }
 0x4fe   :  { %5869 = vmatprep.subr.bf16.mxu0 %v7926_v5  ;;  %5909 = vmatpush2.bf16.msra.mxu1 %v8008_v52  ;;  %v7957_v5 = vld [vmem:[%s10806_s12 + $0xb0] ss:$28 sps:$4 sm:$0xff]  }
 0x4ff   :  { %5910 = vmatprep.subr.bf16.mxu1 %v8016_v19 }
 0x501   :  { %5870 = vmatpush2.bf16.msra.mxu0 %v7924_v10  ;;  %v7971_v10 = vld [vmem:[%s10806_s12 + $0x44] ss:$28 sps:$4 sm:$0xff]  }
 0x502   :  { %5871 = vmatprep.subr.bf16.mxu0 %v7929_v12  ;;  %5911 = vmatpush2.bf16.msra.mxu1 %v8014_v20  ;;  %v7969_v12 = vld [vmem:[%s10806_s12 + $0x40] ss:$28 sps:$4 sm:$0xff]   ;;  %v8001_v20 = vld [vmem:[%s10806_s12 + $0x2ac] ss:$28 sps:$4 sm:$0xff]  }
 0x503   :  { %5912 = vmatprep.subr.bf16.mxu1 %v8022_v33 }
 0x505   :  { %5872 = vmatpush2.bf16.msra.mxu0 %v7927_v15  ;;  %v7983_v15 = vld [vmem:[%s10806_s12 + $0x354] ss:$28 sps:$4 sm:$0xff]  }
 0x506   :  { %5923 = vmatprep.subr.bf16.mxu0 %v7935_v17  ;;  %5913 = vmatpush2.bf16.msra.mxu1 %v8020_v34  ;;  %v7981_v17 = vld [vmem:[%s10806_s12 + $0x350] ss:$28 sps:$4 sm:$0xff]  }
 0x507   :  { %5964 = vmatprep.subr.bf16.mxu1 %v8028_v24 }
 0x548   :  { %v4242_v37 = vpop.f32.mrf.mxu0 }
 0x549   :  { %v4243_v38 = vadd.f32 %v4242_v37, %v3551_v35  ;;  %v4283_v39 = vpop.f32.mrf.mxu1 }
 0x54a   :  { %v4244_v43 = vpop.f32.mrf.mxu0 }
 0x54b   :  { %v4284_v44 = vadd.f32 %v4283_v39, %v4243_v38  ;;  %v4245_v45 = vadd.f32 %v4244_v43, %v3555_v8  ;;  %v4285_v40 = vpop.f32.mrf.mxu1  ;;  %v7999_v8 = vld [vmem:[%s10806_s12 + $0x2a8] ss:$28 sps:$4 sm:$0xff]   ;;  %v8007_v39 = vld [vmem:[%s10806_s12 + $0x274] ss:$28 sps:$4 sm:$0xff]  }
 0x54c   :  { %v4246_v46 = vpop.f32.mrf.mxu0  ;;  %v8005_v43 = vld [vmem:[%s10806_s12 + $0x270] ss:$28 sps:$4 sm:$0xff]  }
 0x54d   :  { %v4376_v47 = vmul.f32 1.442695, %v4284_v44  ;;  %v4286_v48 = vadd.f32 %v4285_v40, %v4245_v45  ;;  %v4287_v49 = vpop.f32.mrf.mxu1  ;;  %vm4372_vm13 = vcmp.gt.f32.partialorder %v4284_v44, 0.0  ;;  %v8011_v45 = vld [vmem:[%s10806_s12 + $0x238] ss:$28 sps:$4 sm:$0xff]  }
 0x54e   :  { %v4247_v50 = vpop.f32.mrf.mxu0  ;;  %v8019_v40 = vld [vmem:[%s10806_s12 + $0x204] ss:$28 sps:$4 sm:$0xff]  }
 0x54f   :  { %8228 = vpow2.f32 %v4376_v47  ;;  %v4378_v51 = vmul.f32 1.442695, %v4286_v48  ;;  %v4288_v53 = vpop.f32.mrf.mxu1  ;;  %vm4373_vm14 = vcmp.gt.f32.partialorder %v4286_v48, 0.0  ;;  %v8017_v46 = vld [vmem:[%s10806_s12 + $0x200] ss:$28 sps:$4 sm:$0xff]  }
 0x550   :  { %v8025_v47 = vld [vmem:[%s10806_s12 + $0x1cc] ss:$28 sps:$4 sm:$0xff]  }
 0x551   :  { %8230 = vpow2.f32 %v4378_v51  ;;  %v8023_v51 = vld [vmem:[%s10806_s12 + $0x1c8] ss:$28 sps:$4 sm:$0xff]  }
 0x55c   :  { %v8229_v54 = vpop.eup %8228 }
 0x55d   :  { %v6783_v55 = vadd.f32 -1.0, %v8229_v54  ;;  %v8031_v54 = vld [vmem:[%s10806_s12 + $0x19c] ss:$28 sps:$4 sm:$0xff]  }
 0x55e   :  { %v8231_v56 = vpop.eup %8230 }
 0x55f   :  { %v6784_v57 = vadd.f32 -1.0, %v8231_v56  ;;  %v4388_v16 = vsel %vm4372_vm13, %v4284_v44, %v6783_v55  ;;  %v8013_v44 = vld [vmem:[%s10806_s12 + $0x23c] ss:$28 sps:$4 sm:$0xff]  }
 0x560   :  { %v10274_v61 = vpack.c.bf16 %v4388_v16, %v4388_v16  ;;  %v8026_v16 = vld [vmem:[%s10806_s12 + $0x510] ss:$28 sps:$4 sm:$0xff]  }
 0x561   :  { %v4389_v58 = vsel %vm4373_vm14, %v4286_v48, %v6784_v57 }
 0x562   :  { %v10269_v59 = vpack.c.bf16 %v4389_v58, %v4389_v58 }
 0x564   :  { %5873 = vmatprep.mubr.bf16.mxu0 %v10269_v59 }
 0x565   :  { %5874 = vmatmul.mubr.bf16.vlgmr.msra.gmra.mxu0 %v10274_v61 }
 0x566   :  { %5924 = vmatpush1.bf16.msra.mxu0 %v7933_v60  ;;  %5955 = vmatprep.mubr.bf16.mxu0 %v10269_v59  ;;  %v8029_v60 = vld [vmem:[%s10806_s12 + $0x198] ss:$28 sps:$4 sm:$0xff]  }
 0x567   :  { %5925 = vmatprep.subr.bf16.mxu0 %v7941_v62  ;;  %v8034_v62 = vld [vmem:[%s10806_s12 + $0x4dc] ss:$28 sps:$4 sm:$0xff]  }
 0x56a   :  { %5926 = vmatpush1.bf16.msra.mxu0 %v7939_v63  ;;  %v8037_v63 = vld [vmem:[%s10806_s12 + $0x164] ss:$28 sps:$4 sm:$0xff]  }
 0x56b   :  { %5927 = vmatprep.subr.bf16.mxu0 %v7947_v0  ;;  %v8032_v0 = vld [vmem:[%s10806_s12 + $0x4d8] ss:$28 sps:$4 sm:$0xff]  }
 0x56e   :  { %5928 = vmatpush1.bf16.msra.mxu0 %v7945_v1  ;;  %v8035_v1 = vld [vmem:[%s10806_s12 + $0x160] ss:$28 sps:$4 sm:$0xff]  }
 0x56f   :  { %5929 = vmatprep.subr.bf16.mxu0 %v7953_v2  ;;  %v8040_v2 = vld [vmem:[%s10806_s12 + $0x4a4] ss:$28 sps:$4 sm:$0xff]  }
 0x572   :  { %5930 = vmatpush1.bf16.msra.mxu0 %v7951_v3  ;;  %v8043_v3 = vld [vmem:[%s10806_s12 + $0x12c] ss:$28 sps:$4 sm:$0xff]  }
 0x573   :  { %5931 = vmatprep.subr.bf16.mxu0 %v7959_v4  ;;  %v8038_v4 = vld [vmem:[%s10806_s12 + $0x4a0] ss:$28 sps:$4 sm:$0xff]  }
 0x576   :  { %5932 = vmatpush1.bf16.msra.mxu0 %v7957_v5  ;;  %v8041_v5 = vld [vmem:[%s10806_s12 + $0x128] ss:$28 sps:$4 sm:$0xff]  }
 0x577   :  { %5933 = vmatprep.subr.bf16.mxu0 %v7965_v6  ;;  %v8046_v6 = vld [vmem:[%s10806_s12 + $0x46c] ss:$28 sps:$4 sm:$0xff]  }
 0x57a   :  { %5934 = vmatpush1.bf16.msra.mxu0 %v7963_v7  ;;  %v8049_v7 = vld [vmem:[%s10806_s12 + $0xf4] ss:$28 sps:$4 sm:$0xff]  }
 0x57b   :  { %5935 = vmatprep.subr.bf16.mxu0 %v7971_v10  ;;  %v8044_v10 = vld [vmem:[%s10806_s12 + $0x468] ss:$28 sps:$4 sm:$0xff]  }
 0x57e   :  { %5936 = vmatpush1.bf16.msra.mxu0 %v7969_v12  ;;  %v8047_v12 = vld [vmem:[%s10806_s12 + $0xf0] ss:$28 sps:$4 sm:$0xff]  }
 0x57f   :  { %5937 = vmatprep.subr.bf16.mxu0 %v7977_v13  ;;  %v8052_v13 = vld [vmem:[%s10806_s12 + $0x434] ss:$28 sps:$4 sm:$0xff]  }
 0x582   :  { %5938 = vmatpush1.bf16.msra.mxu0 %v7975_v14  ;;  %v8055_v14 = vld [vmem:[%s10806_s12 + $0xbc] ss:$28 sps:$4 sm:$0xff]  }
 0x583   :  { %5939 = vmatprep.subr.bf16.mxu0 %v7983_v15  ;;  %v8050_v15 = vld [vmem:[%s10806_s12 + $0x430] ss:$28 sps:$4 sm:$0xff]  }
 0x586   :  { %5940 = vmatpush2.bf16.msra.mxu0 %v7981_v17  ;;  %v8053_v17 = vld [vmem:[%s10806_s12 + $0xb8] ss:$28 sps:$4 sm:$0xff]  }
 0x587   :  { %5941 = vmatprep.subr.bf16.mxu0 %v7989_v18  ;;  %v8058_v18 = vld [vmem:[%s10806_s12 + $0x3fc] ss:$28 sps:$4 sm:$0xff]  }
 0x588   :  { %v4324_v25 = vpop.f32.mrf.mxu0 }
 0x589   :  { %v4325_v26 = vadd.f32 %v4324_v25, %v3559_v11  ;;  %v4365_v28 = vpop.f32.mrf.mxu1  ;;  %v8061_v11 = vld [vmem:[%s10806_s12 + $0x84] ss:$28 sps:$4 sm:$0xff]   ;;  %v8067_v25 = vld [vmem:[%s10806_s12 + $0x4c] ss:$28 sps:$4 sm:$0xff]  }
 0x58a   :  { %v4326_v29 = vpop.f32.mrf.mxu0  ;;  %5942 = vmatpush2.bf16.msra.mxu0 %v7987_v21  ;;  %v8056_v21 = vld [vmem:[%s10806_s12 + $0x3f8] ss:$28 sps:$4 sm:$0xff]  }
 0x58b   :  { %v4366_v31 = vadd.f32 %v4365_v28, %v4325_v26  ;;  %v4327_v52 = vadd.f32 %v4326_v29, %v3563_v22  ;;  %v4367_v19 = vpop.f32.mrf.mxu1  ;;  %5943 = vmatprep.subr.bf16.mxu0 %v7995_v23  ;;  %v8059_v22 = vld [vmem:[%s10806_s12 + $0x80] ss:$28 sps:$4 sm:$0xff]   ;;  %v8065_v28 = vld [vmem:[%s10806_s12 + $0x48] ss:$28 sps:$4 sm:$0xff]  }
 0x58c   :  { %v4328_v33 = vpop.f32.mrf.mxu0  ;;  %v8064_v23 = vld [vmem:[%s10806_s12 + $0x3c4] ss:$28 sps:$4 sm:$0xff]   ;;  %v8070_v29 = vld [vmem:[%s10806_s12 + $0x38c] ss:$28 sps:$4 sm:$0xff]  }
 0x58d   :  { %v4380_v34 = vmul.f32 1.442695, %v4366_v31  ;;  %v4368_v24 = vadd.f32 %v4367_v19, %v4327_v52  ;;  %v4369_v27 = vpop.f32.mrf.mxu1  ;;  %vm4374_vm15 = vcmp.gt.f32.partialorder %v4366_v31, 0.0  ;;  %v8062_v26 = vld [vmem:[%s10806_s12 + $0x3c0] ss:$28 sps:$4 sm:$0xff]  }
 0x58e   :  { %v4329_v35 = vpop.f32.mrf.mxu0  ;;  %5944 = vmatpush2.bf16.msra.mxu0 %v7993_v30  ;;  %v8073_v30 = vld [vmem:[%s10806_s12 + $0x14] ss:$28 sps:$4 sm:$0xff]   ;;  %v8085_v27 = vld [vmem:[%s10806_s12 + $0x324] ss:$28 sps:$4 sm:$0xff]  }
 0x58f   :  { %8232 = vpow2.f32 %v4380_v34  ;;  %v4382_v37 = vmul.f32 1.442695, %v4368_v24  ;;  %v4370_v38 = vpop.f32.mrf.mxu1  ;;  %5945 = vmatprep.subr.bf16.mxu0 %v8001_v20  ;;  %vm4375_vm1 = vcmp.gt.f32.partialorder %v4368_v24, 0.0  ;;  %v8071_v52 = vld [vmem:[%s10806_s12 + $0x10] ss:$28 sps:$4 sm:$0xff]  }
 0x590   :  { %v8076_v19 = vld [vmem:[%s10806_s12 + $0x6d4] ss:$28 sps:$4 sm:$0xff]   ;;  %v8079_v20 = vld [vmem:[%s10806_s12 + $0x35c] ss:$28 sps:$4 sm:$0xff]   ;;  %v8091_v38 = vld [vmem:[%s10806_s12 + $0x2ec] ss:$28 sps:$4 sm:$0xff]  }
 0x591   :  { %8234 = vpow2.f32 %v4382_v37  ;;  %v8074_v33 = vld [vmem:[%s10806_s12 + $0x6d0] ss:$28 sps:$4 sm:$0xff]   ;;  %v8077_v34 = vld [vmem:[%s10806_s12 + $0x358] ss:$28 sps:$4 sm:$0xff]   ;;  %v8088_v37 = vld [vmem:[%s10806_s12 + $0x664] ss:$28 sps:$4 sm:$0xff]  }
 0x592   :  { %5946 = vmatpush2.bf16.msra.mxu0 %v7999_v8  ;;  %v8080_v35 = vld [vmem:[%s10806_s12 + $0x698] ss:$28 sps:$4 sm:$0xff]   ;;  %v8083_v8 = vld [vmem:[%s10806_s12 + $0x320] ss:$28 sps:$4 sm:$0xff]  }
 0x593   :  { %5947 = vmatprep.subr.bf16.mxu0 %v8007_v39  ;;  %v8086_v39 = vld [vmem:[%s10806_s12 + $0x660] ss:$28 sps:$4 sm:$0xff]  }
 0x596   :  { %5948 = vmatpush2.bf16.msra.mxu0 %v8005_v43  ;;  %v8089_v43 = vld [vmem:[%s10806_s12 + $0x2e8] ss:$28 sps:$4 sm:$0xff]  }
 0x597   :  { %5949 = vmatprep.subr.bf16.mxu0 %v8013_v44  ;;  %v8094_v44 = vld [vmem:[%s10806_s12 + $0x62c] ss:$28 sps:$4 sm:$0xff]  }
 0x59a   :  { %5950 = vmatpush2.bf16.msra.mxu0 %v8011_v45  ;;  %v8097_v45 = vld [vmem:[%s10806_s12 + $0x2b4] ss:$28 sps:$4 sm:$0xff]  }
 0x59b   :  { %5951 = vmatprep.subr.bf16.mxu0 %v8019_v40  ;;  %v8092_v40 = vld [vmem:[%s10806_s12 + $0x628] ss:$28 sps:$4 sm:$0xff]  }
 0x59c   :  { %v8233_v48 = vpop.eup %8232 }
 0x59d   :  { %v6785_v49 = vadd.f32 -1.0, %v8233_v48  ;;  %v8103_v48 = vld [vmem:[%s10806_s12 + $0x27c] ss:$28 sps:$4 sm:$0xff]  }
 0x59e   :  { %v8235_v50 = vpop.eup %8234  ;;  %5952 = vmatpush2.bf16.msra.mxu0 %v8017_v46  ;;  %v8095_v46 = vld [vmem:[%s10806_s12 + $0x2b0] ss:$28 sps:$4 sm:$0xff]  }
 0x59f   :  { %v6786_v53 = vadd.f32 -1.0, %v8235_v50  ;;  %5953 = vmatprep.subr.bf16.mxu0 %v8025_v47  ;;  %v4390_v55 = vsel %vm4374_vm15, %v4366_v31, %v6785_v49  ;;  %v8068_v31 = vld [vmem:[%s10806_s12 + $0x388] ss:$28 sps:$4 sm:$0xff]   ;;  %v8100_v47 = vld [vmem:[%s10806_s12 + $0x5f4] ss:$28 sps:$4 sm:$0xff]  }
 0x5a0   :  { %v10381_v58 = vpack.c.bf16 %v4390_v55, %v4390_v55  ;;  %v8098_v49 = vld [vmem:[%s10806_s12 + $0x5f0] ss:$28 sps:$4 sm:$0xff]   ;;  %v8101_v50 = vld [vmem:[%s10806_s12 + $0x278] ss:$28 sps:$4 sm:$0xff]   ;;  %v8107_v55 = vld [vmem:[%s10806_s12 + $0x240] ss:$28 sps:$4 sm:$0xff]  }
 0x5a1   :  { %v4391_v56 = vsel %vm4375_vm1, %v4368_v24, %v6786_v53  ;;  %v8082_v24 = vld [vmem:[%s10806_s12 + $0x69c] ss:$28 sps:$4 sm:$0xff]   ;;  %v8109_v53 = vld [vmem:[%s10806_s12 + $0x244] ss:$28 sps:$4 sm:$0xff]  }
 0x5a2   :  { %v10376_v57 = vpack.c.bf16 %v4391_v56, %v4391_v56  ;;  %5954 = vmatpush2.bf16.msra.mxu0 %v8023_v51  ;;  %v8106_v51 = vld [vmem:[%s10806_s12 + $0x5bc] ss:$28 sps:$4 sm:$0xff]   ;;  %v8112_v56 = vld [vmem:[%s10806_s12 + $0x584] ss:$28 sps:$4 sm:$0xff]  }
 0x5a3   :  { %6005 = vmatprep.subr.bf16.mxu0 %v8031_v54  ;;  %v8104_v54 = vld [vmem:[%s10806_s12 + $0x5b8] ss:$28 sps:$4 sm:$0xff]  }
 0x5a4   :  { %5914 = vmatprep.mubr.bf16.mxu1 %v10376_v57 }
 0x5a5   :  { %5915 = vmatmul.mubr.bf16.vlgmr.msra.gmra.mxu1 %v10381_v58  ;;  %5956 = vmatmul.mubr.bf16.vlgmr.msra.gmra.mxu0 %v10274_v61 }
 0x5a6   :  { %5965 = vmatpush1.bf16.msra.mxu1 %v8026_v16  ;;  %5996 = vmatprep.mubr.bf16.mxu1 %v10376_v57  ;;  %v8115_v16 = vld [vmem:[%s10806_s12 + $0x20c] ss:$28 sps:$4 sm:$0xff]  }
 0x5a7   :  { %6006 = vmatpush1.bf16.msra.mxu0 %v8029_v60  ;;  %6037 = vmatprep.mubr.bf16.mxu0 %v10269_v59  ;;  %v8110_v60 = vld [vmem:[%s10806_s12 + $0x580] ss:$28 sps:$4 sm:$0xff]  }
 0x5a8   :  { %5966 = vmatprep.subr.bf16.mxu1 %v8034_v62  ;;  %6007 = vmatprep.subr.bf16.mxu0 %v8037_v63  ;;  %v8113_v62 = vld [vmem:[%s10806_s12 + $0x208] ss:$28 sps:$4 sm:$0xff]  }
 0x5a9   :  { %v8118_v63 = vld [vmem:[%s10806_s12 + $0x54c] ss:$28 sps:$4 sm:$0xff]  }
 0x5aa   :  { %5967 = vmatpush1.bf16.msra.mxu1 %v8032_v0  ;;  %v8121_v0 = vld [vmem:[%s10806_s12 + $0x1d4] ss:$28 sps:$4 sm:$0xff]  }
 0x5ab   :  { %6008 = vmatpush1.bf16.msra.mxu0 %v8035_v1  ;;  %5968 = vmatprep.subr.bf16.mxu1 %v8040_v2  ;;  %v8116_v1 = vld [vmem:[%s10806_s12 + $0x548] ss:$28 sps:$4 sm:$0xff]   ;;  %v8119_v2 = vld [vmem:[%s10806_s12 + $0x1d0] ss:$28 sps:$4 sm:$0xff]  }
 0x5ac   :  { %6009 = vmatprep.subr.bf16.mxu0 %v8043_v3  ;;  %v8124_v3 = vld [vmem:[%s10806_s12 + $0x51c] ss:$28 sps:$4 sm:$0xff]  }
 0x5ae   :  { %5969 = vmatpush1.bf16.msra.mxu1 %v8038_v4  ;;  %v8125_v4 = vld [vmem:[%s10806_s12 + $0x360] ss:$28 sps:$4 sm:$0xff]  }
 0x5af   :  { %6010 = vmatpush1.bf16.msra.mxu0 %v8041_v5  ;;  %5970 = vmatprep.subr.bf16.mxu1 %v8046_v6  ;;  %v8122_v5 = vld [vmem:[%s10806_s12 + $0x518] ss:$28 sps:$4 sm:$0xff]   ;;  %v8126_v6 = vld [vmem:[%s10806_s12 + $0x1a0] ss:$28 sps:$4 sm:$0xff]  }
 0x5b0   :  { %6011 = vmatprep.subr.bf16.mxu0 %v8049_v7  ;;  %v8129_v7 = vld [vmem:[%s10806_s12 + $0x4e4] ss:$28 sps:$4 sm:$0xff]  }
 0x5b2   :  { %5971 = vmatpush1.bf16.msra.mxu1 %v8044_v10  ;;  %v8130_v10 = vld [vmem:[%s10806_s12 + $0x328] ss:$28 sps:$4 sm:$0xff]  }
 0x5b3   :  { %6012 = vmatpush1.bf16.msra.mxu0 %v8047_v12  ;;  %5972 = vmatprep.subr.bf16.mxu1 %v8052_v13  ;;  %v8127_v12 = vld [vmem:[%s10806_s12 + $0x4e0] ss:$28 sps:$4 sm:$0xff]   ;;  %v8131_v13 = vld [vmem:[%s10806_s12 + $0x168] ss:$28 sps:$4 sm:$0xff]  }
 0x5b4   :  { %6013 = vmatprep.subr.bf16.mxu0 %v8055_v14  ;;  %v8134_v14 = vld [vmem:[%s10806_s12 + $0x4ac] ss:$28 sps:$4 sm:$0xff]  }
 0x5b6   :  { %5973 = vmatpush1.bf16.msra.mxu1 %v8050_v15  ;;  %v8135_v15 = vld [vmem:[%s10806_s12 + $0x2f0] ss:$28 sps:$4 sm:$0xff]  }
 0x5b7   :  { %6014 = vmatpush1.bf16.msra.mxu0 %v8053_v17  ;;  %5974 = vmatprep.subr.bf16.mxu1 %v8058_v18  ;;  %v8132_v17 = vld [vmem:[%s10806_s12 + $0x4a8] ss:$28 sps:$4 sm:$0xff]   ;;  %v8136_v18 = vld [vmem:[%s10806_s12 + $0x130] ss:$28 sps:$4 sm:$0xff]  }
 0x5b8   :  { %6015 = vmatprep.subr.bf16.mxu0 %v8061_v11  ;;  %v8140_v11 = vld [vmem:[%s10806_s12 + $0x2b8] ss:$28 sps:$4 sm:$0xff]  }
 0x5ba   :  { %5975 = vmatpush1.bf16.msra.mxu1 %v8056_v21  ;;  %v8137_v21 = vld [vmem:[%s10806_s12 + $0x470] ss:$28 sps:$4 sm:$0xff]  }
 0x5bb   :  { %6016 = vmatpush1.bf16.msra.mxu0 %v8059_v22  ;;  %5976 = vmatprep.subr.bf16.mxu1 %v8064_v23  ;;  %v8141_v22 = vld [vmem:[%s10806_s12 + $0xf8] ss:$28 sps:$4 sm:$0xff]  }
 0x5bc   :  { %6017 = vmatprep.subr.bf16.mxu0 %v8067_v25  ;;  %v8144_v23 = vld [vmem:[%s10806_s12 + $0x43c] ss:$28 sps:$4 sm:$0xff]  }
 0x5bd   :  { %v8145_v25 = vld [vmem:[%s10806_s12 + $0x280] ss:$28 sps:$4 sm:$0xff]  }
 0x5be   :  { %5977 = vmatpush1.bf16.msra.mxu1 %v8062_v26  ;;  %v8142_v26 = vld [vmem:[%s10806_s12 + $0x438] ss:$28 sps:$4 sm:$0xff]  }
 0x5bf   :  { %6018 = vmatpush1.bf16.msra.mxu0 %v8065_v28  ;;  %5978 = vmatprep.subr.bf16.mxu1 %v8070_v29  ;;  %v8146_v28 = vld [vmem:[%s10806_s12 + $0xc0] ss:$28 sps:$4 sm:$0xff]  }
 0x5c0   :  { %6019 = vmatprep.subr.bf16.mxu0 %v8073_v30  ;;  %v8149_v29 = vld [vmem:[%s10806_s12 + $0x404] ss:$28 sps:$4 sm:$0xff]  }
 0x5c1   :  { %v8150_v30 = vld [vmem:[%s10806_s12 + $0x248] ss:$28 sps:$4 sm:$0xff]  }
 0x5c2   :  { %5979 = vmatpush1.bf16.msra.mxu1 %v8068_v31  ;;  %v8147_v31 = vld [vmem:[%s10806_s12 + $0x400] ss:$28 sps:$4 sm:$0xff]  }
 0x5c3   :  { %6020 = vmatpush1.bf16.msra.mxu0 %v8071_v52  ;;  %5980 = vmatprep.subr.bf16.mxu1 %v8076_v19  ;;  %v8151_v52 = vld [vmem:[%s10806_s12 + $0x88] ss:$28 sps:$4 sm:$0xff]  }
 0x5c4   :  { %6021 = vmatprep.subr.bf16.mxu0 %v8079_v20  ;;  %v8154_v19 = vld [vmem:[%s10806_s12 + $0x3cc] ss:$28 sps:$4 sm:$0xff]  }
 0x5c5   :  { %v8155_v20 = vld [vmem:[%s10806_s12 + $0x210] ss:$28 sps:$4 sm:$0xff]  }
 0x5c6   :  { %5981 = vmatpush2.bf16.msra.mxu1 %v8074_v33  ;;  %v8152_v33 = vld [vmem:[%s10806_s12 + $0x3c8] ss:$28 sps:$4 sm:$0xff]  }
 0x5c7   :  { %6022 = vmatpush2.bf16.msra.mxu0 %v8077_v34  ;;  %5982 = vmatprep.subr.bf16.mxu1 %v8082_v24  ;;  %v8156_v34 = vld [vmem:[%s10806_s12 + $0x50] ss:$28 sps:$4 sm:$0xff]  }
 0x5c8   :  { %6023 = vmatprep.subr.bf16.mxu0 %v8085_v27  ;;  %v8159_v24 = vld [vmem:[%s10806_s12 + $0x394] ss:$28 sps:$4 sm:$0xff]  }
 0x5c9   :  { %v8160_v27 = vld [vmem:[%s10806_s12 + $0x1d8] ss:$28 sps:$4 sm:$0xff]  }
 0x5ca   :  { %5983 = vmatpush2.bf16.msra.mxu1 %v8080_v35  ;;  %v8157_v35 = vld [vmem:[%s10806_s12 + $0x390] ss:$28 sps:$4 sm:$0xff]  }
 0x5cb   :  { %6024 = vmatpush2.bf16.msra.mxu0 %v8083_v8  ;;  %5984 = vmatprep.subr.bf16.mxu1 %v8088_v37  ;;  %v8161_v8 = vld [vmem:[%s10806_s12 + $0x18] ss:$28 sps:$4 sm:$0xff]  }
 0x5cc   :  { %6025 = vmatprep.subr.bf16.mxu0 %v8091_v38  ;;  %v8164_v37 = vld [vmem:[%s10806_s12 + $0x6dc] ss:$28 sps:$4 sm:$0xff]  }
 0x5cd   :  { %v8162_v38 = vld [vmem:[%s10806_s12 + $0x6d8] ss:$28 sps:$4 sm:$0xff]  }
 0x5ce   :  { %5985 = vmatpush2.bf16.msra.mxu1 %v8086_v39  ;;  %v8167_v39 = vld [vmem:[%s10806_s12 + $0x6a4] ss:$28 sps:$4 sm:$0xff]  }
 0x5cf   :  { %6026 = vmatpush2.bf16.msra.mxu0 %v8089_v43  ;;  %5986 = vmatprep.subr.bf16.mxu1 %v8094_v44  ;;  %v8165_v43 = vld [vmem:[%s10806_s12 + $0x6a0] ss:$28 sps:$4 sm:$0xff]   ;;  %v8170_v44 = vld [vmem:[%s10806_s12 + $0x66c] ss:$28 sps:$4 sm:$0xff]  }
 0x5d0   :  { %6027 = vmatprep.subr.bf16.mxu0 %v8097_v45  ;;  %v8168_v45 = vld [vmem:[%s10806_s12 + $0x668] ss:$28 sps:$4 sm:$0xff]  }
 0x5d2   :  { %5987 = vmatpush2.bf16.msra.mxu1 %v8092_v40  ;;  %v8173_v40 = vld [vmem:[%s10806_s12 + $0x634] ss:$28 sps:$4 sm:$0xff]  }
 0x5d3   :  { %6028 = vmatpush2.bf16.msra.mxu0 %v8095_v46  ;;  %5988 = vmatprep.subr.bf16.mxu1 %v8100_v47  ;;  %v8176_v46 = vld [vmem:[%s10806_s12 + $0x5fc] ss:$28 sps:$4 sm:$0xff]  }
 0x5d4   :  { %6029 = vmatprep.subr.bf16.mxu0 %v8103_v48  ;;  %v8174_v47 = vld [vmem:[%s10806_s12 + $0x5f8] ss:$28 sps:$4 sm:$0xff]   ;;  %v8179_v48 = vld [vmem:[%s10806_s12 + $0x5c4] ss:$28 sps:$4 sm:$0xff]  }
 0x5d6   :  { %5989 = vmatpush2.bf16.msra.mxu1 %v8098_v49  ;;  %v8177_v49 = vld [vmem:[%s10806_s12 + $0x5c0] ss:$28 sps:$4 sm:$0xff]  }
 0x5d7   :  { %6030 = vmatpush2.bf16.msra.mxu0 %v8101_v50  ;;  %5990 = vmatprep.subr.bf16.mxu1 %v8106_v51  ;;  %v8182_v50 = vld [vmem:[%s10806_s12 + $0x58c] ss:$28 sps:$4 sm:$0xff]  }
 0x5d8   :  { %6031 = vmatprep.subr.bf16.mxu0 %v8109_v53  ;;  %v8180_v51 = vld [vmem:[%s10806_s12 + $0x588] ss:$28 sps:$4 sm:$0xff]   ;;  %v8185_v53 = vld [vmem:[%s10806_s12 + $0x554] ss:$28 sps:$4 sm:$0xff]  }
 0x5da   :  { %5991 = vmatpush2.bf16.msra.mxu1 %v8104_v54  ;;  %v8183_v54 = vld [vmem:[%s10806_s12 + $0x550] ss:$28 sps:$4 sm:$0xff]  }
 0x5db   :  { %6032 = vmatpush2.bf16.msra.mxu0 %v8107_v55  ;;  %5992 = vmatprep.subr.bf16.mxu1 %v8112_v56  ;;  %v8186_v55 = vld [vmem:[%s10806_s12 + $0x6e0] ss:$28 sps:$4 sm:$0xff]  }
 0x5dc   :  { %6033 = vmatprep.subr.bf16.mxu0 %v8115_v16  ;;  %v8187_v56 = vld [vmem:[%s10806_s12 + $0x520] ss:$28 sps:$4 sm:$0xff]   ;;  %v8188_v16 = vld [vmem:[%s10806_s12 + $0x6a8] ss:$28 sps:$4 sm:$0xff]  }
 0x5de   :  { %5993 = vmatpush2.bf16.msra.mxu1 %v8110_v60 }
 0x5df   :  { %6034 = vmatpush2.bf16.msra.mxu0 %v8113_v62  ;;  %5994 = vmatprep.subr.bf16.mxu1 %v8118_v63  ;;  %v8189_v62 = vld [vmem:[%s10806_s12 + $0x4e8] ss:$28 sps:$4 sm:$0xff]  }
 0x5e0   :  { %6035 = vmatprep.subr.bf16.mxu0 %v8121_v0  ;;  %v8190_v0 = vld [vmem:[%s10806_s12 + $0x670] ss:$28 sps:$4 sm:$0xff]  }
 0x5e2   :  { %5995 = vmatpush2.bf16.msra.mxu1 %v8116_v1 }
 0x5e3   :  { %6036 = vmatpush2.bf16.msra.mxu0 %v8119_v2  ;;  %6046 = vmatprep.subr.bf16.mxu1 %v8124_v3  ;;  %v8191_v2 = vld [vmem:[%s10806_s12 + $0x4b0] ss:$28 sps:$4 sm:$0xff]  }
 0x5e4   :  { %7011 = vmatprep.subr.bf16.mxu0 %v8125_v4  ;;  %v8193_v4 = vld [vmem:[%s10806_s12 + $0x478] ss:$28 sps:$4 sm:$0xff]  }
 0x5e5   :  { %5997 = vmatmul.mubr.bf16.vlgmr.msra.gmra.mxu1 %v10381_v58 }
 0x5e6   :  { %6038 = vmatmul.mubr.bf16.vlgmr.msra.gmra.mxu0 %v10274_v61  ;;  %6047 = vmatpush1.bf16.msra.mxu1 %v8122_v5  ;;  %v8194_v5 = vld [vmem:[%s10806_s12 + $0x600] ss:$28 sps:$4 sm:$0xff]  }
 0x5e7   :  { %6078 = vmatprep.mubr.bf16.mxu1 %v10376_v57  ;;  %7012 = vmatpush3.bf16.msra.mxu0 %v8126_v6  ;;  %v8195_v6 = vld [vmem:[%s10806_s12 + $0x440] ss:$28 sps:$4 sm:$0xff]  }
 0x5e8   :  { %6119 = vmatprep.mubr.bf16.mxu0 %v10269_v59  ;;  %6048 = vmatprep.subr.bf16.mxu1 %v8129_v7  ;;  %v8139_v59 = vld [vmem:[%s10806_s12 + $0x474] ss:$28 sps:$4 sm:$0xff]   ;;  %v8196_v7 = vld [vmem:[%s10806_s12 + $0x5c8] ss:$28 sps:$4 sm:$0xff]  }
 0x5e9   :  { %7013 = vmatprep.subr.bf16.mxu0 %v8130_v10  ;;  %v8197_v10 = vld [vmem:[%s10806_s12 + $0x408] ss:$28 sps:$4 sm:$0xff]  }
 0x5ea   :  { %6049 = vmatpush1.bf16.msra.mxu1 %v8127_v12  ;;  %v8198_v12 = vld [vmem:[%s10806_s12 + $0x590] ss:$28 sps:$4 sm:$0xff]  }
 0x5eb   :  { %7014 = vmatpush3.bf16.msra.mxu0 %v8131_v13  ;;  %6050 = vmatprep.subr.bf16.mxu1 %v8134_v14  ;;  %v8199_v13 = vld [vmem:[%s10806_s12 + $0x3d0] ss:$28 sps:$4 sm:$0xff]   ;;  %v8200_v14 = vld [vmem:[%s10806_s12 + $0x558] ss:$28 sps:$4 sm:$0xff]  }
 0x5ec   :  { %7015 = vmatprep.subr.bf16.mxu0 %v8135_v15  ;;  %v8201_v15 = vld [vmem:[%s10806_s12 + $0x398] ss:$28 sps:$4 sm:$0xff]  }
 0x5ee   :  { %6051 = vmatpush1.bf16.msra.mxu1 %v8132_v17  ;;  %v10774_v17 = vld [vmem:[%s10807_s13] sm:$0x7f] }
 0x5ef   :  { %7016 = vmatpush3.bf16.msra.mxu0 %v8136_v18  ;;  %6052 = vmatprep.subr.bf16.mxu1 %v8139_v59  ;;  %v4657_v18 = vrot.slane %v10774_v17, %v9229_v41  ;;  %v4661_v59 = vrot.slane %v10774_v17, %v9232_v42 }
 0x5f0   :  { %7017 = vmatprep.subr.bf16.mxu0 %v8140_v11 }
 0x5f2   :  { %6053 = vmatpush1.bf16.msra.mxu1 %v8137_v21 }
 0x5f3   :  { %7018 = vmatpush3.bf16.msra.mxu0 %v8141_v22  ;;  %6054 = vmatprep.subr.bf16.mxu1 %v8144_v23 }
 0x5f4   :  { %7019 = vmatprep.subr.bf16.mxu0 %v8145_v25 }
 0x5f6   :  { %6055 = vmatpush1.bf16.msra.mxu1 %v8142_v26 }
 0x5f7   :  { %7020 = vmatpush3.bf16.msra.mxu0 %v8146_v28  ;;  %6056 = vmatprep.subr.bf16.mxu1 %v8149_v29 }
 0x5f8   :  { %7021 = vmatprep.subr.bf16.mxu0 %v8150_v30 }
 0x5fa   :  { %6057 = vmatpush1.bf16.msra.mxu1 %v8147_v31 }
 0x5fb   :  { %7022 = vmatpush3.bf16.msra.mxu0 %v8151_v52  ;;  %6058 = vmatprep.subr.bf16.mxu1 %v8154_v19 }
 0x5fc   :  { %7023 = vmatprep.subr.bf16.mxu0 %v8155_v20 }
 0x5fe   :  { %6059 = vmatpush1.bf16.msra.mxu1 %v8152_v33 }
 0x5ff   :  { %7024 = vmatpush3.bf16.msra.mxu0 %v8156_v34  ;;  %6060 = vmatprep.subr.bf16.mxu1 %v8159_v24 }
 0x600   :  { %7025 = vmatprep.subr.bf16.mxu0 %v8160_v27 }
 0x602   :  { %6061 = vmatpush1.bf16.msra.mxu1 %v8157_v35  ;;  %v4665_v35 = vrot.slane %v10774_v17, %v9300_v9 }
 0x603   :  { %7026 = vmatpush3.bf16.msra.mxu0 %v8161_v8  ;;  %6062 = vmatprep.subr.bf16.mxu1 %v8164_v37  ;;  %v4669_v8 = vrot.slane %v10774_v17, %v9306_v32 }
 0x606   :  { %6063 = vmatpush2.bf16.msra.mxu1 %v8162_v38  ;;  %6120 = vmatmul.mubr.bf16.vlgmr.msra.gmra.mxu0 %v10274_v61  ;;  %v8171_v61 = vld [vmem:[%s10806_s12 + $0x630] ss:$28 sps:$4 sm:$0xff]  }
 0x607   :  { %6064 = vmatprep.subr.bf16.mxu1 %v8167_v39 }
 0x60a   :  { %6065 = vmatpush2.bf16.msra.mxu1 %v8165_v43 }
 0x60b   :  { %6066 = vmatprep.subr.bf16.mxu1 %v8170_v44 }
 0x60e   :  { %6067 = vmatpush2.bf16.msra.mxu1 %v8168_v45 }
 0x60f   :  { %6068 = vmatprep.subr.bf16.mxu1 %v8173_v40 }
 0x612   :  { %6069 = vmatpush2.bf16.msra.mxu1 %v8171_v61 }
 0x613   :  { %6070 = vmatprep.subr.bf16.mxu1 %v8176_v46 }
 0x616   :  { %6071 = vmatpush2.bf16.msra.mxu1 %v8174_v47 }
 0x617   :  { %6072 = vmatprep.subr.bf16.mxu1 %v8179_v48 }
 0x61a   :  { %6073 = vmatpush2.bf16.msra.mxu1 %v8177_v49 }
 0x61b   :  { %6074 = vmatprep.subr.bf16.mxu1 %v8182_v50 }
 0x61e   :  { %6075 = vmatpush2.bf16.msra.mxu1 %v8180_v51 }
 0x61f   :  { %6076 = vmatprep.subr.bf16.mxu1 %v8185_v53 }
 0x622   :  { %6077 = vmatpush2.bf16.msra.mxu1 %v8183_v54 }
 0x623   :  { %7033 = vmatprep.subr.bf16.mxu1 %v8186_v55 }
 0x625   :  { %6079 = vmatmul.mubr.bf16.vlgmr.msra.gmra.mxu1 %v10381_v58  ;;  %v5875_v60 = vpop.f32.mrf.mxu0 }
 0x626   :  { %7034 = vmatpush3.bf16.msra.mxu1 %v8187_v56  ;;  %6159 = vmatprep.mubr.bf16.mxu1 %v10376_v57  ;;  %v8192_v57 = vld [vmem:[%s10806_s12 + $0x638] ss:$28 sps:$4 sm:$0xff]   ;;  %v5876_v11 = vadd.f32 %v5875_v60, %v4657_v18  ;;  %s8298_s12 = smov [#allocation5]  }
 0x627   :  { %v5877_v63 = vpop.f32.mrf.mxu0  ;;  %7035 = vmatprep.subr.bf16.mxu1 %v8188_v16  ;;  %s6208_s13 = sshll.u32 %s8298_s12, 4  ;;  %s6209_s13 = int_to_ptr.vmem [resolvable:$true] %s6208_s13 }
 0x628   :  { %v5878_v23 = vadd.f32 %v5877_v63, %v4661_v59  ;;  %s8270_s26 = scalar_lea.vmem %s6209_s13, 896  ;;  %p8275_p6 = scmp.lt.s32.totalorder %s6209_s13, %s6209_s13 }
 0x629   :  { %v5879_v1 = vpop.f32.mrf.mxu0  ;;  %p8271_p5 = scmp.ne.s32.totalorder %s6209_s13, %s8270_s26  ;;  %p8276_p7 = scmp.lt.s32.totalorder %s8270_s26, %s8270_s26 }
 0x62a   :  { %7036 = vmatpush3.bf16.msra.mxu1 %v8189_v62  ;;  %v4676_v1 = vsub.s32 5, %v9221_v36 }
 0x62b   :  { %v5880_v3 = vpop.f32.mrf.mxu0  ;;  %7037 = vmatprep.subr.bf16.mxu1 %v8190_v0  ;;  %v4672_v0 = vsub.s32 4, %v9221_v36  ;;  %p8277_p8 = por %p8276_p7, %p8275_p6 }
 0x62c   :  { %v4677_v3 = vrot.slane %v10774_v17, %v4676_v1 }
 0x62d   :  { %p8278_p9 = pnand %p8277_p8, %p8271_p5 }
 0x62e   :  { %7038 = vmatpush3.bf16.msra.mxu1 %v8191_v2  ;;  %v4673_v2 = vrot.slane %v10774_v17, %v4672_v0 }
 0x62f   :  { %7039 = vmatprep.subr.bf16.mxu1 %v8192_v57 }
 0x632   :  { %7040 = vmatpush3.bf16.msra.mxu1 %v8193_v4 }
 0x633   :  { %7041 = vmatprep.subr.bf16.mxu1 %v8194_v5 }
 0x636   :  { %7042 = vmatpush3.bf16.msra.mxu1 %v8195_v6 }
 0x637   :  { %7043 = vmatprep.subr.bf16.mxu1 %v8196_v7 }
 0x63a   :  { %7044 = vmatpush3.bf16.msra.mxu1 %v8197_v10 }
 0x63b   :  { %7045 = vmatprep.subr.bf16.mxu1 %v8198_v12 }
 0x63e   :  { %7046 = vmatpush3.bf16.msra.mxu1 %v8199_v13 }
 0x63f   :  { %7047 = vmatprep.subr.bf16.mxu1 %v8200_v14 }
 0x642   :  { %7048 = vmatpush3.bf16.msra.mxu1 %v8201_v15 }
 0x645   :  { %6160 = vmatmul.mubr.bf16.vlgmr.msra.gmra.mxu1 %v10381_v58 }
 0x665   :  { %v5916_v21 = vpop.f32.mrf.mxu1  ;;  %v5957_v22 = vpop.f32.mrf.mxu0 }
 0x666   :  { %v5917_v25 = vadd.f32 %v5916_v21, %v5876_v11  ;;  %v5958_v37 = vadd.f32 %v5957_v22, %v4665_v35 }
 0x667   :  { %v5918_v26 = vpop.f32.mrf.mxu1  ;;  %v5959_v28 = vpop.f32.mrf.mxu0 }
 0x668   :  { %v6167_v29 = vmul.f32 0.5, %v5917_v25  ;;  %v5919_v58 = vadd.f32 %v5918_v26, %v5878_v23  ;;  %v5960_v39 = vadd.f32 %v5959_v28, %v4669_v8  ;;  %v4680_v25 = vsub.s32 6, %v9221_v36 }
 0x669   :  { %v5920_v30 = vpop.f32.mrf.mxu1  ;;  %v5961_v31 = vpop.f32.mrf.mxu0 }
 0x66a   :  { %8236 = vtanh.f32 %v6167_v29  ;;  %v6168_v52 = vmul.f32 0.5, %v5919_v58  ;;  %v4681_v26 = vrot.slane %v10774_v17, %v4680_v25 }
 0x66b   :  { %v5921_v19 = vpop.f32.mrf.mxu1  ;;  %v5962_v20 = vpop.f32.mrf.mxu0 }
 0x66c   :  { %8238 = vtanh.f32 %v6168_v52 }
 0x677   :  { %v8237_v41 = vpop.eup %8236 }
 0x678   :  { %v6181_v33 = vadd.f32 1.0, %v8237_v41 }
 0x679   :  { %v8239_v34 = vpop.eup %8238 }
 0x67a   :  { %v6188_v42 = vmul.f32 0.5, %v6181_v33  ;;  %v6182_v24 = vadd.f32 1.0, %v8239_v34 }
 0x67c   :  { %6195 = vst [vmem:[#allocation5] sm:$0xff] %v6188_v42  ;;  %v6189_v27 = vmul.f32 0.5, %v6182_v24 }
 0x67e   :  { %6196 = vst [vmem:[#allocation5 + $0x8] sm:$0xff] %v6189_v27 }
 0x6a5   :  { %v5998_v38 = vpop.f32.mrf.mxu1 }
 0x6a6   :  { %v5999_v43 = vadd.f32 %v5998_v38, %v5958_v37  ;;  %v6039_v44 = vpop.f32.mrf.mxu0 }
 0x6a7   :  { %v6000_v45 = vpop.f32.mrf.mxu1  ;;  %v6040_v57 = vadd.f32 %v6039_v44, %v4673_v2 }
 0x6a8   :  { %v6169_v40 = vmul.f32 0.5, %v5999_v43  ;;  %v6001_v61 = vadd.f32 %v6000_v45, %v5960_v39  ;;  %v6041_v46 = vpop.f32.mrf.mxu0 }
 0x6a9   :  { %v6002_v47 = vpop.f32.mrf.mxu1  ;;  %v6042_v5 = vadd.f32 %v6041_v46, %v4677_v3 }
 0x6aa   :  { %8240 = vtanh.f32 %v6169_v40  ;;  %v6170_v48 = vmul.f32 0.5, %v6001_v61  ;;  %v6043_v49 = vpop.f32.mrf.mxu0 }
 0x6ab   :  { %v6003_v50 = vpop.f32.mrf.mxu1 }
 0x6ac   :  { %8242 = vtanh.f32 %v6170_v48  ;;  %v6044_v51 = vpop.f32.mrf.mxu0 }
 0x6b7   :  { %v8241_v9 = vpop.eup %8240 }
 0x6b8   :  { %v6183_v53 = vadd.f32 1.0, %v8241_v9 }
 0x6b9   :  { %v8243_v54 = vpop.eup %8242 }
 0x6ba   :  { %v6190_v32 = vmul.f32 0.5, %v6183_v53  ;;  %v6184_v55 = vadd.f32 1.0, %v8243_v54 }
 0x6bc   :  { %6197 = vst [vmem:[#allocation5 + $0x10] sm:$0xff] %v6190_v32  ;;  %v6191_v56 = vmul.f32 0.5, %v6184_v55 }
 0x6be   :  { %6198 = vst [vmem:[#allocation5 + $0x18] sm:$0xff] %v6191_v56 }
 0x6c6   :  { %v7027_v16 = vpop.f32.mrf.mxu0 }
 0x6c8   :  { %v7028_v60 = vpop.f32.mrf.mxu0 }
 0x6c9   :  { %v7029_v28 = vadd.f32 %v7028_v60, %v7027_v16 }
 0x6ca   :  { %v7030_v62 = vpop.f32.mrf.mxu0 }
 0x6cb   :  { %v6122_v30 = vadd.f32 %v7029_v28, %v4681_v26 }
 0x6cc   :  { %v7031_v63 = vpop.f32.mrf.mxu0 }
 0x6e5   :  { %v6080_v4 = vpop.f32.mrf.mxu1 }
 0x6e6   :  { %v6081_v6 = vadd.f32 %v6080_v4, %v6040_v57 }
 0x6e7   :  { %v6082_v7 = vpop.f32.mrf.mxu1 }
 0x6e8   :  { %v6171_v10 = vmul.f32 0.5, %v6081_v6  ;;  %v6083_v12 = vadd.f32 %v6082_v7, %v6042_v5 }
 0x6e9   :  { %v6084_v13 = vpop.f32.mrf.mxu1 }
 0x6ea   :  { %8244 = vtanh.f32 %v6171_v10  ;;  %v6172_v14 = vmul.f32 0.5, %v6083_v12 }
 0x6eb   :  { %v6085_v15 = vpop.f32.mrf.mxu1 }
 0x6ec   :  { %8246 = vtanh.f32 %v6172_v14 }
 0x6f7   :  { %v8245_v18 = vpop.eup %8244 }
 0x6f8   :  { %v6185_v59 = vadd.f32 1.0, %v8245_v18 }
 0x6f9   :  { %v8247_v11 = vpop.eup %8246 }
 0x6fa   :  { %v6192_v21 = vmul.f32 0.5, %v6185_v59  ;;  %v6186_v22 = vadd.f32 1.0, %v8247_v11 }
 0x6fc   :  { %6199 = vst [vmem:[#allocation5 + $0x20] sm:$0xff] %v6192_v21  ;;  %v6193_v23 = vmul.f32 0.5, %v6186_v22 }
 0x6fe   :  { %6200 = vst [vmem:[#allocation5 + $0x28] sm:$0xff] %v6193_v23 }
 0x705   :  { %v7049_v29 = vpop.f32.mrf.mxu1 }
 0x707   :  { %v7050_v58 = vpop.f32.mrf.mxu1 }
 0x708   :  { %v7051_v31 = vadd.f32 %v7050_v58, %v7049_v29 }
 0x709   :  { %v7052_v52 = vpop.f32.mrf.mxu1 }
 0x70a   :  { %v6162_v19 = vadd.f32 %v7051_v31, %v6122_v30 }
 0x70b   :  { %v7053_v20 = vpop.f32.mrf.mxu1 }
 0x70c   :  { %v6173_v41 = vmul.f32 0.5, %v6162_v19 }
 0x70e   :  { %8248 = vtanh.f32 %v6173_v41 }
 0x71b   :  { %v8249_v33 = vpop.eup %8248 }
 0x71c   :  { %v6187_v34 = vadd.f32 1.0, %v8249_v33 }
 0x71e   :  { %v6194_v42 = vmul.f32 0.5, %v6187_v34 }
 0x720   :  { %6201 = vst.msk [vmem:[#allocation5 + $0x30] sm:$0xff] %vm1277_vm0, %v6194_v42 }
 0x721   :  { %8281 = shalt.err (!%p8278_p9)
}
 0x722   :  { %6211 = dma.vmem_to_hbm [thread:$0]  %s6209_s13, 896, %s10808_s14, [#allocation4]  }
 0x723   :  { %8292 = dma.done.wait [#allocation4], 896  }
 0x724   :  { %8293 = vsyncadd [#allocation4], 4294966400 }
 0x725   :  { %6219 = vsyncpa [#allocation3], 1 }
 0x726   :  { %6220 = vsyncpa [#allocation4], 1 }

</bundles_post_ra>
